<compile_context>
chip_gen: v5e
topology: v5e:2x2
jax: 0.10.0
libtpu: 0.0.40
codegen_flags: <defaults>
</compile_context>

<pallas_src>
import functools

import jax
import jax.numpy as jnp
import numpy as np
from jax.experimental import pallas as pl
from jax.experimental.pallas import tpu as pltpu


# ----------------------------------------------------------------------------
# Pallas kernels
# ----------------------------------------------------------------------------
def _cls_softmax_classes_kernel(p_ref, w_ref, b_ref, x_ref, o_ref):
    # p_ref: (1, Kp, HW)  w_ref: (T, Kp)  b_ref: (T, 1)
    # x_ref: (1, C, HW)   o_ref: (1, T, C, HW)
    logits = (
        jnp.dot(w_ref[...], p_ref[0], preferred_element_type=jnp.float32)
        + b_ref[...]
    )                                                   # [T, HW], lane-dense
    m = jnp.max(logits, axis=0, keepdims=True)
    e = jnp.exp(logits - m)
    label = e / jnp.sum(e, axis=0, keepdims=True)       # softmax over channels T
    xb = x_ref[0]                                       # [C, HW]
    T = o_ref.shape[1]
    for t in range(T):                                  # static unroll (T small)
        # classes[t, c, :] = x[c, :] * label[t, :] -- full-lane (C, HW) store
        o_ref[0, t] = xb * label[t : t + 1, :]


def _qk_embed_kernel(p_ref, w_ref, b_ref, o_ref):
    # p_ref: (1, T, Kqk, P)  w_ref: (hc, Kqk)  b_ref: (hc, 1)  o_ref: (1, T, hc, P)
    T = o_ref.shape[1]
    w = w_ref[...]
    b = b_ref[...]
    for t in range(T):                                  # all T classes per grid step
        o_ref[0, t] = (
            jnp.dot(w, p_ref[0, t], preferred_element_type=jnp.float32) + b
        )


def _attn_v_residual_kernel(xqk_ref, wqk_ref, pv_ref, wv_ref, bv_ref, x_ref, o_ref):
    # xqk_ref: (1, T, D)   wqk_ref: (2, D, I)   pv_ref: (1, T, Kp, HW)
    # wv_ref: (C, Kp)      bv_ref: (C, 1)       x_ref/o_ref: (1, C, HW)
    T = xqk_ref.shape[1]
    C = o_ref.shape[1]

    xq = xqk_ref[0]                                                   # [T, D]
    q = jnp.dot(xq, wqk_ref[0], preferred_element_type=jnp.float32)   # [T, I]
    k = jnp.dot(xq, wqk_ref[1], preferred_element_type=jnp.float32)   # [T, I]
    dot = jax.lax.dot_general(
        q, k, (((1,), (1,)), ((), ())), preferred_element_type=jnp.float32
    )                                                                 # [T, T]
    # torch.softmax(dot, dim=1) -> per batch, softmax over rows (axis 0 here).
    m = jnp.max(dot, axis=0, keepdims=True)
    e = jnp.exp(dot - m)
    attn = e / jnp.sum(e, axis=0, keepdims=True)                      # [T, T]

    # res = sum_t (attn @ v)[t] = (column-sum of attn) . v
    wsum = jnp.sum(attn, axis=0, keepdims=True)                       # [1, T]
    wsum_c = jnp.broadcast_to(wsum, (C, T))                           # sublane bcast

    wv = wv_ref[...]
    bv = bv_ref[...]
    res = x_ref[0]                                                    # [C, HW]
    for t in range(T):                                                # static unroll
        v_t = (
            jnp.dot(wv, pv_ref[0, t], preferred_element_type=jnp.float32) + bv
        )                                                             # [C, HW]
        res = res + v_t * wsum_c[:, t : t + 1]                        # lane bcast
    o_ref[0] = res                                                    # one full store


# ----------------------------------------------------------------------------
# Pallas wrappers
# ----------------------------------------------------------------------------
def cls_softmax_classes(p_cls, w_cls, b_cls, x_flat):
    B, Kp, HW = p_cls.shape
    T = w_cls.shape[0]
    C = x_flat.shape[1]
    return pl.pallas_call(
        _cls_softmax_classes_kernel,
        out_shape=jax.ShapeDtypeStruct((B, T, C, HW), jnp.float32),
        grid=(B,),
        in_specs=[
            pl.BlockSpec((1, Kp, HW), lambda b: (b, 0, 0)),
            pl.BlockSpec((T, Kp), lambda b: (0, 0)),
            pl.BlockSpec((T, 1), lambda b: (0, 0)),
            pl.BlockSpec((1, C, HW), lambda b: (b, 0, 0)),
        ],
        out_specs=pl.BlockSpec((1, T, C, HW), lambda b: (b, 0, 0, 0)),
        compiler_params=pltpu.CompilerParams(dimension_semantics=("parallel",)),
    )(p_cls, w_cls, b_cls, x_flat)


def qk_embed(p_qk, w_qk, b_qk):
    B, T, Kqk, P = p_qk.shape
    hc = w_qk.shape[0]
    return pl.pallas_call(
        _qk_embed_kernel,
        out_shape=jax.ShapeDtypeStruct((B, T, hc, P), jnp.float32),
        grid=(B,),
        in_specs=[
            pl.BlockSpec((1, T, Kqk, P), lambda b: (b, 0, 0, 0)),
            pl.BlockSpec((hc, Kqk), lambda b: (0, 0)),
            pl.BlockSpec((hc, 1), lambda b: (0, 0)),
        ],
        out_specs=pl.BlockSpec((1, T, hc, P), lambda b: (b, 0, 0, 0)),
        compiler_params=pltpu.CompilerParams(dimension_semantics=("parallel",)),
    )(p_qk, w_qk, b_qk)


def attn_v_residual(x_qk, wqk, p_v, w_v, b_v, x_flat):
    B, T, D = x_qk.shape
    I = wqk.shape[2]
    Kp, HW = p_v.shape[2], p_v.shape[3]
    C = w_v.shape[0]
    return pl.pallas_call(
        _attn_v_residual_kernel,
        out_shape=jax.ShapeDtypeStruct((B, C, HW), jnp.float32),
        grid=(B,),
        in_specs=[
            pl.BlockSpec((1, T, D), lambda b: (b, 0, 0)),
            pl.BlockSpec((2, D, I), lambda b: (0, 0, 0)),
            pl.BlockSpec((1, T, Kp, HW), lambda b: (b, 0, 0, 0)),
            pl.BlockSpec((C, Kp), lambda b: (0, 0)),
            pl.BlockSpec((C, 1), lambda b: (0, 0)),
            pl.BlockSpec((1, C, HW), lambda b: (b, 0, 0)),
        ],
        out_specs=pl.BlockSpec((1, C, HW), lambda b: (b, 0, 0)),
        compiler_params=pltpu.CompilerParams(dimension_semantics=("parallel",)),
    )(x_qk, wqk, p_v, w_v, b_v, x_flat)


# ----------------------------------------------------------------------------
# Glue: im2col patch extraction (static slicing only), lane-dense layout
# ----------------------------------------------------------------------------
def im2col(x, ksize, stride, pad):
    """x: [N, C, H, W] -> [N, C*ksize*ksize, Ho*Wo].

    Taps in (c, kh, kw) order along the second axis; spatial positions are
    lane-dense along the last axis (no transpose needed downstream)."""
    N, C, H, W = x.shape
    xp = jnp.pad(x, ((0, 0), (0, 0), (pad, pad), (pad, pad)))
    Ho = (H + 2 * pad - ksize) // stride + 1
    Wo = (W + 2 * pad - ksize) // stride + 1
    cols = []
    for kh in range(ksize):
        for kw in range(ksize):
            sl = xp[:, :, kh : kh + Ho * stride : stride, kw : kw + Wo * stride : stride]
            cols.append(sl)                               # [N, C, Ho, Wo]
    patches = jnp.stack(cols, axis=2)                     # [N, C, k*k, Ho, Wo]
    return patches.reshape(N, C * ksize * ksize, Ho * Wo)


# ----------------------------------------------------------------------------
# RAB forward
# ----------------------------------------------------------------------------
def rab_forward(x, params, class_num, hidden_channels):
    B, C, H, W = x.shape
    T = class_num
    hc = hidden_channels
    HW = H * W
    K5 = C * 25
    KP = 128                    # 5x5-conv contraction padded 100 -> 128 (aligned)
    x_flat = x.reshape(B, C, HW)

    # --- classification Conv2d(C->T,k=5,p=2) + Softmax(1) + classes multiply ---
    p_cls = im2col(x, 5, 1, 2)                                     # [B, 100, HW]
    p_cls = jnp.pad(p_cls, ((0, 0), (0, KP - K5), (0, 0)))         # [B, 128, HW]
    w_cls = jnp.pad(params["cls_w"].reshape(T, K5), ((0, 0), (0, KP - K5)))
    b_cls = params["cls_b"].reshape(T, 1)
    classes = cls_softmax_classes(p_cls, w_cls, b_cls, x_flat)     # [B, T, C, HW]
    cls_img = classes.reshape(B * T, C, H, W)

    # --- embedding_qk: Conv2d(C->hc, k=4, s=4), flatten (c, h, w) --------------
    Pqk = (H // 4) * (W // 4)
    p_qk = im2col(cls_img, 4, 4, 0).reshape(B, T, C * 16, Pqk)     # [B, T, 64, 64]
    w_qk = params["qk_w"].reshape(hc, C * 16)
    b_qk = params["qk_b"].reshape(hc, 1)
    e_qk = qk_embed(p_qk, w_qk, b_qk)                              # [B, T, hc, Pqk]
    x_qk = e_qk.reshape(B, T, hc * Pqk)                            # [B, T, hc*64]

    # --- fused q/k linear + attention + embedding_to_v + residual --------------
    p_v = im2col(cls_img, 5, 1, 2)                                 # [B*T, 100, HW]
    p_v = jnp.pad(p_v, ((0, 0), (0, KP - K5), (0, 0))).reshape(B, T, KP, HW)
    w_v = jnp.pad(params["v_w"].reshape(C, K5), ((0, 0), (0, KP - K5)))
    b_v = params["v_b"].reshape(C, 1)
    wqk = jnp.stack([params["wq"], params["wk"]], axis=0)          # [2, hc*64, I]

    out_flat = attn_v_residual(x_qk, wqk, p_v, w_v, b_v, x_flat)   # [B, C, HW]
    return out_flat.reshape(B, C, H, W)


# ----------------------------------------------------------------------------
# Pure-JAX reference (for validation)
# ----------------------------------------------------------------------------
def rab_reference(x, params, class_num, hidden_channels):
    B, C, H, W = x.shape
    T = class_num

    def conv(inp, w, b, stride, pad):
        y = jax.lax.conv_general_dilated(
            inp, w, (stride, stride), [(pad, pad), (pad, pad)],
            dimension_numbers=("NCHW", "OIHW", "NCHW"),
        )
        return y + b[None, :, None, None]

    logits = conv(x, params["cls_w"], params["cls_b"], 1, 2)
    label = jax.nn.softmax(logits, axis=1)                       # [B, T, H, W]
    classes = x[:, None] * label[:, :, None]                     # [B, T, C, H, W]
    cf = classes.reshape(B * T, C, H, W)

    eqk = conv(cf, params["qk_w"], params["qk_b"], 4, 0)         # [B*T, hc, 8, 8]
    x_qk = eqk.reshape(B * T, -1).reshape(B, T, -1)
    q = x_qk @ params["wq"]
    k = x_qk @ params["wk"]
    dot = jnp.einsum("bti,bsi->bts", q, k)
    attn = jax.nn.softmax(dot, axis=1)

    ev = conv(cf, params["v_w"], params["v_b"], 1, 2)            # [B*T, C, H, W]
    v = ev.reshape(B * T, -1).reshape(B, T, -1)
    res = jnp.einsum("bts,bsd->btd", attn, v).sum(axis=1)
    return x + res.reshape(B, C, H, W)


# ----------------------------------------------------------------------------
# Main
# ----------------------------------------------------------------------------
if __name__ == "__main__":
    # Shapes implied by the module: to_q expects hidden_channels*64 features,
    # so (width/4)^2 must equal 64 -> width = 32.
    B, C, width = 2, 4, 32
    class_num, inner_dim, hidden_channels = 3, 16, 8

    key = jax.random.PRNGKey(0)
    ks = jax.random.split(key, 9)
    params = {
        "cls_w": jax.random.normal(ks[0], (class_num, C, 5, 5), jnp.float32) * 0.1,
        "cls_b": jax.random.normal(ks[1], (class_num,), jnp.float32) * 0.1,
        "qk_w": jax.random.normal(ks[2], (hidden_channels, C, 4, 4), jnp.float32) * 0.1,
        "qk_b": jax.random.normal(ks[3], (hidden_channels,), jnp.float32) * 0.1,
        "v_w": jax.random.normal(ks[4], (C, C, 5, 5), jnp.float32) * 0.1,
        "v_b": jax.random.normal(ks[5], (C,), jnp.float32) * 0.1,
        "wq": jax.random.normal(ks[6], (hidden_channels * 64, inner_dim), jnp.float32) * 0.05,
        "wk": jax.random.normal(ks[7], (hidden_channels * 64, inner_dim), jnp.float32) * 0.05,
    }
    x = jax.random.normal(ks[8], (B, C, width, width), jnp.float32)

    fwd = jax.jit(
        functools.partial(
            rab_forward, class_num=class_num, hidden_channels=hidden_channels
        )
    )
    out = fwd(x, params)
    out = jax.block_until_ready(out)

    ref = rab_reference(x, params, class_num, hidden_channels)
    ref = jax.block_until_ready(ref)

    assert out.shape == (B, C, width, width)
    np.testing.assert_allclose(np.asarray(out), np.asarray(ref), rtol=2e-2, atol=2e-2)

    print("KERNEL_OK")
</pallas_src>

<mosaic_0001>
module attributes {stable_mosaic.version = 11 : i64} {
  func.func @_cls_softmax_classes_kernel(%arg0: i32, %arg1: memref<1x128x1024xf32, #tpu.memory_space<vmem>>, %arg2: memref<3x128xf32, #tpu.memory_space<vmem>>, %arg3: memref<3x1xf32, #tpu.memory_space<vmem>>, %arg4: memref<1x4x1024xf32, #tpu.memory_space<vmem>>, %arg5: memref<1x3x4x1024xf32, #tpu.memory_space<vmem>>) attributes {dimension_semantics = [#tpu.dimension_semantics<parallel>], iteration_bounds = array<i64: 2>, scalar_prefetch = 0 : i64, scratch_operands = 0 : i64, tpu.core_type = #tpu.core_type<tc>, window_params = [{transform_indices = @transform_0, window_bounds = array<i64: 1, 128, 1024>}, {pipeline_mode = #tpu.pipeline_mode<synchronous>, transform_indices = @transform_1, window_bounds = array<i64: 3, 128>}, {pipeline_mode = #tpu.pipeline_mode<synchronous>, transform_indices = @transform_2, window_bounds = array<i64: 3, 1>}, {transform_indices = @transform_3, window_bounds = array<i64: 1, 4, 1024>}, {transform_indices = @transform_4, window_bounds = array<i64: 1, 3, 4, 1024>}]} {
    %c0 = arith.constant 0 : index
    %c0_0 = arith.constant 0 : index
    %0 = vector.load %arg2[%c0, %c0_0] : memref<3x128xf32, #tpu.memory_space<vmem>>, vector<3x128xf32>
    %c0_1 = arith.constant 0 : index
    %c0_2 = arith.constant 0 : index
    %c0_3 = arith.constant 0 : index
    %1 = vector.load %arg1[%c0_1, %c0_2, %c0_3] : memref<1x128x1024xf32, #tpu.memory_space<vmem>>, vector<1x128x1024xf32>
    %2 = vector.shape_cast %1 : vector<1x128x1024xf32> to vector<128x1024xf32>
    %cst = arith.constant dense<0.000000e+00> : vector<3x1024xf32>
    %3 = tpu.matmul %0, %2, %cst {dimension_numbers = #tpu.dot_dimension_numbers<[1], [0], [0], [1], [0, 0, 1, 1], [], []>} : vector<3x128xf32>, vector<128x1024xf32>, vector<3x1024xf32> -> vector<3x1024xf32>
    %c0_4 = arith.constant 0 : index
    %c0_5 = arith.constant 0 : index
    %4 = vector.load %arg3[%c0_4, %c0_5] : memref<3x1xf32, #tpu.memory_space<vmem>>, vector<3x1xf32>
    %5 = vector.broadcast %4 : vector<3x1xf32> to vector<3x1024xf32>
    %6 = arith.addf %3, %5 : vector<3x1024xf32>
    %cst_6 = arith.constant dense<0xFF800000> : vector<1024xf32>
    %7 = vector.multi_reduction <maximumf>, %6, %cst_6 [0] : vector<3x1024xf32> to vector<1024xf32>
    %8 = vector.shape_cast %7 : vector<1024xf32> to vector<1x1024xf32>
    %9 = vector.broadcast %8 : vector<1x1024xf32> to vector<3x1024xf32>
    %10 = arith.subf %6, %9 : vector<3x1024xf32>
    %11 = math.exp %10 : vector<3x1024xf32>
    %cst_7 = arith.constant dense<0.000000e+00> : vector<1024xf32>
    %12 = vector.multi_reduction <add>, %11, %cst_7 [0] : vector<3x1024xf32> to vector<1024xf32>
    %13 = vector.shape_cast %12 : vector<1024xf32> to vector<1x1024xf32>
    %14 = vector.broadcast %13 : vector<1x1024xf32> to vector<3x1024xf32>
    %15 = arith.divf %11, %14 : vector<3x1024xf32>
    %c0_8 = arith.constant 0 : index
    %c0_9 = arith.constant 0 : index
    %c0_10 = arith.constant 0 : index
    %16 = vector.load %arg4[%c0_8, %c0_9, %c0_10] : memref<1x4x1024xf32, #tpu.memory_space<vmem>>, vector<1x4x1024xf32>
    %17 = vector.shape_cast %16 : vector<1x4x1024xf32> to vector<4x1024xf32>
    %18 = vector.extract_strided_slice %15 {offsets = [0, 0], sizes = [1, 1024], strides = [1, 1]} : vector<3x1024xf32> to vector<1x1024xf32>
    %19 = vector.broadcast %18 : vector<1x1024xf32> to vector<4x1024xf32>
    %20 = arith.mulf %17, %19 : vector<4x1024xf32>
    %c0_11 = arith.constant 0 : index
    %c0_12 = arith.constant 0 : index
    %c0_13 = arith.constant 0 : index
    %c0_14 = arith.constant 0 : index
    %21 = vector.load %arg5[%c0_11, %c0_12, %c0_13, %c0_14] : memref<1x3x4x1024xf32, #tpu.memory_space<vmem>>, vector<1x1x4x1024xf32>
    %22 = vector.shape_cast %21 : vector<1x1x4x1024xf32> to vector<4x1024xf32>
    %23 = vector.shape_cast %20 : vector<4x1024xf32> to vector<1x1x4x1024xf32>
    tpu.vector_store %arg5[%c0_11, %c0_12, %c0_13, %c0_14], %23 {strides = array<i32>} : memref<1x3x4x1024xf32, #tpu.memory_space<vmem>>, vector<1x1x4x1024xf32>,
    %24 = vector.extract_strided_slice %15 {offsets = [1, 0], sizes = [1, 1024], strides = [1, 1]} : vector<3x1024xf32> to vector<1x1024xf32>
    %25 = vector.broadcast %24 : vector<1x1024xf32> to vector<4x1024xf32>
    %26 = arith.mulf %17, %25 : vector<4x1024xf32>
    %c0_15 = arith.constant 0 : index
    %c1 = arith.constant 1 : index
    %c0_16 = arith.constant 0 : index
    %c0_17 = arith.constant 0 : index
    %27 = vector.load %arg5[%c0_15, %c1, %c0_16, %c0_17] : memref<1x3x4x1024xf32, #tpu.memory_space<vmem>>, vector<1x1x4x1024xf32>
    %28 = vector.shape_cast %27 : vector<1x1x4x1024xf32> to vector<4x1024xf32>
    %29 = vector.shape_cast %26 : vector<4x1024xf32> to vector<1x1x4x1024xf32>
    tpu.vector_store %arg5[%c0_15, %c1, %c0_16, %c0_17], %29 {strides = array<i32>} : memref<1x3x4x1024xf32, #tpu.memory_space<vmem>>, vector<1x1x4x1024xf32>,
    %30 = vector.extract_strided_slice %15 {offsets = [2, 0], sizes = [1, 1024], strides = [1, 1]} : vector<3x1024xf32> to vector<1x1024xf32>
    %31 = vector.broadcast %30 : vector<1x1024xf32> to vector<4x1024xf32>
    %32 = arith.mulf %17, %31 : vector<4x1024xf32>
    %c0_18 = arith.constant 0 : index
    %c2 = arith.constant 2 : index
    %c0_19 = arith.constant 0 : index
    %c0_20 = arith.constant 0 : index
    %33 = vector.load %arg5[%c0_18, %c2, %c0_19, %c0_20] : memref<1x3x4x1024xf32, #tpu.memory_space<vmem>>, vector<1x1x4x1024xf32>
    %34 = vector.shape_cast %33 : vector<1x1x4x1024xf32> to vector<4x1024xf32>
    %35 = vector.shape_cast %32 : vector<4x1024xf32> to vector<1x1x4x1024xf32>
    tpu.vector_store %arg5[%c0_18, %c2, %c0_19, %c0_20], %35 {strides = array<i32>} : memref<1x3x4x1024xf32, #tpu.memory_space<vmem>>, vector<1x1x4x1024xf32>,
    return
  }
  func.func @transform_0(%arg0: i32) -> (i32, i32, i32) {
    %c0_i32 = arith.constant 0 : i32
    %c0_i32_0 = arith.constant 0 : i32
    %c0_i32_1 = arith.constant 0 : i32
    return %arg0, %c0_i32, %c0_i32_0 : i32, i32, i32
  }
  func.func @transform_1(%arg0: i32) -> (i32, i32) {
    %c0_i32 = arith.constant 0 : i32
    %c0_i32_0 = arith.constant 0 : i32
    %c0_i32_1 = arith.constant 0 : i32
    return %c0_i32, %c0_i32_0 : i32, i32
  }
  func.func @transform_2(%arg0: i32) -> (i32, i32) {
    %c0_i32 = arith.constant 0 : i32
    %c0_i32_0 = arith.constant 0 : i32
    %c0_i32_1 = arith.constant 0 : i32
    return %c0_i32, %c0_i32_0 : i32, i32
  }
  func.func @transform_3(%arg0: i32) -> (i32, i32, i32) {
    %c0_i32 = arith.constant 0 : i32
    %c0_i32_0 = arith.constant 0 : i32
    %c0_i32_1 = arith.constant 0 : i32
    return %arg0, %c0_i32, %c0_i32_0 : i32, i32, i32
  }
  func.func @transform_4(%arg0: i32) -> (i32, i32, i32, i32) {
    %c0_i32 = arith.constant 0 : i32
    %c0_i32_0 = arith.constant 0 : i32
    %c0_i32_1 = arith.constant 0 : i32
    %c0_i32_2 = arith.constant 0 : i32
    return %arg0, %c0_i32, %c0_i32_0, %c0_i32_1 : i32, i32, i32, i32
  }
}

module attributes {stable_mosaic.version = 11 : i64} {
  func.func @_qk_embed_kernel(%arg0: i32, %arg1: memref<1x3x64x64xf32, #tpu.memory_space<vmem>>, %arg2: memref<8x64xf32, #tpu.memory_space<vmem>>, %arg3: memref<8x1xf32, #tpu.memory_space<vmem>>, %arg4: memref<1x3x8x64xf32, #tpu.memory_space<vmem>>) attributes {dimension_semantics = [#tpu.dimension_semantics<parallel>], iteration_bounds = array<i64: 2>, scalar_prefetch = 0 : i64, scratch_operands = 0 : i64, tpu.core_type = #tpu.core_type<tc>, window_params = [{transform_indices = @transform_0, window_bounds = array<i64: 1, 3, 64, 64>}, {pipeline_mode = #tpu.pipeline_mode<synchronous>, transform_indices = @transform_1, window_bounds = array<i64: 8, 64>}, {pipeline_mode = #tpu.pipeline_mode<synchronous>, transform_indices = @transform_2, window_bounds = array<i64: 8, 1>}, {transform_indices = @transform_3, window_bounds = array<i64: 1, 3, 8, 64>}]} {
    %c0 = arith.constant 0 : index
    %c0_0 = arith.constant 0 : index
    %0 = vector.load %arg2[%c0, %c0_0] : memref<8x64xf32, #tpu.memory_space<vmem>>, vector<8x64xf32>
    %c0_1 = arith.constant 0 : index
    %c0_2 = arith.constant 0 : index
    %1 = vector.load %arg3[%c0_1, %c0_2] : memref<8x1xf32, #tpu.memory_space<vmem>>, vector<8x1xf32>
    %c0_3 = arith.constant 0 : index
    %c0_4 = arith.constant 0 : index
    %c0_5 = arith.constant 0 : index
    %c0_6 = arith.constant 0 : index
    %2 = vector.load %arg1[%c0_3, %c0_4, %c0_5, %c0_6] : memref<1x3x64x64xf32, #tpu.memory_space<vmem>>, vector<1x1x64x64xf32>
    %3 = vector.shape_cast %2 : vector<1x1x64x64xf32> to vector<64x64xf32>
    %cst = arith.constant dense<0.000000e+00> : vector<8x64xf32>
    %4 = tpu.matmul %0, %3, %cst {dimension_numbers = #tpu.dot_dimension_numbers<[1], [0], [0], [1], [0, 0, 1, 1], [], []>} : vector<8x64xf32>, vector<64x64xf32>, vector<8x64xf32> -> vector<8x64xf32>
    %5 = vector.broadcast %1 : vector<8x1xf32> to vector<8x64xf32>
    %6 = arith.addf %4, %5 : vector<8x64xf32>
    %c0_7 = arith.constant 0 : index
    %c0_8 = arith.constant 0 : index
    %c0_9 = arith.constant 0 : index
    %c0_10 = arith.constant 0 : index
    %7 = vector.load %arg4[%c0_7, %c0_8, %c0_9, %c0_10] : memref<1x3x8x64xf32, #tpu.memory_space<vmem>>, vector<1x1x8x64xf32>
    %8 = vector.shape_cast %7 : vector<1x1x8x64xf32> to vector<8x64xf32>
    %9 = vector.shape_cast %6 : vector<8x64xf32> to vector<1x1x8x64xf32>
    tpu.vector_store %arg4[%c0_7, %c0_8, %c0_9, %c0_10], %9 {strides = array<i32>} : memref<1x3x8x64xf32, #tpu.memory_space<vmem>>, vector<1x1x8x64xf32>,
    %c0_11 = arith.constant 0 : index
    %c1 = arith.constant 1 : index
    %c0_12 = arith.constant 0 : index
    %c0_13 = arith.constant 0 : index
    %10 = vector.load %arg1[%c0_11, %c1, %c0_12, %c0_13] : memref<1x3x64x64xf32, #tpu.memory_space<vmem>>, vector<1x1x64x64xf32>
    %11 = vector.shape_cast %10 : vector<1x1x64x64xf32> to vector<64x64xf32>
    %cst_14 = arith.constant dense<0.000000e+00> : vector<8x64xf32>
    %12 = tpu.matmul %0, %11, %cst_14 {dimension_numbers = #tpu.dot_dimension_numbers<[1], [0], [0], [1], [0, 0, 1, 1], [], []>} : vector<8x64xf32>, vector<64x64xf32>, vector<8x64xf32> -> vector<8x64xf32>
    %13 = vector.broadcast %1 : vector<8x1xf32> to vector<8x64xf32>
    %14 = arith.addf %12, %13 : vector<8x64xf32>
    %c0_15 = arith.constant 0 : index
    %c1_16 = arith.constant 1 : index
    %c0_17 = arith.constant 0 : index
    %c0_18 = arith.constant 0 : index
    %15 = vector.load %arg4[%c0_15, %c1_16, %c0_17, %c0_18] : memref<1x3x8x64xf32, #tpu.memory_space<vmem>>, vector<1x1x8x64xf32>
    %16 = vector.shape_cast %15 : vector<1x1x8x64xf32> to vector<8x64xf32>
    %17 = vector.shape_cast %14 : vector<8x64xf32> to vector<1x1x8x64xf32>
    tpu.vector_store %arg4[%c0_15, %c1_16, %c0_17, %c0_18], %17 {strides = array<i32>} : memref<1x3x8x64xf32, #tpu.memory_space<vmem>>, vector<1x1x8x64xf32>,
    %c0_19 = arith.constant 0 : index
    %c2 = arith.constant 2 : index
    %c0_20 = arith.constant 0 : index
    %c0_21 = arith.constant 0 : index
    %18 = vector.load %arg1[%c0_19, %c2, %c0_20, %c0_21] : memref<1x3x64x64xf32, #tpu.memory_space<vmem>>, vector<1x1x64x64xf32>
    %19 = vector.shape_cast %18 : vector<1x1x64x64xf32> to vector<64x64xf32>
    %cst_22 = arith.constant dense<0.000000e+00> : vector<8x64xf32>
    %20 = tpu.matmul %0, %19, %cst_22 {dimension_numbers = #tpu.dot_dimension_numbers<[1], [0], [0], [1], [0, 0, 1, 1], [], []>} : vector<8x64xf32>, vector<64x64xf32>, vector<8x64xf32> -> vector<8x64xf32>
    %21 = vector.broadcast %1 : vector<8x1xf32> to vector<8x64xf32>
    %22 = arith.addf %20, %21 : vector<8x64xf32>
    %c0_23 = arith.constant 0 : index
    %c2_24 = arith.constant 2 : index
    %c0_25 = arith.constant 0 : index
    %c0_26 = arith.constant 0 : index
    %23 = vector.load %arg4[%c0_23, %c2_24, %c0_25, %c0_26] : memref<1x3x8x64xf32, #tpu.memory_space<vmem>>, vector<1x1x8x64xf32>
    %24 = vector.shape_cast %23 : vector<1x1x8x64xf32> to vector<8x64xf32>
    %25 = vector.shape_cast %22 : vector<8x64xf32> to vector<1x1x8x64xf32>
    tpu.vector_store %arg4[%c0_23, %c2_24, %c0_25, %c0_26], %25 {strides = array<i32>} : memref<1x3x8x64xf32, #tpu.memory_space<vmem>>, vector<1x1x8x64xf32>,
    return
  }
  func.func @transform_0(%arg0: i32) -> (i32, i32, i32, i32) {
    %c0_i32 = arith.constant 0 : i32
    %c0_i32_0 = arith.constant 0 : i32
    %c0_i32_1 = arith.constant 0 : i32
    %c0_i32_2 = arith.constant 0 : i32
    return %arg0, %c0_i32, %c0_i32_0, %c0_i32_1 : i32, i32, i32, i32
  }
  func.func @transform_1(%arg0: i32) -> (i32, i32) {
    %c0_i32 = arith.constant 0 : i32
    %c0_i32_0 = arith.constant 0 : i32
    %c0_i32_1 = arith.constant 0 : i32
    return %c0_i32, %c0_i32_0 : i32, i32
  }
  func.func @transform_2(%arg0: i32) -> (i32, i32) {
    %c0_i32 = arith.constant 0 : i32
    %c0_i32_0 = arith.constant 0 : i32
    %c0_i32_1 = arith.constant 0 : i32
    return %c0_i32, %c0_i32_0 : i32, i32
  }
  func.func @transform_3(%arg0: i32) -> (i32, i32, i32, i32) {
    %c0_i32 = arith.constant 0 : i32
    %c0_i32_0 = arith.constant 0 : i32
    %c0_i32_1 = arith.constant 0 : i32
    %c0_i32_2 = arith.constant 0 : i32
    return %arg0, %c0_i32, %c0_i32_0, %c0_i32_1 : i32, i32, i32, i32
  }
}

module attributes {stable_mosaic.version = 11 : i64} {
  func.func @_attn_v_residual_kernel(%arg0: i32, %arg1: memref<1x3x512xf32, #tpu.memory_space<vmem>>, %arg2: memref<2x512x16xf32, #tpu.memory_space<vmem>>, %arg3: memref<1x3x128x1024xf32, #tpu.memory_space<vmem>>, %arg4: memref<4x128xf32, #tpu.memory_space<vmem>>, %arg5: memref<4x1xf32, #tpu.memory_space<vmem>>, %arg6: memref<1x4x1024xf32, #tpu.memory_space<vmem>>, %arg7: memref<1x4x1024xf32, #tpu.memory_space<vmem>>) attributes {dimension_semantics = [#tpu.dimension_semantics<parallel>], iteration_bounds = array<i64: 2>, scalar_prefetch = 0 : i64, scratch_operands = 0 : i64, tpu.core_type = #tpu.core_type<tc>, window_params = [{transform_indices = @transform_0, window_bounds = array<i64: 1, 3, 512>}, {pipeline_mode = #tpu.pipeline_mode<synchronous>, transform_indices = @transform_1, window_bounds = array<i64: 2, 512, 16>}, {transform_indices = @transform_2, window_bounds = array<i64: 1, 3, 128, 1024>}, {pipeline_mode = #tpu.pipeline_mode<synchronous>, transform_indices = @transform_3, window_bounds = array<i64: 4, 128>}, {pipeline_mode = #tpu.pipeline_mode<synchronous>, transform_indices = @transform_4, window_bounds = array<i64: 4, 1>}, {transform_indices = @transform_5, window_bounds = array<i64: 1, 4, 1024>}, {transform_indices = @transform_6, window_bounds = array<i64: 1, 4, 1024>}]} {
    %c0 = arith.constant 0 : index
    %c0_0 = arith.constant 0 : index
    %c0_1 = arith.constant 0 : index
    %0 = vector.load %arg1[%c0, %c0_0, %c0_1] : memref<1x3x512xf32, #tpu.memory_space<vmem>>, vector<1x3x512xf32>
    %1 = vector.shape_cast %0 : vector<1x3x512xf32> to vector<3x512xf32>
    %c0_2 = arith.constant 0 : index
    %c0_3 = arith.constant 0 : index
    %c0_4 = arith.constant 0 : index
    %2 = vector.load %arg2[%c0_2, %c0_3, %c0_4] : memref<2x512x16xf32, #tpu.memory_space<vmem>>, vector<1x512x16xf32>
    %3 = vector.shape_cast %2 : vector<1x512x16xf32> to vector<512x16xf32>
    %cst = arith.constant dense<0.000000e+00> : vector<3x16xf32>
    %4 = tpu.matmul %1, %3, %cst {dimension_numbers = #tpu.dot_dimension_numbers<[1], [0], [0], [1], [0, 0, 1, 1], [], []>} : vector<3x512xf32>, vector<512x16xf32>, vector<3x16xf32> -> vector<3x16xf32>
    %c1 = arith.constant 1 : index
    %c0_5 = arith.constant 0 : index
    %c0_6 = arith.constant 0 : index
    %5 = vector.load %arg2[%c1, %c0_5, %c0_6] : memref<2x512x16xf32, #tpu.memory_space<vmem>>, vector<1x512x16xf32>
    %6 = vector.shape_cast %5 : vector<1x512x16xf32> to vector<512x16xf32>
    %cst_7 = arith.constant dense<0.000000e+00> : vector<3x16xf32>
    %7 = tpu.matmul %1, %6, %cst_7 {dimension_numbers = #tpu.dot_dimension_numbers<[1], [0], [0], [1], [0, 0, 1, 1], [], []>} : vector<3x512xf32>, vector<512x16xf32>, vector<3x16xf32> -> vector<3x16xf32>
    %cst_8 = arith.constant dense<0.000000e+00> : vector<3x3xf32>
    %8 = tpu.matmul %4, %7, %cst_8 {dimension_numbers = #tpu.dot_dimension_numbers<[1], [1], [0], [0], [0, 0, 1, 0], [], []>} : vector<3x16xf32>, vector<3x16xf32>, vector<3x3xf32> -> vector<3x3xf32>
    %cst_9 = arith.constant dense<0xFF800000> : vector<3xf32>
    %9 = vector.multi_reduction <maximumf>, %8, %cst_9 [0] : vector<3x3xf32> to vector<3xf32>
    %10 = vector.shape_cast %9 : vector<3xf32> to vector<1x3xf32>
    %11 = vector.broadcast %10 : vector<1x3xf32> to vector<3x3xf32>
    %12 = arith.subf %8, %11 : vector<3x3xf32>
    %13 = math.exp %12 : vector<3x3xf32>
    %cst_10 = arith.constant dense<0.000000e+00> : vector<3xf32>
    %14 = vector.multi_reduction <add>, %13, %cst_10 [0] : vector<3x3xf32> to vector<3xf32>
    %15 = vector.shape_cast %14 : vector<3xf32> to vector<1x3xf32>
    %16 = vector.broadcast %15 : vector<1x3xf32> to vector<3x3xf32>
    %17 = arith.divf %13, %16 : vector<3x3xf32>
    %cst_11 = arith.constant dense<0.000000e+00> : vector<3xf32>
    %18 = vector.multi_reduction <add>, %17, %cst_11 [0] : vector<3x3xf32> to vector<3xf32>
    %19 = vector.shape_cast %18 : vector<3xf32> to vector<1x3xf32>
    %20 = vector.shape_cast %19 : vector<1x3xf32> to vector<1x3xf32>
    %21 = vector.broadcast %20 : vector<1x3xf32> to vector<4x3xf32>
    %c0_12 = arith.constant 0 : index
    %c0_13 = arith.constant 0 : index
    %22 = vector.load %arg4[%c0_12, %c0_13] : memref<4x128xf32, #tpu.memory_space<vmem>>, vector<4x128xf32>
    %c0_14 = arith.constant 0 : index
    %c0_15 = arith.constant 0 : index
    %23 = vector.load %arg5[%c0_14, %c0_15] : memref<4x1xf32, #tpu.memory_space<vmem>>, vector<4x1xf32>
    %c0_16 = arith.constant 0 : index
    %c0_17 = arith.constant 0 : index
    %c0_18 = arith.constant 0 : index
    %24 = vector.load %arg6[%c0_16, %c0_17, %c0_18] : memref<1x4x1024xf32, #tpu.memory_space<vmem>>, vector<1x4x1024xf32>
    %25 = vector.shape_cast %24 : vector<1x4x1024xf32> to vector<4x1024xf32>
    %c0_19 = arith.constant 0 : index
    %c0_20 = arith.constant 0 : index
    %c0_21 = arith.constant 0 : index
    %c0_22 = arith.constant 0 : index
    %26 = vector.load %arg3[%c0_19, %c0_20, %c0_21, %c0_22] : memref<1x3x128x1024xf32, #tpu.memory_space<vmem>>, vector<1x1x128x1024xf32>
    %27 = vector.shape_cast %26 : vector<1x1x128x1024xf32> to vector<128x1024xf32>
    %cst_23 = arith.constant dense<0.000000e+00> : vector<4x1024xf32>
    %28 = tpu.matmul %22, %27, %cst_23 {dimension_numbers = #tpu.dot_dimension_numbers<[1], [0], [0], [1], [0, 0, 1, 1], [], []>} : vector<4x128xf32>, vector<128x1024xf32>, vector<4x1024xf32> -> vector<4x1024xf32>
    %29 = vector.broadcast %23 : vector<4x1xf32> to vector<4x1024xf32>
    %30 = arith.addf %28, %29 : vector<4x1024xf32>
    %31 = vector.extract_strided_slice %21 {offsets = [0, 0], sizes = [4, 1], strides = [1, 1]} : vector<4x3xf32> to vector<4x1xf32>
    %32 = vector.broadcast %31 : vector<4x1xf32> to vector<4x1024xf32>
    %33 = arith.mulf %30, %32 : vector<4x1024xf32>
    %34 = arith.addf %25, %33 : vector<4x1024xf32>
    %c0_24 = arith.constant 0 : index
    %c1_25 = arith.constant 1 : index
    %c0_26 = arith.constant 0 : index
    %c0_27 = arith.constant 0 : index
    %35 = vector.load %arg3[%c0_24, %c1_25, %c0_26, %c0_27] : memref<1x3x128x1024xf32, #tpu.memory_space<vmem>>, vector<1x1x128x1024xf32>
    %36 = vector.shape_cast %35 : vector<1x1x128x1024xf32> to vector<128x1024xf32>
    %cst_28 = arith.constant dense<0.000000e+00> : vector<4x1024xf32>
    %37 = tpu.matmul %22, %36, %cst_28 {dimension_numbers = #tpu.dot_dimension_numbers<[1], [0], [0], [1], [0, 0, 1, 1], [], []>} : vector<4x128xf32>, vector<128x1024xf32>, vector<4x1024xf32> -> vector<4x1024xf32>
    %38 = vector.broadcast %23 : vector<4x1xf32> to vector<4x1024xf32>
    %39 = arith.addf %37, %38 : vector<4x1024xf32>
    %40 = vector.extract_strided_slice %21 {offsets = [0, 1], sizes = [4, 1], strides = [1, 1]} : vector<4x3xf32> to vector<4x1xf32>
    %41 = vector.broadcast %40 : vector<4x1xf32> to vector<4x1024xf32>
    %42 = arith.mulf %39, %41 : vector<4x1024xf32>
    %43 = arith.addf %34, %42 : vector<4x1024xf32>
    %c0_29 = arith.constant 0 : index
    %c2 = arith.constant 2 : index
    %c0_30 = arith.constant 0 : index
    %c0_31 = arith.constant 0 : index
    %44 = vector.load %arg3[%c0_29, %c2, %c0_30, %c0_31] : memref<1x3x128x1024xf32, #tpu.memory_space<vmem>>, vector<1x1x128x1024xf32>
    %45 = vector.shape_cast %44 : vector<1x1x128x1024xf32> to vector<128x1024xf32>
    %cst_32 = arith.constant dense<0.000000e+00> : vector<4x1024xf32>
    %46 = tpu.matmul %22, %45, %cst_32 {dimension_numbers = #tpu.dot_dimension_numbers<[1], [0], [0], [1], [0, 0, 1, 1], [], []>} : vector<4x128xf32>, vector<128x1024xf32>, vector<4x1024xf32> -> vector<4x1024xf32>
    %47 = vector.broadcast %23 : vector<4x1xf32> to vector<4x1024xf32>
    %48 = arith.addf %46, %47 : vector<4x1024xf32>
    %49 = vector.extract_strided_slice %21 {offsets = [0, 2], sizes = [4, 1], strides = [1, 1]} : vector<4x3xf32> to vector<4x1xf32>
    %50 = vector.broadcast %49 : vector<4x1xf32> to vector<4x1024xf32>
    %51 = arith.mulf %48, %50 : vector<4x1024xf32>
    %52 = arith.addf %43, %51 : vector<4x1024xf32>
    %c0_33 = arith.constant 0 : index
    %c0_34 = arith.constant 0 : index
    %c0_35 = arith.constant 0 : index
    %53 = vector.load %arg7[%c0_33, %c0_34, %c0_35] : memref<1x4x1024xf32, #tpu.memory_space<vmem>>, vector<1x4x1024xf32>
    %54 = vector.shape_cast %53 : vector<1x4x1024xf32> to vector<4x1024xf32>
    %55 = vector.shape_cast %52 : vector<4x1024xf32> to vector<1x4x1024xf32>
    tpu.vector_store %arg7[%c0_33, %c0_34, %c0_35], %55 {strides = array<i32>} : memref<1x4x1024xf32, #tpu.memory_space<vmem>>, vector<1x4x1024xf32>,
    return
  }
  func.func @transform_0(%arg0: i32) -> (i32, i32, i32) {
    %c0_i32 = arith.constant 0 : i32
    %c0_i32_0 = arith.constant 0 : i32
    %c0_i32_1 = arith.constant 0 : i32
    return %arg0, %c0_i32, %c0_i32_0 : i32, i32, i32
  }
  func.func @transform_1(%arg0: i32) -> (i32, i32, i32) {
    %c0_i32 = arith.constant 0 : i32
    %c0_i32_0 = arith.constant 0 : i32
    %c0_i32_1 = arith.constant 0 : i32
    %c0_i32_2 = arith.constant 0 : i32
    return %c0_i32, %c0_i32_0, %c0_i32_1 : i32, i32, i32
  }
  func.func @transform_2(%arg0: i32) -> (i32, i32, i32, i32) {
    %c0_i32 = arith.constant 0 : i32
    %c0_i32_0 = arith.constant 0 : i32
    %c0_i32_1 = arith.constant 0 : i32
    %c0_i32_2 = arith.constant 0 : i32
    return %arg0, %c0_i32, %c0_i32_0, %c0_i32_1 : i32, i32, i32, i32
  }
  func.func @transform_3(%arg0: i32) -> (i32, i32) {
    %c0_i32 = arith.constant 0 : i32
    %c0_i32_0 = arith.constant 0 : i32
    %c0_i32_1 = arith.constant 0 : i32
    return %c0_i32, %c0_i32_0 : i32, i32
  }
  func.func @transform_4(%arg0: i32) -> (i32, i32) {
    %c0_i32 = arith.constant 0 : i32
    %c0_i32_0 = arith.constant 0 : i32
    %c0_i32_1 = arith.constant 0 : i32
    return %c0_i32, %c0_i32_0 : i32, i32
  }
  func.func @transform_5(%arg0: i32) -> (i32, i32, i32) {
    %c0_i32 = arith.constant 0 : i32
    %c0_i32_0 = arith.constant 0 : i32
    %c0_i32_1 = arith.constant 0 : i32
    return %arg0, %c0_i32, %c0_i32_0 : i32, i32, i32
  }
  func.func @transform_6(%arg0: i32) -> (i32, i32, i32) {
    %c0_i32 = arith.constant 0 : i32
    %c0_i32_0 = arith.constant 0 : i32
    %c0_i32_1 = arith.constant 0 : i32
    return %arg0, %c0_i32, %c0_i32_0 : i32, i32, i32
  }
}

</mosaic_0001>

<bundles_post_ra>
// kernel: rab_forward.3
= control target key start
LH: loop header
LB: loop body
LE: loop exit
PB: predicated region body
PF: predicated region fallthrough
CT: control target
= control target key end

     0   :  { %s1051_s15 = smov 0   ;;  %s1401_s0 = inlined_call_operand.vmem [shape: f32[2,128,1024], index: 0, kind: input, shape index: {}]   ;;  %s1402_s1 = inlined_call_operand.vmem [shape: f32[3,128], index: 1, kind: input, shape index: {}]   ;;  %s1403_s2 = inlined_call_operand.vmem [shape: f32[3,1], index: 2, kind: input, shape index: {}]   ;;  %s1404_s3 = inlined_call_operand.vmem [shape: f32[2,4,1024], index: 3, kind: input, shape index: {}]   ;;  %s1405_s4 = inlined_call_operand.vmem [shape: f32[2,3,4,1024], index: 4, kind: output, shape index: {}]  }
   0x1 LB: > { %s952_s16 = sadd.s32 4294967295, %s1023_s15   ;;  %p956_p0 = scmp.ge.s32.totalorder %s1023_s15, 1  ;;  %s1023_s15 = sphi %s1051_s15, %s14_s15  }
   0x2   : > { %p172_p1 = scmp.lt.s32.totalorder %s1023_s15, 3 }
   0x4   : > { %p173_p2 = pnand %p956_p0, %p172_p1 }
   0x5   : > { %p203_p3 = scmp.lt.s32.totalorder (!%p173_p2), %s952_s16, 1 }
   0x6   : > { %176 = sbr.rel (%p173_p2) target bundleno = 302 (0x12e), region = 36 }
   0xb   : > { %s1417_s16 = smov (!%p203_p3, %s952_s16), 1  ;;  %vm513_vm0 = vcmask 1042432   ;;  %vm794_vm9 = vcmask 1043456  }
   0xc   : > { %s972_s17 = sshll.u32 %s1417_s16, 10  ;;  %s973_s25 = sshll.u32 %s1417_s16, 5 }
   0xd   : > { %s1065_s20 = scalar_lea.vmem %s1401_s0, %s972_s17  ;;  %s1323_s28 = scalar_lea.vmem %s1404_s3, %s973_s25 }
   0xe   : > { %v339_v0 = vld [vmem:[%s1065_s20 + $0x3c0] sm:$0xff]  ;;  %v340_v1 = vld [vmem:[%s1065_s20 + $0x3c8] sm:$0xff]  ;;  %v341_v2 = vld [vmem:[%s1065_s20 + $0x3d0] sm:$0xff]  ;;  %s974_s29 = smul.u32 96, %s1417_s16 }
   0xf   : > { %353 = vmatpush.msra.mxu0 %v339_v0  ;;  %373 = vmatpush.msra.mxu1 %v340_v1  ;;  %v342_v3 = vld [vmem:[%s1065_s20 + $0x3d8] sm:$0xff]  ;;  %v331_v4 = vld [vmem:[%s1065_s20 + $0x380] sm:$0xff]  ;;  %v332_v5 = vld [vmem:[%s1065_s20 + $0x388] sm:$0xff] }
  0x10   : > { %393 = vmatpush.msra.mxu2 %v341_v2  ;;  %413 = vmatpush.msra.mxu3 %v342_v3  ;;  %v333_v6 = vld [vmem:[%s1065_s20 + $0x390] sm:$0xff]  ;;  %v334_v7 = vld [vmem:[%s1065_s20 + $0x398] sm:$0xff]  ;;  %v323_v8 = vld [vmem:[%s1065_s20 + $0x340] sm:$0xff]  ;;  %s1347_s6 = scalar_lea.vmem %s1405_s4, %s974_s29 }
  0x11   : > { %354 = vmatpush.msra.mxu0 %v331_v4  ;;  %374 = vmatpush.msra.mxu1 %v332_v5  ;;  %v324_v9 = vld [vmem:[%s1065_s20 + $0x348] sm:$0xff]  ;;  %v325_v10 = vld [vmem:[%s1065_s20 + $0x350] sm:$0xff]  ;;  %v326_v11 = vld [vmem:[%s1065_s20 + $0x358] sm:$0xff] }
  0x12   : > { %394 = vmatpush.msra.mxu2 %v333_v6  ;;  %414 = vmatpush.msra.mxu3 %v334_v7  ;;  %v315_v12 = vld [vmem:[%s1065_s20 + $0x300] sm:$0xff]  ;;  %v316_v13 = vld [vmem:[%s1065_s20 + $0x308] sm:$0xff]  ;;  %v317_v14 = vld [vmem:[%s1065_s20 + $0x310] sm:$0xff] }
  0x13   : > { %355 = vmatpush.msra.mxu0 %v323_v8  ;;  %375 = vmatpush.msra.mxu1 %v324_v9  ;;  %v318_v15 = vld [vmem:[%s1065_s20 + $0x318] sm:$0xff]  ;;  %v307_v16 = vld [vmem:[%s1065_s20 + $0x2c0] sm:$0xff]  ;;  %v308_v17 = vld [vmem:[%s1065_s20 + $0x2c8] sm:$0xff] }
  0x14   : > { %395 = vmatpush.msra.mxu2 %v325_v10  ;;  %415 = vmatpush.msra.mxu3 %v326_v11  ;;  %v309_v18 = vld [vmem:[%s1065_s20 + $0x2d0] sm:$0xff]  ;;  %v310_v19 = vld [vmem:[%s1065_s20 + $0x2d8] sm:$0xff]  ;;  %v299_v20 = vld [vmem:[%s1065_s20 + $0x280] sm:$0xff] }
  0x15   : > { %356 = vmatpush.msra.mxu0 %v315_v12  ;;  %376 = vmatpush.msra.mxu1 %v316_v13  ;;  %v300_v21 = vld [vmem:[%s1065_s20 + $0x288] sm:$0xff]  ;;  %v301_v22 = vld [vmem:[%s1065_s20 + $0x290] sm:$0xff]  ;;  %v302_v23 = vld [vmem:[%s1065_s20 + $0x298] sm:$0xff] }
  0x16   : > { %396 = vmatpush.msra.mxu2 %v317_v14  ;;  %416 = vmatpush.msra.mxu3 %v318_v15  ;;  %v291_v24 = vld [vmem:[%s1065_s20 + $0x240] sm:$0xff]  ;;  %v292_v25 = vld [vmem:[%s1065_s20 + $0x248] sm:$0xff]  ;;  %v293_v26 = vld [vmem:[%s1065_s20 + $0x250] sm:$0xff] }
  0x17   : > { %357 = vmatpush.msra.mxu0 %v307_v16  ;;  %377 = vmatpush.msra.mxu1 %v308_v17  ;;  %v294_v27 = vld [vmem:[%s1065_s20 + $0x258] sm:$0xff]  ;;  %v283_v28 = vld [vmem:[%s1065_s20 + $0x200] sm:$0xff]  ;;  %v284_v29 = vld [vmem:[%s1065_s20 + $0x208] sm:$0xff] }
  0x18   : > { %397 = vmatpush.msra.mxu2 %v309_v18  ;;  %417 = vmatpush.msra.mxu3 %v310_v19  ;;  %v285_v30 = vld [vmem:[%s1065_s20 + $0x210] sm:$0xff]  ;;  %v286_v31 = vld [vmem:[%s1065_s20 + $0x218] sm:$0xff]  ;;  %v275_v32 = vld [vmem:[%s1065_s20 + $0x1c0] sm:$0xff] }
  0x19   : > { %358 = vmatpush.msra.mxu0 %v299_v20  ;;  %378 = vmatpush.msra.mxu1 %v300_v21  ;;  %v276_v33 = vld [vmem:[%s1065_s20 + $0x1c8] sm:$0xff]  ;;  %v277_v34 = vld [vmem:[%s1065_s20 + $0x1d0] sm:$0xff]  ;;  %v278_v35 = vld [vmem:[%s1065_s20 + $0x1d8] sm:$0xff] }
  0x1a   : > { %398 = vmatpush.msra.mxu2 %v301_v22  ;;  %418 = vmatpush.msra.mxu3 %v302_v23  ;;  %v267_v36 = vld [vmem:[%s1065_s20 + $0x180] sm:$0xff]  ;;  %v268_v37 = vld [vmem:[%s1065_s20 + $0x188] sm:$0xff]  ;;  %v269_v38 = vld [vmem:[%s1065_s20 + $0x190] sm:$0xff] }
  0x1b   : > { %359 = vmatpush.msra.mxu0 %v291_v24  ;;  %379 = vmatpush.msra.mxu1 %v292_v25  ;;  %v270_v39 = vld [vmem:[%s1065_s20 + $0x198] sm:$0xff]  ;;  %v259_v40 = vld [vmem:[%s1065_s20 + $0x140] sm:$0xff]  ;;  %v260_v41 = vld [vmem:[%s1065_s20 + $0x148] sm:$0xff] }
  0x1c   : > { %399 = vmatpush.msra.mxu2 %v293_v26  ;;  %419 = vmatpush.msra.mxu3 %v294_v27  ;;  %v261_v42 = vld [vmem:[%s1065_s20 + $0x150] sm:$0xff]  ;;  %v262_v43 = vld [vmem:[%s1065_s20 + $0x158] sm:$0xff]  ;;  %v251_v44 = vld [vmem:[%s1065_s20 + $0x100] sm:$0xff]  ;;  %v1025_v26 = vmov 0  }
  0x1d   : > { %360 = vmatpush.msra.mxu0 %v283_v28  ;;  %380 = vmatpush.msra.mxu1 %v284_v29  ;;  %v252_v45 = vld [vmem:[%s1065_s20 + $0x108] sm:$0xff]  ;;  %v253_v46 = vld [vmem:[%s1065_s20 + $0x110] sm:$0xff]  ;;  %v254_v47 = vld [vmem:[%s1065_s20 + $0x118] sm:$0xff] }
  0x1e   : > { %400 = vmatpush.msra.mxu2 %v285_v30  ;;  %420 = vmatpush.msra.mxu3 %v286_v31  ;;  %v243_v48 = vld [vmem:[%s1065_s20 + $0xc0] sm:$0xff]  ;;  %v244_v49 = vld [vmem:[%s1065_s20 + $0xc8] sm:$0xff]  ;;  %v245_v50 = vld [vmem:[%s1065_s20 + $0xd0] sm:$0xff] }
  0x1f   : > { %361 = vmatpush.msra.mxu0 %v275_v32  ;;  %381 = vmatpush.msra.mxu1 %v276_v33  ;;  %v246_v51 = vld [vmem:[%s1065_s20 + $0xd8] sm:$0xff]  ;;  %v235_v52 = vld [vmem:[%s1065_s20 + $0x80] sm:$0xff]  ;;  %v236_v53 = vld [vmem:[%s1065_s20 + $0x88] sm:$0xff] }
  0x20   : > { %401 = vmatpush.msra.mxu2 %v277_v34  ;;  %421 = vmatpush.msra.mxu3 %v278_v35  ;;  %v237_v54 = vld [vmem:[%s1065_s20 + $0x90] sm:$0xff]  ;;  %v238_v55 = vld [vmem:[%s1065_s20 + $0x98] sm:$0xff]  ;;  %v227_v56 = vld [vmem:[%s1065_s20 + $0x40] sm:$0xff] }
  0x21   : > { %362 = vmatpush.msra.mxu0 %v267_v36  ;;  %382 = vmatpush.msra.mxu1 %v268_v37  ;;  %v228_v57 = vld [vmem:[%s1065_s20 + $0x48] sm:$0xff]  ;;  %v229_v58 = vld [vmem:[%s1065_s20 + $0x50] sm:$0xff]  ;;  %v230_v59 = vld [vmem:[%s1065_s20 + $0x58] sm:$0xff] }
  0x22   : > { %402 = vmatpush.msra.mxu2 %v269_v38  ;;  %422 = vmatpush.msra.mxu3 %v270_v39  ;;  %v219_v60 = vld [vmem:[%s1065_s20] sm:$0xff]  ;;  %v220_v61 = vld [vmem:[%s1065_s20 + $0x8] sm:$0xff]  ;;  %v221_v62 = vld [vmem:[%s1065_s20 + $0x10] sm:$0xff] }
  0x23   : > { %363 = vmatpush.msra.mxu0 %v259_v40  ;;  %383 = vmatpush.msra.mxu1 %v260_v41  ;;  %v222_v63 = vld [vmem:[%s1065_s20 + $0x18] sm:$0xff]  ;;  %v1134_v0 = vld [vmem:[%s1402_s1] sm:$0x7]  ;;  %v344_v2 = vld [vmem:[%s1065_s20 + $0x3e8] sm:$0xff] }
  0x24   : > { %403 = vmatpush.msra.mxu2 %v261_v42  ;;  %423 = vmatpush.msra.mxu3 %v262_v43  ;;  %v343_v1 = vld [vmem:[%s1065_s20 + $0x3e0] sm:$0xff]  ;;  %v345_v3 = vld [vmem:[%s1065_s20 + $0x3f0] sm:$0xff]  ;;  %v346_v4 = vld [vmem:[%s1065_s20 + $0x3f8] sm:$0xff] }
  0x25   : > { %364 = vmatpush.msra.mxu0 %v251_v44  ;;  %384 = vmatpush.msra.mxu1 %v252_v45  ;;  %v335_v5 = vld [vmem:[%s1065_s20 + $0x3a0] sm:$0xff]  ;;  %v336_v6 = vld [vmem:[%s1065_s20 + $0x3a8] sm:$0xff]  ;;  %v337_v7 = vld [vmem:[%s1065_s20 + $0x3b0] sm:$0xff] }
  0x26   : > { %404 = vmatpush.msra.mxu2 %v253_v46  ;;  %424 = vmatpush.msra.mxu3 %v254_v47  ;;  %v338_v8 = vld [vmem:[%s1065_s20 + $0x3b8] sm:$0xff]  ;;  %v327_v9 = vld [vmem:[%s1065_s20 + $0x360] sm:$0xff]  ;;  %v328_v10 = vld [vmem:[%s1065_s20 + $0x368] sm:$0xff] }
  0x27   : > { %365 = vmatpush.msra.mxu0 %v243_v48  ;;  %385 = vmatpush.msra.mxu1 %v244_v49  ;;  %v329_v11 = vld [vmem:[%s1065_s20 + $0x370] sm:$0xff]  ;;  %v330_v12 = vld [vmem:[%s1065_s20 + $0x378] sm:$0xff]  ;;  %v319_v13 = vld [vmem:[%s1065_s20 + $0x320] sm:$0xff] }
  0x28   : > { %405 = vmatpush.msra.mxu2 %v245_v50  ;;  %425 = vmatpush.msra.mxu3 %v246_v51  ;;  %v320_v14 = vld [vmem:[%s1065_s20 + $0x328] sm:$0xff]  ;;  %v321_v15 = vld [vmem:[%s1065_s20 + $0x330] sm:$0xff]  ;;  %v322_v16 = vld [vmem:[%s1065_s20 + $0x338] sm:$0xff] }
  0x29   : > { %366 = vmatpush.msra.mxu0 %v235_v52  ;;  %386 = vmatpush.msra.mxu1 %v236_v53  ;;  %v311_v17 = vld [vmem:[%s1065_s20 + $0x2e0] sm:$0xff]  ;;  %v312_v18 = vld [vmem:[%s1065_s20 + $0x2e8] sm:$0xff]  ;;  %v313_v19 = vld [vmem:[%s1065_s20 + $0x2f0] sm:$0xff] }
  0x2a   : > { %406 = vmatpush.msra.mxu2 %v237_v54  ;;  %426 = vmatpush.msra.mxu3 %v238_v55  ;;  %v314_v20 = vld [vmem:[%s1065_s20 + $0x2f8] sm:$0xff]  ;;  %v303_v21 = vld [vmem:[%s1065_s20 + $0x2a0] sm:$0xff]  ;;  %v304_v22 = vld [vmem:[%s1065_s20 + $0x2a8] sm:$0xff] }
  0x2b   : > { %367 = vmatpush.msra.mxu0 %v227_v56  ;;  %387 = vmatpush.msra.mxu1 %v228_v57  ;;  %v305_v23 = vld [vmem:[%s1065_s20 + $0x2b0] sm:$0xff]  ;;  %v306_v24 = vld [vmem:[%s1065_s20 + $0x2b8] sm:$0xff]  ;;  %v347_v25 = vld [vmem:[%s1403_s2] sm:$0x7] }
  0x2c   : > { %407 = vmatpush.msra.mxu2 %v229_v58  ;;  %427 = vmatpush.msra.mxu3 %v230_v59  ;;  %v295_v27 = vld [vmem:[%s1065_s20 + $0x260] sm:$0xff]  ;;  %v296_v28 = vld [vmem:[%s1065_s20 + $0x268] sm:$0xff]  ;;  %v297_v29 = vld [vmem:[%s1065_s20 + $0x270] sm:$0xff] }
  0x2d   : > { %368 = vmatpush.msra.mxu0 %v219_v60  ;;  %388 = vmatpush.msra.mxu1 %v220_v61  ;;  %v298_v30 = vld [vmem:[%s1065_s20 + $0x278] sm:$0xff]  ;;  %v287_v31 = vld [vmem:[%s1065_s20 + $0x220] sm:$0xff]  ;;  %v288_v32 = vld [vmem:[%s1065_s20 + $0x228] sm:$0xff] }
  0x2e   : > { %408 = vmatpush.msra.mxu2 %v221_v62  ;;  %428 = vmatpush.msra.mxu3 %v222_v63  ;;  %v289_v33 = vld [vmem:[%s1065_s20 + $0x230] sm:$0xff]  ;;  %v290_v34 = vld [vmem:[%s1065_s20 + $0x238] sm:$0xff]  ;;  %v279_v35 = vld [vmem:[%s1065_s20 + $0x1e0] sm:$0xff] }
  0x2f   : > { %369 = vmatmul.f32.vlgmr.msra.gmra.mxu0 %v1134_v0  ;;  %389 = vmatmul.f32.vlgmr.msra.gmra.mxu1 %v1134_v0  ;;  %v280_v36 = vld [vmem:[%s1065_s20 + $0x1e8] sm:$0xff]  ;;  %v281_v37 = vld [vmem:[%s1065_s20 + $0x1f0] sm:$0xff]  ;;  %v282_v38 = vld [vmem:[%s1065_s20 + $0x1f8] sm:$0xff] }
  0x30   : > { %409 = vmatmul.f32.vlgmr.msra.gmra.mxu2 %v1134_v0  ;;  %429 = vmatmul.f32.vlgmr.msra.gmra.mxu3 %v1134_v0  ;;  %v271_v39 = vld [vmem:[%s1065_s20 + $0x1a0] sm:$0xff]  ;;  %v272_v40 = vld [vmem:[%s1065_s20 + $0x1a8] sm:$0xff]  ;;  %v273_v41 = vld [vmem:[%s1065_s20 + $0x1b0] sm:$0xff] }
  0x31   : > { %433 = vmatpush.msrb.mxu0 %v343_v1  ;;  %453 = vmatpush.msrb.mxu1 %v344_v2  ;;  %v274_v42 = vld [vmem:[%s1065_s20 + $0x1b8] sm:$0xff]  ;;  %v263_v43 = vld [vmem:[%s1065_s20 + $0x160] sm:$0xff]  ;;  %v264_v44 = vld [vmem:[%s1065_s20 + $0x168] sm:$0xff] }
  0x32   : > { %473 = vmatpush.msrb.mxu2 %v345_v3  ;;  %493 = vmatpush.msrb.mxu3 %v346_v4  ;;  %v265_v45 = vld [vmem:[%s1065_s20 + $0x170] sm:$0xff]  ;;  %v266_v46 = vld [vmem:[%s1065_s20 + $0x178] sm:$0xff]  ;;  %v255_v47 = vld [vmem:[%s1065_s20 + $0x120] sm:$0xff] }
  0x33   : > { %434 = vmatpush.msrb.mxu0 %v335_v5  ;;  %454 = vmatpush.msrb.mxu1 %v336_v6  ;;  %v256_v48 = vld [vmem:[%s1065_s20 + $0x128] sm:$0xff]  ;;  %v257_v49 = vld [vmem:[%s1065_s20 + $0x130] sm:$0xff]  ;;  %v258_v50 = vld [vmem:[%s1065_s20 + $0x138] sm:$0xff] }
  0x34   : > { %474 = vmatpush.msrb.mxu2 %v337_v7  ;;  %494 = vmatpush.msrb.mxu3 %v338_v8  ;;  %v247_v51 = vld [vmem:[%s1065_s20 + $0xe0] sm:$0xff]  ;;  %v248_v52 = vld [vmem:[%s1065_s20 + $0xe8] sm:$0xff]  ;;  %v249_v53 = vld [vmem:[%s1065_s20 + $0xf0] sm:$0xff] }
  0x35   : > { %435 = vmatpush.msrb.mxu0 %v327_v9  ;;  %455 = vmatpush.msrb.mxu1 %v328_v10  ;;  %v250_v54 = vld [vmem:[%s1065_s20 + $0xf8] sm:$0xff]  ;;  %v239_v55 = vld [vmem:[%s1065_s20 + $0xa0] sm:$0xff]  ;;  %v240_v56 = vld [vmem:[%s1065_s20 + $0xa8] sm:$0xff] }
  0x36   : > { %475 = vmatpush.msrb.mxu2 %v329_v11  ;;  %495 = vmatpush.msrb.mxu3 %v330_v12  ;;  %v241_v57 = vld [vmem:[%s1065_s20 + $0xb0] sm:$0xff]  ;;  %v242_v58 = vld [vmem:[%s1065_s20 + $0xb8] sm:$0xff]  ;;  %v231_v59 = vld [vmem:[%s1065_s20 + $0x60] sm:$0xff] }
  0x37   : > { %436 = vmatpush.msrb.mxu0 %v319_v13  ;;  %456 = vmatpush.msrb.mxu1 %v320_v14  ;;  %v232_v60 = vld [vmem:[%s1065_s20 + $0x68] sm:$0xff]  ;;  %v233_v61 = vld [vmem:[%s1065_s20 + $0x70] sm:$0xff]  ;;  %v234_v62 = vld [vmem:[%s1065_s20 + $0x78] sm:$0xff] }
  0x38   : > { %476 = vmatpush.msrb.mxu2 %v321_v15  ;;  %496 = vmatpush.msrb.mxu3 %v322_v16  ;;  %v223_v63 = vld [vmem:[%s1065_s20 + $0x20] sm:$0xff]  ;;  %v224_v1 = vld [vmem:[%s1065_s20 + $0x28] sm:$0xff]  ;;  %v225_v2 = vld [vmem:[%s1065_s20 + $0x30] sm:$0xff] }
  0x39   : > { %437 = vmatpush.msrb.mxu0 %v311_v17  ;;  %457 = vmatpush.msrb.mxu1 %v312_v18  ;;  %v226_v3 = vld [vmem:[%s1065_s20 + $0x38] sm:$0xff] }
  0x3a   : > { %477 = vmatpush.msrb.mxu2 %v313_v19  ;;  %497 = vmatpush.msrb.mxu3 %v314_v20 }
  0x3b   : > { %984 = vset.pattern.permute.xlu0 %v1025_v26  ;;  %438 = vmatpush.msrb.mxu0 %v303_v21 }
  0x3c   : > { %458 = vmatpush.msrb.mxu1 %v304_v22  ;;  %478 = vmatpush.msrb.mxu2 %v305_v23 }
  0x3d   : > { %498 = vmatpush.msrb.mxu3 %v306_v24  ;;  %350 = vperm.xlu0 %984, %v347_v25  }
  0x3e   : > { %439 = vmatpush.msrb.mxu0 %v295_v27  ;;  %459 = vmatpush.msrb.mxu1 %v296_v28 }
  0x3f   : > { %479 = vmatpush.msrb.mxu2 %v297_v29  ;;  %499 = vmatpush.msrb.mxu3 %v298_v30 }
  0x40   : > { %440 = vmatpush.msrb.mxu0 %v287_v31  ;;  %460 = vmatpush.msrb.mxu1 %v288_v32 }
  0x41   : > { %480 = vmatpush.msrb.mxu2 %v289_v33  ;;  %500 = vmatpush.msrb.mxu3 %v290_v34 }
  0x42   : > { %441 = vmatpush.msrb.mxu0 %v279_v35  ;;  %461 = vmatpush.msrb.mxu1 %v280_v36 }
  0x43   : > { %481 = vmatpush.msrb.mxu2 %v281_v37  ;;  %501 = vmatpush.msrb.mxu3 %v282_v38 }
  0x44   : > { %442 = vmatpush.msrb.mxu0 %v271_v39  ;;  %462 = vmatpush.msrb.mxu1 %v272_v40 }
  0x45   : > { %482 = vmatpush.msrb.mxu2 %v273_v41  ;;  %502 = vmatpush.msrb.mxu3 %v274_v42 }
  0x46   : > { %443 = vmatpush.msrb.mxu0 %v263_v43  ;;  %463 = vmatpush.msrb.mxu1 %v264_v44 }
  0x47   : > { %483 = vmatpush.msrb.mxu2 %v265_v45  ;;  %503 = vmatpush.msrb.mxu3 %v266_v46 }
  0x48   : > { %444 = vmatpush.msrb.mxu0 %v255_v47  ;;  %464 = vmatpush.msrb.mxu1 %v256_v48 }
  0x49   : > { %484 = vmatpush.msrb.mxu2 %v257_v49  ;;  %504 = vmatpush.msrb.mxu3 %v258_v50 }
  0x4a   : > { %445 = vmatpush.msrb.mxu0 %v247_v51  ;;  %465 = vmatpush.msrb.mxu1 %v248_v52 }
  0x4b   : > { %485 = vmatpush.msrb.mxu2 %v249_v53  ;;  %505 = vmatpush.msrb.mxu3 %v250_v54 }
  0x4c   : > { %446 = vmatpush.msrb.mxu0 %v239_v55  ;;  %466 = vmatpush.msrb.mxu1 %v240_v56 }
  0x4d   : > { %486 = vmatpush.msrb.mxu2 %v241_v57  ;;  %506 = vmatpush.msrb.mxu3 %v242_v58 }
  0x4e   : > { %447 = vmatpush.msrb.mxu0 %v231_v59  ;;  %467 = vmatpush.msrb.mxu1 %v232_v60 }
  0x4f   : > { %487 = vmatpush.msrb.mxu2 %v233_v61  ;;  %507 = vmatpush.msrb.mxu3 %v234_v62 }
  0x50   : > { %448 = vmatpush.msrb.mxu0 %v223_v63  ;;  %468 = vmatpush.msrb.mxu1 %v224_v1 }
  0x51   : > { %488 = vmatpush.msrb.mxu2 %v225_v2  ;;  %508 = vmatpush.msrb.mxu3 %v226_v3 }
  0x52   : > { %449 = vmatmul.f32.vlgmr.msrb.gmra.mxu0 %v1134_v0  ;;  %469 = vmatmul.f32.vlgmr.msrb.gmra.mxu1 %v1134_v0 }
  0x53   : > { %489 = vmatmul.f32.vlgmr.msrb.gmra.mxu2 %v1134_v0  ;;  %509 = vmatmul.f32.vlgmr.msrb.gmra.mxu3 %v1134_v0 }
  0xac   : > { %v370_v4 = vpop.f32.mrf.mxu0  ;;  %v390_v5 = vpop.f32.mrf.mxu1 }
  0xaf   : > { %v1211_v6 = vpop.permute.xlu0 %350 }
  0xb0   : > { %v371_v7 = vadd.f32 %v370_v4, %v1211_v6  ;;  %v391_v8 = vadd.f32 %v390_v5, %v1211_v6 }
  0xb2   : > { %v514_v9 = vsel %vm513_vm0, %v371_v7, -inf  ;;  %v521_v10 = vsel %vm513_vm0, %v391_v8, -inf }
  0xb3   : > { %v515_v11 = vrot.slane %v514_v9, 4  ;;  %v522_v12 = vrot.slane %v521_v10, 4  ;;  %v410_v13 = vpop.f32.mrf.mxu2  ;;  %v430_v14 = vpop.f32.mrf.mxu3 }
  0xb4   : > { %v411_v15 = vadd.f32 %v410_v13, %v1211_v6  ;;  %v431_v0 = vadd.f32 %v430_v14, %v1211_v6 }
  0xb5   : > { %v516_v16 = vmax.f32 %v514_v9, %v515_v11  ;;  %v523_v17 = vmax.f32 %v521_v10, %v522_v12 }
  0xb6   : > { %v528_v18 = vsel %vm513_vm0, %v411_v15, -inf  ;;  %v535_v19 = vsel %vm513_vm0, %v431_v0, -inf }
  0xb7   : > { %v517_v20 = vrot.slane %v516_v16, 2  ;;  %v524_v21 = vrot.slane %v523_v17, 2  ;;  %v529_v22 = vrot.slane %v528_v18, 4  ;;  %v536_v23 = vrot.slane %v535_v19, 4 }
  0xb9   : > { %v518_v24 = vmax.f32 %v516_v16, %v517_v20  ;;  %v525_v25 = vmax.f32 %v523_v17, %v524_v21  ;;  %v530_v26 = vmax.f32 %v528_v18, %v529_v22  ;;  %v537_v27 = vmax.f32 %v535_v19, %v536_v23 }
  0xbb   : > { %v519_v28 = vrot.slane %v518_v24, 1  ;;  %v526_v29 = vrot.slane %v525_v25, 1  ;;  %v531_v30 = vrot.slane %v530_v26, 2  ;;  %v538_v31 = vrot.slane %v537_v27, 2 }
  0xbd   : > { %v520_v32 = vmax.f32 %v518_v24, %v519_v28  ;;  %v527_v33 = vmax.f32 %v525_v25, %v526_v29  ;;  %v532_v34 = vmax.f32 %v530_v26, %v531_v30  ;;  %v539_v35 = vmax.f32 %v537_v27, %v538_v31 }
  0xbf   : > { %v570_v36 = vsub.f32 %v371_v7, %v520_v32  ;;  %v571_v37 = vsub.f32 %v391_v8, %v527_v33  ;;  %v533_v38 = vrot.slane %v532_v34, 1  ;;  %v540_v39 = vrot.slane %v539_v35, 1 }
  0xc1   : > { %v578_v40 = vmul.f32 1.442695, %v570_v36  ;;  %v580_v41 = vmul.f32 1.442695, %v571_v37  ;;  %v534_v42 = vmax.f32 %v532_v34, %v533_v38  ;;  %v541_v43 = vmax.f32 %v539_v35, %v540_v39 }
  0xc3   : > { %985 = vpow2.f32 %v578_v40  ;;  %v572_v44 = vsub.f32 %v411_v15, %v534_v42  ;;  %v573_v45 = vsub.f32 %v431_v0, %v541_v43 }
  0xc4   : > { %987 = vpow2.f32 %v580_v41 }
  0xc5   : > { %v582_v46 = vmul.f32 1.442695, %v572_v44  ;;  %v584_v47 = vmul.f32 1.442695, %v573_v45 }
  0xc7   : > { %989 = vpow2.f32 %v582_v46 }
  0xc8   : > { %991 = vpow2.f32 %v584_v47 }
  0xc9   : > { %v1221_v48 = vpop.eup %985 }
  0xca   : > { %v1223_v49 = vpop.eup %987  ;;  %v594_v50 = vsel %vm513_vm0, %v1221_v48, 0.0 }
  0xcb   : > { %v595_v51 = vrot.slane %v594_v50, 4  ;;  %v601_v52 = vsel %vm513_vm0, %v1223_v49, 0.0 }
  0xcc   : > { %v602_v53 = vrot.slane %v601_v52, 4 }
  0xcd   : > { %v1229_v54 = vpop.eup %989  ;;  %v596_v55 = vadd.f32 %v595_v51, %v594_v50 }
  0xce   : > { %v1231_v56 = vpop.eup %991  ;;  %v603_v57 = vadd.f32 %v602_v53, %v601_v52  ;;  %v608_v58 = vsel %vm513_vm0, %v1229_v54, 0.0 }
  0xcf   : > { %v597_v59 = vrot.slane %v596_v55, 2  ;;  %v609_v60 = vrot.slane %v608_v58, 4  ;;  %v615_v61 = vsel %vm513_vm0, %v1231_v56, 0.0  ;;  %v450_v62 = vpop.f32.mrf.mxu0  ;;  %v470_v63 = vpop.f32.mrf.mxu1 }
  0xd0   : > { %v604_v1 = vrot.slane %v603_v57, 2  ;;  %v616_v2 = vrot.slane %v615_v61, 4  ;;  %v1238_v3 = vadd.f32 %v450_v62, %v1211_v6  ;;  %v1241_v4 = vadd.f32 %v470_v63, %v1211_v6 }
  0xd1   : > { %v598_v5 = vadd.f32 %v597_v59, %v596_v55  ;;  %v610_v7 = vadd.f32 %v609_v60, %v608_v58 }
  0xd2   : > { %v605_v8 = vadd.f32 %v604_v1, %v603_v57  ;;  %v617_v9 = vadd.f32 %v616_v2, %v615_v61  ;;  %v542_v10 = vsel %vm513_vm0, %v1238_v3, -inf  ;;  %v549_v11 = vsel %vm513_vm0, %v1241_v4, -inf }
  0xd3   : > { %v599_v12 = vrot.slane %v598_v5, 1  ;;  %v611_v13 = vrot.slane %v610_v7, 2  ;;  %v543_v14 = vrot.slane %v542_v10, 4  ;;  %v550_v15 = vrot.slane %v549_v11, 4 }
  0xd4   : > { %v606_v0 = vrot.slane %v605_v8, 1  ;;  %v618_v16 = vrot.slane %v617_v9, 2 }
  0xd5   : > { %v600_v17 = vadd.f32 %v599_v12, %v598_v5  ;;  %v612_v18 = vadd.f32 %v611_v13, %v610_v7  ;;  %v544_v21 = vmax.f32 %v542_v10, %v543_v14  ;;  %v551_v22 = vmax.f32 %v549_v11, %v550_v15 }
  0xd6   : > { %v1247_v19 = vadd.f32 %v606_v0, %v605_v8  ;;  %v619_v20 = vadd.f32 %v618_v16, %v617_v9  ;;  %v490_v29 = vpop.f32.mrf.mxu2  ;;  %v510_v30 = vpop.f32.mrf.mxu3 }
  0xd7   : > { %993 = vrcp.f32 %v600_v17  ;;  %v659_v23 = vand.u32 2147483647, %v600_v17  ;;  %v613_v24 = vrot.slane %v612_v18, 1  ;;  %v661_v26 = vand.u32 2147483648, %v600_v17 }
  0xd8   : > { %995 = vrcp.f32 %v1247_v19  ;;  %v620_v25 = vrot.slane %v619_v20, 1  ;;  %v545_v27 = vrot.slane %v544_v21, 2  ;;  %v552_v28 = vrot.slane %v551_v22, 2 }
  0xd9   : > { %v674_v31 = vand.u32 2147483647, %v1247_v19  ;;  %v676_v32 = vand.u32 2147483648, %v1247_v19  ;;  %v1252_v33 = vadd.f32 %v613_v24, %v612_v18  ;;  %vm655_vm1 = vweird.f32 %v600_v17 }
  0xda   : > { %v1254_v34 = vadd.f32 %v620_v25, %v619_v20  ;;  %vm1256_vm2 = vcmp.eq.f32.partialorder %v659_v23, 8.507059e+37  ;;  %vm670_vm3 = vweird.f32 %v1247_v19  ;;  %v546_v36 = vmax.f32 %v544_v21, %v545_v27 }
  0xdb   : > { %997 = vrcp.f32 %v1252_v33  ;;  %v553_v38 = vmax.f32 %v551_v22, %v552_v28  ;;  %v1263_v39 = vadd.f32 %v490_v29, %v1211_v6  ;;  %v1266_v40 = vadd.f32 %v510_v30, %v1211_v6 }
  0xdc   : > { %v662_v43 = vor.u32 1.1754944e-38, %v661_v26  ;;  %v691_v44 = vand.u32 2147483648, %v1252_v33  ;;  %999 = vrcp.f32 %v1254_v34  ;;  %vm1271_vm5 = vcmp.eq.f32.partialorder %v674_v31, 8.507059e+37 }
  0xdd   : > { %v994_v37 = vpop.eup %993  ;;  %v677_v47 = vor.u32 1.1754944e-38, %v676_v32  ;;  %v689_v50 = vand.u32 2147483647, %v1252_v33  ;;  %vm685_vm7 = vweird.f32 %v1252_v33  ;;  %v706_v6 = vand.u32 2147483648, %v1254_v34 }
  0xde   : > { %v996_v41 = vpop.eup %995  ;;  %v651_v42 = vmul.f32 %v994_v37, %v600_v17  ;;  %vm656_vm4 = vweird.f32 %v994_v37  ;;  %v547_v52 = vrot.slane %v546_v36, 1  ;;  %v554_v55 = vrot.slane %v553_v38, 1 }
  0xdf   : > { %v666_v45 = vmul.f32 %v996_v41, %v1247_v19  ;;  %vm671_vm6 = vweird.f32 %v996_v41  ;;  %v556_v57 = vsel %vm513_vm0, %v1263_v39, -inf  ;;  %v563_v58 = vsel %vm513_vm0, %v1266_v40, -inf  ;;  %vm1285_vm8 = vmor %vm655_vm1, %vm656_vm4 }
  0xe0   : > { %v652_v51 = vsub.f32 1.0, %v651_v42  ;;  %v692_v60 = vor.u32 1.1754944e-38, %v691_v44  ;;  %v704_v61 = vand.u32 2147483647, %v1254_v34  ;;  %v548_v62 = vmax.f32 %v546_v36, %v547_v52  ;;  %vm672_vm13 = vmor %vm670_vm3, %vm671_vm6 }
  0xe1   : > { %v667_v53 = vsub.f32 1.0, %v666_v45  ;;  %v998_v63 = vpop.eup %997  ;;  %v1289_v5 = vor.u32 1.1754944e-38, %v706_v6  ;;  %v555_v7 = vmax.f32 %v553_v38, %v554_v55  ;;  %v557_v8 = vrot.slane %v556_v57, 4 }
  0xe2   : > { %v653_v59 = vmul.f32 %v994_v37, %v652_v51  ;;  %v1291_v9 = vpop.eup %999  ;;  %v681_v11 = vmul.f32 %v998_v63, %v1252_v33  ;;  %vm1294_vm10 = vcmp.eq.f32.partialorder %v689_v50, 8.507059e+37  ;;  %vm700_vm11 = vweird.f32 %v1254_v34 }
  0xe3   : > { %v668_v2 = vmul.f32 %v996_v41, %v667_v53  ;;  %v574_v13 = vsub.f32 %v1238_v3, %v548_v62  ;;  %v564_v14 = vrot.slane %v563_v58, 4  ;;  %vm686_vm12 = vweird.f32 %v998_v63 }
  0xe4   : > { %v654_v10 = vadd.f32 %v994_v37, %v653_v59  ;;  %v696_v0 = vmul.f32 %v1291_v9, %v1254_v34  ;;  %v575_v16 = vsub.f32 %v1241_v4, %v555_v7  ;;  %v682_v18 = vsub.f32 1.0, %v681_v11  ;;  %vm687_vm1 = vmor %vm685_vm7, %vm686_vm12 }
  0xe5   : > { %v669_v15 = vadd.f32 %v996_v41, %v668_v2  ;;  %vm1308_vm14 = vcmp.eq.f32.partialorder %v704_v61, 8.507059e+37  ;;  %v586_v3 = vmul.f32 1.442695, %v574_v13  ;;  %v558_v21 = vmax.f32 %v556_v57, %v557_v8 }
  0xe6   : > { %v658_v17 = vsel %vm1285_vm8, %v994_v37, %v654_v10  ;;  %v697_v4 = vsub.f32 1.0, %v696_v0  ;;  %v588_v24 = vmul.f32 1.442695, %v575_v16  ;;  %v683_v26 = vmul.f32 %v998_v63, %v682_v18  ;;  %v771_v0 = vld [vmem:[%s1323_s28 + $0x8] sm:$0xff] }
  0xe7   : > { %v663_v22 = vsel %vm1256_vm2, %v662_v43, %v658_v17  ;;  %v673_v23 = vsel %vm672_vm13, %v996_v41, %v669_v15  ;;  %1001 = vpow2.f32 %v586_v3  ;;  %v559_v29 = vrot.slane %v558_v21, 2  ;;  %v770_v43 = vld [vmem:[%s1323_s28] sm:$0xff] }
  0xe8   : > { %v664_v25 = vmul.f32 %v1221_v48, %v663_v22  ;;  %v678_v19 = vsel %vm1271_vm5, %v677_v47, %v673_v23  ;;  %v698_v28 = vmul.f32 %v1291_v9, %v697_v4  ;;  %1003 = vpow2.f32 %v588_v24 }
  0xe9   : > { %v679_v27 = vmul.f32 %v1223_v49, %v678_v19  ;;  %v684_v48 = vadd.f32 %v998_v63, %v683_v26  ;;  %vm701_vm15 = vweird.f32 %v1291_v9  ;;  %v560_v41 = vmax.f32 %v558_v21, %v559_v29 }
  0xea   : > { %v774_v30 = vperm.slane %v664_v25, 0  ;;  %v811_v31 = vperm.slane %v664_v25, 1  ;;  %v699_v49 = vadd.f32 %v1291_v9, %v698_v28  ;;  %v848_v37 = vperm.slane %v664_v25, 2  ;;  %vm702_vm2 = vmor %vm700_vm11, %vm701_vm15 }
  0xeb   : > { %v775_v32 = vperm.slane %v679_v27, 0  ;;  %v812_v35 = vperm.slane %v679_v27, 1  ;;  %v849_v36 = vperm.slane %v679_v27, 2  ;;  %v688_v38 = vsel %vm687_vm1, %v998_v63, %v684_v48 }
  0xec   : > { %v565_v42 = vmax.f32 %v563_v58, %v564_v14  ;;  %v693_v47 = vsel %vm1294_vm10, %v692_v60, %v688_v38  ;;  %v703_v51 = vsel %vm702_vm2, %v1291_v9, %v699_v49  ;;  %v561_v6 = vrot.slane %v560_v41, 1 }
  0xed   : > { %v790_v44 = vrot.slane %v775_v32, 4  ;;  %v827_v45 = vrot.slane %v812_v35, 4  ;;  %v864_v46 = vrot.slane %v849_v36, 4  ;;  %v1338_v33 = vpop.eup %1001  ;;  %v694_v50 = vmul.f32 %v1229_v54, %v693_v47 }
  0xee   : > { %v566_v52 = vrot.slane %v565_v42, 2  ;;  %v1342_v53 = vpop.eup %1003  ;;  %v708_v54 = vsel %vm1308_vm14, %v1289_v5, %v703_v51  ;;  %v622_v1 = vsel %vm513_vm0, %v1338_v33, 0.0  ;;  %v562_v8 = vmax.f32 %v560_v41, %v561_v6 }
  0xef   : > { %v795_v55 = vsel %vm794_vm9, %v774_v30, %v790_v44  ;;  %v831_v34 = vsel %vm794_vm9, %v811_v31, %v827_v45  ;;  %v868_v57 = vsel %vm794_vm9, %v848_v37, %v864_v46  ;;  %v776_v61 = vperm.slane %v694_v50, 0 }
  0xf0   : > { %v803_v58 = vmul.f32 %v795_v55, %v770_v43  ;;  %v839_v59 = vmul.f32 %v831_v34, %v770_v43  ;;  %v876_v60 = vmul.f32 %v868_v57, %v770_v43  ;;  %v813_v62 = vperm.slane %v694_v50, 1 }
  0xf1   : > { %v709_v63 = vmul.f32 %v1231_v56, %v708_v54  ;;  %v623_v2 = vrot.slane %v622_v1, 4  ;;  %v629_v7 = vsel %vm513_vm0, %v1342_v53, 0.0  ;;  %v567_v9 = vmax.f32 %v565_v42, %v566_v52 }
  0xf2   : > { %807 = vst [vmem:[%s1347_s6] sm:$0xff] %v803_v58  ;;  %v630_v12 = vrot.slane %v629_v7, 4  ;;  %v850_v13 = vperm.slane %v694_v50, 2  ;;  %v576_v56 = vsub.f32 %v1263_v39, %v562_v8 }
  0xf3   : > { %962 = vst [vmem:[%s1347_s6 + $0x20] sm:$0xff] %v839_v59  ;;  %v777_v5 = vperm.slane %v709_v63, 0  ;;  %v814_v10 = vperm.slane %v709_v63, 1  ;;  %v851_v11 = vperm.slane %v709_v63, 2  ;;  %v624_v14 = vadd.f32 %v623_v2, %v622_v1 }
  0xf4   : > { %966 = vst [vmem:[%s1347_s6 + $0x40] sm:$0xff] %v876_v60  ;;  %v568_v15 = vrot.slane %v567_v9, 1  ;;  %v631_v20 = vadd.f32 %v630_v12, %v629_v7  ;;  %v590_v21 = vmul.f32 1.442695, %v576_v56 }
  0xf5   : > { %v791_v16 = vrot.slane %v777_v5, 4  ;;  %v828_v17 = vrot.slane %v814_v10, 4  ;;  %v865_v18 = vrot.slane %v851_v11, 4  ;;  %v625_v3 = vrot.slane %v624_v14, 2 }
  0xf6   : > { %v569_v22 = vmax.f32 %v567_v9, %v568_v15  ;;  %v632_v25 = vrot.slane %v631_v20, 2  ;;  %1005 = vpow2.f32 %v590_v21  ;;  %v772_v21 = vld [vmem:[%s1323_s28 + $0x10] sm:$0xff] }
  0xf7   : > { %v796_v23 = vsel %vm794_vm9, %v776_v61, %v791_v16  ;;  %v832_v4 = vsel %vm794_vm9, %v813_v62, %v828_v17  ;;  %v869_v24 = vsel %vm794_vm9, %v850_v13, %v865_v18  ;;  %v626_v27 = vadd.f32 %v625_v3, %v624_v14 }
  0xf8   : > { %v804_v39 = vmul.f32 %v796_v23, %v771_v0  ;;  %v840_v19 = vmul.f32 %v832_v4, %v771_v0  ;;  %v877_v26 = vmul.f32 %v869_v24, %v771_v0  ;;  %v633_v28 = vadd.f32 %v632_v25, %v631_v20 }
  0xf9   : > { %v577_v29 = vsub.f32 %v1266_v40, %v569_v22  ;;  %v627_v30 = vrot.slane %v626_v27, 1 }
  0xfa   : > { %808 = vst [vmem:[%s1347_s6 + $0x8] sm:$0xff] %v804_v39  ;;  %v634_v31 = vrot.slane %v633_v28, 1 }
  0xfb   : > { %963 = vst [vmem:[%s1347_s6 + $0x28] sm:$0xff] %v840_v19  ;;  %v592_v48 = vmul.f32 1.442695, %v577_v29  ;;  %v628_v32 = vadd.f32 %v627_v30, %v626_v27 }
  0xfc   : > { %967 = vst [vmem:[%s1347_s6 + $0x48] sm:$0xff] %v877_v26  ;;  %v635_v35 = vadd.f32 %v634_v31, %v633_v28  ;;  %v1372_v36 = vpop.eup %1005 }
  0xfd   : > { %1007 = vpow2.f32 %v592_v48  ;;  %v636_v49 = vsel %vm513_vm0, %v1372_v36, 0.0  ;;  %v719_v52 = vand.u32 2147483647, %v628_v32  ;;  %v721_v55 = vand.u32 2147483648, %v628_v32 }
  0xfe   : > { %1009 = vrcp.f32 %v628_v32  ;;  %v637_v37 = vrot.slane %v636_v49, 4  ;;  %v736_v57 = vand.u32 2147483648, %v635_v35  ;;  %v734_v61 = vand.u32 2147483647, %v635_v35 }
  0xff   : > { %1011 = vrcp.f32 %v635_v35  ;;  %v722_v2 = vor.u32 1.1754944e-38, %v721_v55  ;;  %vm730_vm6 = vweird.f32 %v635_v35  ;;  %vm720_vm7 = vcmp.eq.f32.partialorder %v719_v52, 8.507059e+37 }
 0x100   : > { %v638_v40 = vadd.f32 %v637_v37, %v636_v49  ;;  %v737_v9 = vor.u32 1.1754944e-38, %v736_v57  ;;  %vm735_vm10 = vcmp.eq.f32.partialorder %v734_v61, 8.507059e+37 }
 0x102   : > { %v639_v45 = vrot.slane %v638_v40, 2 }
 0x103   : > { %v1376_v38 = vpop.eup %1007 }
 0x104   : > { %v1010_v41 = vpop.eup %1009  ;;  %v643_v42 = vsel %vm513_vm0, %v1376_v38, 0.0  ;;  %v640_v51 = vadd.f32 %v639_v45, %v638_v40  ;;  %vm715_vm0 = vweird.f32 %v628_v32 }
 0x105   : > { %v1012_v43 = vpop.eup %1011  ;;  %v711_v44 = vmul.f32 %v1010_v41, %v628_v32  ;;  %v644_v46 = vrot.slane %v643_v42, 4  ;;  %vm716_vm3 = vweird.f32 %v1010_v41 }
 0x106   : > { %v726_v47 = vmul.f32 %v1012_v43, %v635_v35  ;;  %v641_v58 = vrot.slane %v640_v51, 1  ;;  %vm731_vm4 = vweird.f32 %v1012_v43  ;;  %vm717_vm5 = vmor %vm715_vm0, %vm716_vm3 }
 0x107   : > { %v712_v50 = vsub.f32 1.0, %v711_v44  ;;  %v645_v6 = vadd.f32 %v644_v46, %v643_v42  ;;  %vm732_vm8 = vmor %vm730_vm6, %vm731_vm4 }
 0x108   : > { %v727_v34 = vsub.f32 1.0, %v726_v47  ;;  %v642_v63 = vadd.f32 %v641_v58, %v640_v51  ;;  %v773_v58 = vld [vmem:[%s1323_s28 + $0x18] sm:$0xff] }
 0x109   : > { %v713_v54 = vmul.f32 %v1010_v41, %v712_v50  ;;  %v646_v59 = vrot.slane %v645_v6, 2 }
 0x10a   : > { %v728_v60 = vmul.f32 %v1012_v43, %v727_v34  ;;  %1013 = vrcp.f32 %v642_v63  ;;  %v751_v30 = vand.u32 2147483648, %v642_v63  ;;  %vm745_vm12 = vweird.f32 %v642_v63 }
 0x10b   : > { %v714_v62 = vadd.f32 %v1010_v41, %v713_v54  ;;  %v647_v1 = vadd.f32 %v646_v59, %v645_v6  ;;  %v749_v32 = vand.u32 2147483647, %v642_v63 }
 0x10c   : > { %v729_v7 = vadd.f32 %v1012_v43, %v728_v60  ;;  %v752_v40 = vor.u32 1.1754944e-38, %v751_v30 }
 0x10d   : > { %v718_v8 = vsel %vm717_vm5, %v1010_v41, %v714_v62  ;;  %v648_v11 = vrot.slane %v647_v1, 1  ;;  %vm750_vm15 = vcmp.eq.f32.partialorder %v749_v32, 8.507059e+37 }
 0x10e   : > { %v723_v5 = vsel %vm720_vm7, %v722_v2, %v718_v8  ;;  %v733_v10 = vsel %vm732_vm8, %v1012_v43, %v729_v7 }
 0x10f   : > { %v724_v12 = vmul.f32 %v1338_v33, %v723_v5  ;;  %v738_v13 = vsel %vm735_vm10, %v737_v9, %v733_v10  ;;  %v649_v56 = vadd.f32 %v648_v11, %v647_v1 }
 0x110   : > { %v739_v14 = vmul.f32 %v1342_v53, %v738_v13  ;;  %v1014_v17 = vpop.eup %1013 }
 0x111   : > { %1015 = vrcp.f32 %v649_v56  ;;  %v778_v18 = vperm.slane %v724_v12, 0  ;;  %v815_v20 = vperm.slane %v724_v12, 1  ;;  %v852_v3 = vperm.slane %v724_v12, 2 }
 0x112   : > { %v779_v15 = vperm.slane %v739_v14, 0  ;;  %v816_v0 = vperm.slane %v739_v14, 1  ;;  %v853_v16 = vperm.slane %v739_v14, 2  ;;  %v741_v24 = vmul.f32 %v1014_v17, %v642_v63 }
 0x113   : > { %vm746_vm11 = vweird.f32 %v1014_v17  ;;  %v766_v37 = vand.u32 2147483648, %v649_v56  ;;  %v764_v42 = vand.u32 2147483647, %v649_v56  ;;  %vm760_vm1 = vweird.f32 %v649_v56 }
 0x114   : > { %v792_v22 = vrot.slane %v779_v15, 4  ;;  %v829_v23 = vrot.slane %v816_v0, 4  ;;  %v866_v4 = vrot.slane %v853_v16, 4  ;;  %v742_v39 = vsub.f32 1.0, %v741_v24  ;;  %vm747_vm13 = vmor %vm745_vm12, %vm746_vm11 }
 0x115   : > { %v767_v45 = vor.u32 1.1754944e-38, %v766_v37  ;;  %vm765_vm3 = vcmp.eq.f32.partialorder %v764_v42, 8.507059e+37 }
 0x116   : > { %v797_v33 = vsel %vm794_vm9, %v778_v18, %v792_v22  ;;  %v833_v53 = vsel %vm794_vm9, %v815_v20, %v829_v23  ;;  %v870_v25 = vsel %vm794_vm9, %v852_v3, %v866_v4  ;;  %v743_v29 = vmul.f32 %v1014_v17, %v742_v39 }
 0x117   : > { %v805_v19 = vmul.f32 %v797_v33, %v772_v21  ;;  %v841_v26 = vmul.f32 %v833_v53, %v772_v21  ;;  %v878_v27 = vmul.f32 %v870_v25, %v772_v21  ;;  %v1016_v28 = vpop.eup %1015 }
 0x118   : > { %v756_v31 = vmul.f32 %v1016_v28, %v649_v56  ;;  %v744_v48 = vadd.f32 %v1014_v17, %v743_v29  ;;  %vm761_vm14 = vweird.f32 %v1016_v28 }
 0x119   : > { %809 = vst [vmem:[%s1347_s6 + $0x10] sm:$0xff] %v805_v19  ;;  %vm762_vm2 = vmor %vm760_vm1, %vm761_vm14 }
 0x11a   : > { %964 = vst [vmem:[%s1347_s6 + $0x30] sm:$0xff] %v841_v26  ;;  %v757_v35 = vsub.f32 1.0, %v756_v31  ;;  %v748_v49 = vsel %vm747_vm13, %v1014_v17, %v744_v48 }
 0x11b   : > { %968 = vst [vmem:[%s1347_s6 + $0x50] sm:$0xff] %v878_v27  ;;  %v753_v43 = vsel %vm750_vm15, %v752_v40, %v748_v49 }
 0x11c   : > { %v758_v41 = vmul.f32 %v1016_v28, %v757_v35  ;;  %v754_v47 = vmul.f32 %v1372_v36, %v753_v43 }
 0x11e   : > { %v759_v44 = vadd.f32 %v1016_v28, %v758_v41  ;;  %v780_v34 = vperm.slane %v754_v47, 0  ;;  %v817_v57 = vperm.slane %v754_v47, 1  ;;  %v854_v54 = vperm.slane %v754_v47, 2 }
 0x120   : > { %v763_v46 = vsel %vm762_vm2, %v1016_v28, %v759_v44 }
 0x121   : > { %v768_v50 = vsel %vm765_vm3, %v767_v45, %v763_v46 }
 0x122   : > { %v769_v51 = vmul.f32 %v1376_v38, %v768_v50 }
 0x124   : > { %v781_v6 = vperm.slane %v769_v51, 0  ;;  %v818_v52 = vperm.slane %v769_v51, 1  ;;  %v855_v55 = vperm.slane %v769_v51, 2 }
 0x126   : > { %v793_v59 = vrot.slane %v781_v6, 4  ;;  %v830_v60 = vrot.slane %v818_v52, 4  ;;  %v867_v61 = vrot.slane %v855_v55, 4 }
 0x128   : > { %v798_v62 = vsel %vm794_vm9, %v780_v34, %v793_v59  ;;  %v834_v36 = vsel %vm794_vm9, %v817_v57, %v830_v60  ;;  %v871_v63 = vsel %vm794_vm9, %v854_v54, %v867_v61 }
 0x129   : > { %v806_v38 = vmul.f32 %v798_v62, %v773_v58  ;;  %v842_v1 = vmul.f32 %v834_v36, %v773_v58  ;;  %v879_v2 = vmul.f32 %v871_v63, %v773_v58 }
 0x12b   : > { %810 = vst [vmem:[%s1347_s6 + $0x18] sm:$0xff] %v806_v38 }
 0x12c   : > { %965 = vst [vmem:[%s1347_s6 + $0x38] sm:$0xff] %v842_v1 }
 0x12d   : > { %969 = vst [vmem:[%s1347_s6 + $0x58] sm:$0xff] %v879_v2 }
 0x12e PF: > { %s14_s15 = sadd.s32 1, %s1023_s15  }
 0x12f   : > { %p11_p4 = scmp.ge.s32.totalorder %s14_s15, 4  }
 0x131   :  { %13 = sbr.rel (!%p11_p4) target bundleno = 1 (0x1), region = 71 }

// kernel: rab_forward.4
= control target key start
LH: loop header
LB: loop body
LE: loop exit
PB: predicated region body
PF: predicated region fallthrough
CT: control target
= control target key end

     0   :  { %s399_s12 = smov 0   ;;  %s458_s0 = inlined_call_operand.vmem [shape: f32[2,3,64,64], index: 0, kind: input, shape index: {}]   ;;  %s459_s1 = inlined_call_operand.vmem [shape: f32[8,64], index: 1, kind: input, shape index: {}]   ;;  %s460_s2 = inlined_call_operand.vmem [shape: f32[8,1], index: 2, kind: input, shape index: {}]   ;;  %s461_s3 = inlined_call_operand.vmem [shape: f32[2,3,8,64], index: 3, kind: output, shape index: {}]  }
   0x1 LB: > { %s328_s13 = sadd.s32 4294967295, %s376_s12   ;;  %p332_p0 = scmp.ge.s32.totalorder %s376_s12, 1  ;;  %s376_s12 = sphi %s399_s12, %s13_s12  }
   0x2   : > { %p137_p1 = scmp.lt.s32.totalorder %s376_s12, 3 }
   0x4   : > { %p138_p2 = pnand %p332_p0, %p137_p1 }
   0x5   : > { %p161_p3 = scmp.lt.s32.totalorder (!%p138_p2), %s328_s13, 1 }
   0x6   : > { %141 = sbr.rel (%p138_p2) target bundleno = 166 (0xa6), region = 32 }
   0xb   : > { %v172_v0 = vld [vmem:[%s460_s2] sm:$0xff]  ;;  %v378_v1 = vmov 0   ;;  %s463_s13 = smov (!%p161_p3, %s328_s13), 1  ;;  %vm186_vm0 = vcmask 523264  }
   0xc   : > { %369 = vset.pattern.permute.xlu0 %v378_v1  ;;  %s358_s16 = smul.u32 192, %s463_s13  ;;  %v171_v24 = vld [vmem:[%s459_s1] sm:$0xff] }
   0xd   : > { %183 = vperm.xlu0 %369, %v172_v0   ;;  %s359_s22 = smul.u32 24, %s463_s13 }
   0xe   : > { %s416_s19 = scalar_lea.vmem %s458_s0, %s358_s16 }
   0xf   : > { %v353_v2 = vld [vmem:[%s416_s19 + $0xb8] sm:$0xff]  ;;  %v352_v3 = vld [vmem:[%s416_s19 + $0xb0] sm:$0xff]  ;;  %v351_v6 = vld [vmem:[%s416_s19 + $0xa8] sm:$0xff]  ;;  %s170_s25 = scalar_lea.vmem %s461_s3, %s359_s22 }
  0x10   : > { %259 = vmatpush.msra.mxu2 %v353_v2  ;;  %v180_v4 = vld [vmem:[%s416_s19 + $0x38] sm:$0xff]  ;;  %v179_v7 = vld [vmem:[%s416_s19 + $0x30] sm:$0xff]  ;;  %v178_v9 = vld [vmem:[%s416_s19 + $0x28] sm:$0xff] }
  0x11   : > { %v343_v5 = vld [vmem:[%s416_s19 + $0x78] sm:$0xff]  ;;  %198 = vmatpush.msra.mxu0 %v180_v4  ;;  %v342_v8 = vld [vmem:[%s416_s19 + $0x70] sm:$0xff]  ;;  %v341_v10 = vld [vmem:[%s416_s19 + $0x68] sm:$0xff] }
  0x12   : > { %228 = vmatpush.msra.mxu1 %v343_v5  ;;  %260 = vmatpush.msra.mxu2 %v352_v3  ;;  %v350_v11 = vld [vmem:[%s416_s19 + $0xa0] sm:$0xff]  ;;  %v349_v14 = vld [vmem:[%s416_s19 + $0x98] sm:$0xff]  ;;  %v348_v17 = vld [vmem:[%s416_s19 + $0x90] sm:$0xff] }
  0x13   : > { %199 = vmatpush.msra.mxu0 %v179_v7  ;;  %v177_v12 = vld [vmem:[%s416_s19 + $0x20] sm:$0xff]  ;;  %v176_v15 = vld [vmem:[%s416_s19 + $0x18] sm:$0xff]  ;;  %v175_v18 = vld [vmem:[%s416_s19 + $0x10] sm:$0xff] }
  0x14   : > { %229 = vmatpush.msra.mxu1 %v342_v8  ;;  %261 = vmatpush.msra.mxu2 %v351_v6  ;;  %v340_v13 = vld [vmem:[%s416_s19 + $0x60] sm:$0xff]  ;;  %v339_v16 = vld [vmem:[%s416_s19 + $0x58] sm:$0xff]  ;;  %v338_v19 = vld [vmem:[%s416_s19 + $0x50] sm:$0xff] }
  0x15   : > { %200 = vmatpush.msra.mxu0 %v178_v9  ;;  %v347_v20 = vld [vmem:[%s416_s19 + $0x88] sm:$0xff]  ;;  %v346_v23 = vld [vmem:[%s416_s19 + $0x80] sm:$0xff] }
  0x16   : > { %230 = vmatpush.msra.mxu1 %v341_v10  ;;  %262 = vmatpush.msra.mxu2 %v350_v11  ;;  %v174_v21 = vld [vmem:[%s416_s19 + $0x8] sm:$0xff]  ;;  %v173_v25 = vld [vmem:[%s416_s19] sm:$0xff] }
  0x17   : > { %201 = vmatpush.msra.mxu0 %v177_v12  ;;  %v337_v22 = vld [vmem:[%s416_s19 + $0x48] sm:$0xff]  ;;  %v336_v26 = vld [vmem:[%s416_s19 + $0x40] sm:$0xff] }
  0x18   : > { %231 = vmatpush.msra.mxu1 %v340_v13  ;;  %263 = vmatpush.msra.mxu2 %v349_v14 }
  0x19   : > { %202 = vmatpush.msra.mxu0 %v176_v15 }
  0x1a   : > { %232 = vmatpush.msra.mxu1 %v339_v16  ;;  %264 = vmatpush.msra.mxu2 %v348_v17 }
  0x1b   : > { %203 = vmatpush.msra.mxu0 %v175_v18 }
  0x1c   : > { %233 = vmatpush.msra.mxu1 %v338_v19  ;;  %265 = vmatpush.msra.mxu2 %v347_v20 }
  0x1d   : > { %204 = vmatpush.msra.mxu0 %v174_v21 }
  0x1e   : > { %234 = vmatpush.msra.mxu1 %v337_v22  ;;  %266 = vmatpush.msra.mxu2 %v346_v23 }
  0x1f   : > { %354 = vmatmul.msk.f32.vlgmr.msra.gmra.mxu2 %vm186_vm0, %v171_v24  ;;  %205 = vmatpush.msra.mxu0 %v173_v25 }
  0x20   : > { %235 = vmatpush.msra.mxu1 %v336_v26  ;;  %335 = vmatmul.msk.f32.vlgmr.msra.gmra.mxu0 %vm186_vm0, %v171_v24 }
  0x21   : > { %344 = vmatmul.msk.f32.vlgmr.msra.gmra.mxu1 %vm186_vm0, %v171_v24 }
  0x7f   : > { %v184_v27 = vpop.permute.xlu0 %183 }
  0x9d   : > { %v207_v28 = vpop.f32.mrf.mxu0 }
  0x9e   : > { %v208_v29 = vadd.f32 %v207_v28, %v184_v27  ;;  %v237_v30 = vpop.f32.mrf.mxu1 }
  0x9f   : > { %v238_v31 = vadd.f32 %v237_v30, %v184_v27 }
  0xa0   : > { %210 = vst.msk [vmem:[%s170_s25] sm:$0xff] %vm186_vm0, %v208_v29 }
  0xa1   : > { %345 = vst.msk [vmem:[%s170_s25 + $0x8] sm:$0xff] %vm186_vm0, %v238_v31 }
  0xa2   : > { %v268_v32 = vpop.f32.mrf.mxu2 }
  0xa3   : > { %v269_v33 = vadd.f32 %v268_v32, %v184_v27 }
  0xa5   : > { %355 = vst.msk [vmem:[%s170_s25 + $0x10] sm:$0xff] %vm186_vm0, %v269_v33 }
  0xa6 PF: > { %s13_s12 = sadd.s32 1, %s376_s12  }
  0xa7   : > { %p10_p4 = scmp.ge.s32.totalorder %s13_s12, 4  }
  0xa9   :  { %12 = sbr.rel (!%p10_p4) target bundleno = 1 (0x1), region = 66 }

// kernel: rab_forward.5
= control target key start
LH: loop header
LB: loop body
LE: loop exit
PB: predicated region body
PF: predicated region fallthrough
CT: control target
= control target key end

     0   :  { %s2150_s21 = smov 0   ;;  %s3050_s0 = inlined_call_operand.vmem [shape: f32[2,3,512], index: 0, kind: input, shape index: {}]   ;;  %s3051_s1 = inlined_call_operand.vmem [shape: f32[2,512,16], index: 1, kind: input, shape index: {}]   ;;  %s3052_s2 = inlined_call_operand.vmem [shape: f32[2,3,128,1024], index: 2, kind: input, shape index: {}]   ;;  %s3053_s3 = inlined_call_operand.vmem [shape: f32[4,128], index: 3, kind: input, shape index: {}]   ;;  %s3054_s4 = inlined_call_operand.vmem [shape: f32[4,1], index: 4, kind: input, shape index: {}]   ;;  %s3055_s5 = inlined_call_operand.vmem [shape: f32[2,4,1024], index: 5, kind: input, shape index: {}]   ;;  %s3056_s6 = inlined_call_operand.vmem [shape: f32[2,4,1024], index: 6, kind: output, shape index: {}]  }
   0x1 LB: > { %s1744_s22 = sadd.s32 4294967295, %s2110_s21   ;;  %p1748_p0 = scmp.ge.s32.totalorder %s2110_s21, 1  ;;  %s2110_s21 = sphi %s2150_s21, %s16_s21  }
   0x2   : > { %p232_p1 = scmp.lt.s32.totalorder %s2110_s21, 3 }
   0x4   : > { %p233_p2 = pnand %p1748_p0, %p232_p1 }
   0x5   : > { %p2304_p3 = scmp.lt.s32.totalorder (!%p233_p2), %s1744_s22, 1 }
   0x6   : > { %236 = sbr.rel (%p233_p2) target bundleno = 546 (0x222), region = 44 }
   0xb   : > { %v341_v0 = vld [vmem:[%s3051_s1 + $0x178] sm:$0xff]  ;;  %v340_v1 = vld [vmem:[%s3051_s1 + $0x170] sm:$0xff]  ;;  %v339_v5 = vld [vmem:[%s3051_s1 + $0x168] sm:$0xff]  ;;  %s3059_s22 = smov (!%p2304_p3, %s1744_s22), 1  ;;  %vm607_vm0 = vcmask 130048   ;;  %vm634_vm1 = vcmask 18432  }
   0xc   : > { %v357_v2 = vld [vmem:[%s3051_s1 + $0x1f8] sm:$0xff]  ;;  %411 = vmatpush.msra.mxu2 %v341_v0  ;;  %v356_v6 = vld [vmem:[%s3051_s1 + $0x1f0] sm:$0xff]  ;;  %v355_v9 = vld [vmem:[%s3051_s1 + $0x1e8] sm:$0xff]  ;;  %s2080_s18 = sshll.u32 %s3059_s22, 4  ;;  %s2083_s20 = smul.u32 3072, %s3059_s22  ;;  %vm998_vm6 = vcmask 1043456  }
   0xd   : > { %431 = vmatpush.msra.mxu3 %v357_v2  ;;  %v309_v3 = vld [vmem:[%s3051_s1 + $0x78] sm:$0xff]  ;;  %v308_v7 = vld [vmem:[%s3051_s1 + $0x70] sm:$0xff]  ;;  %v307_v10 = vld [vmem:[%s3051_s1 + $0x68] sm:$0xff]  ;;  %s276_s11 = scalar_lea.vmem %s3050_s0, %s2080_s18  ;;  %s2081_s30 = sshll.u32 %s3059_s22, 5 }
   0xe   : > { %v325_v4 = vld [vmem:[%s3051_s1 + $0xf8] sm:$0xff]  ;;  %371 = vmatpush.msra.mxu0 %v309_v3  ;;  %v324_v8 = vld [vmem:[%s3051_s1 + $0xf0] sm:$0xff]  ;;  %412 = vmatpush.msra.mxu2 %v340_v1  ;;  %v338_v11 = vld [vmem:[%s3051_s1 + $0x160] sm:$0xff]  ;;  %s2562_s24 = scalar_lea.vmem %s3052_s2, %s2083_s20  ;;  %s286_s9 = scalar_lea.vmem %s3055_s5, %s2081_s30 }
   0xf   : > { %391 = vmatpush.msra.mxu1 %v325_v4  ;;  %432 = vmatpush.msra.mxu3 %v356_v6  ;;  %v323_v12 = vld [vmem:[%s3051_s1 + $0xe8] sm:$0xff]  ;;  %v354_v13 = vld [vmem:[%s3051_s1 + $0x1e0] sm:$0xff]  ;;  %v337_v16 = vld [vmem:[%s3051_s1 + $0x158] sm:$0xff]  ;;  %s291_s13 = scalar_lea.vmem %s3056_s6, %s2081_s30 }
  0x10   : > { %372 = vmatpush.msra.mxu0 %v308_v7  ;;  %413 = vmatpush.msra.mxu2 %v339_v5  ;;  %v306_v14 = vld [vmem:[%s3051_s1 + $0x60] sm:$0xff]  ;;  %v353_v17 = vld [vmem:[%s3051_s1 + $0x1d8] sm:$0xff]  ;;  %v336_v20 = vld [vmem:[%s3051_s1 + $0x150] sm:$0xff] }
  0x11   : > { %392 = vmatpush.msra.mxu1 %v324_v8  ;;  %433 = vmatpush.msra.mxu3 %v355_v9  ;;  %v322_v15 = vld [vmem:[%s3051_s1 + $0xe0] sm:$0xff]  ;;  %v305_v18 = vld [vmem:[%s3051_s1 + $0x58] sm:$0xff]  ;;  %v352_v21 = vld [vmem:[%s3051_s1 + $0x1d0] sm:$0xff] }
  0x12   : > { %373 = vmatpush.msra.mxu0 %v307_v10  ;;  %414 = vmatpush.msra.mxu2 %v338_v11  ;;  %v321_v19 = vld [vmem:[%s3051_s1 + $0xd8] sm:$0xff]  ;;  %v304_v22 = vld [vmem:[%s3051_s1 + $0x50] sm:$0xff]  ;;  %v335_v24 = vld [vmem:[%s3051_s1 + $0x148] sm:$0xff] }
  0x13   : > { %393 = vmatpush.msra.mxu1 %v323_v12  ;;  %434 = vmatpush.msra.mxu3 %v354_v13  ;;  %v320_v23 = vld [vmem:[%s3051_s1 + $0xd0] sm:$0xff]  ;;  %v351_v25 = vld [vmem:[%s3051_s1 + $0x1c8] sm:$0xff]  ;;  %v334_v28 = vld [vmem:[%s3051_s1 + $0x140] sm:$0xff] }
  0x14   : > { %374 = vmatpush.msra.mxu0 %v306_v14  ;;  %415 = vmatpush.msra.mxu2 %v337_v16  ;;  %v303_v26 = vld [vmem:[%s3051_s1 + $0x48] sm:$0xff]  ;;  %v350_v29 = vld [vmem:[%s3051_s1 + $0x1c0] sm:$0xff]  ;;  %v333_v32 = vld [vmem:[%s3051_s1 + $0x138] sm:$0xff] }
  0x15   : > { %394 = vmatpush.msra.mxu1 %v322_v15  ;;  %435 = vmatpush.msra.mxu3 %v353_v17  ;;  %v319_v27 = vld [vmem:[%s3051_s1 + $0xc8] sm:$0xff]  ;;  %v302_v30 = vld [vmem:[%s3051_s1 + $0x40] sm:$0xff]  ;;  %v349_v33 = vld [vmem:[%s3051_s1 + $0x1b8] sm:$0xff] }
  0x16   : > { %375 = vmatpush.msra.mxu0 %v305_v18  ;;  %416 = vmatpush.msra.mxu2 %v336_v20  ;;  %v318_v31 = vld [vmem:[%s3051_s1 + $0xc0] sm:$0xff]  ;;  %v301_v34 = vld [vmem:[%s3051_s1 + $0x38] sm:$0xff]  ;;  %v332_v36 = vld [vmem:[%s3051_s1 + $0x130] sm:$0xff] }
  0x17   : > { %395 = vmatpush.msra.mxu1 %v321_v19  ;;  %436 = vmatpush.msra.mxu3 %v352_v21  ;;  %v317_v35 = vld [vmem:[%s3051_s1 + $0xb8] sm:$0xff]  ;;  %v348_v37 = vld [vmem:[%s3051_s1 + $0x1b0] sm:$0xff]  ;;  %v331_v40 = vld [vmem:[%s3051_s1 + $0x128] sm:$0xff] }
  0x18   : > { %376 = vmatpush.msra.mxu0 %v304_v22  ;;  %417 = vmatpush.msra.mxu2 %v335_v24  ;;  %v300_v38 = vld [vmem:[%s3051_s1 + $0x30] sm:$0xff]  ;;  %v347_v41 = vld [vmem:[%s3051_s1 + $0x1a8] sm:$0xff]  ;;  %v330_v44 = vld [vmem:[%s3051_s1 + $0x120] sm:$0xff] }
  0x19   : > { %396 = vmatpush.msra.mxu1 %v320_v23  ;;  %437 = vmatpush.msra.mxu3 %v351_v25  ;;  %v316_v39 = vld [vmem:[%s3051_s1 + $0xb0] sm:$0xff]  ;;  %v299_v42 = vld [vmem:[%s3051_s1 + $0x28] sm:$0xff]  ;;  %v346_v45 = vld [vmem:[%s3051_s1 + $0x1a0] sm:$0xff] }
  0x1a   : > { %377 = vmatpush.msra.mxu0 %v303_v26  ;;  %418 = vmatpush.msra.mxu2 %v334_v28  ;;  %v315_v43 = vld [vmem:[%s3051_s1 + $0xa8] sm:$0xff]  ;;  %v298_v46 = vld [vmem:[%s3051_s1 + $0x20] sm:$0xff]  ;;  %v329_v48 = vld [vmem:[%s3051_s1 + $0x118] sm:$0xff] }
  0x1b   : > { %397 = vmatpush.msra.mxu1 %v319_v27  ;;  %438 = vmatpush.msra.mxu3 %v350_v29  ;;  %v314_v47 = vld [vmem:[%s3051_s1 + $0xa0] sm:$0xff]  ;;  %v345_v49 = vld [vmem:[%s3051_s1 + $0x198] sm:$0xff]  ;;  %v328_v52 = vld [vmem:[%s3051_s1 + $0x110] sm:$0xff] }
  0x1c   : > { %378 = vmatpush.msra.mxu0 %v302_v30  ;;  %419 = vmatpush.msra.mxu2 %v333_v32  ;;  %v297_v50 = vld [vmem:[%s3051_s1 + $0x18] sm:$0xff]  ;;  %v344_v53 = vld [vmem:[%s3051_s1 + $0x190] sm:$0xff]  ;;  %v327_v56 = vld [vmem:[%s3051_s1 + $0x108] sm:$0xff] }
  0x1d   : > { %398 = vmatpush.msra.mxu1 %v318_v31  ;;  %439 = vmatpush.msra.mxu3 %v349_v33  ;;  %v313_v51 = vld [vmem:[%s3051_s1 + $0x98] sm:$0xff]  ;;  %v296_v54 = vld [vmem:[%s3051_s1 + $0x10] sm:$0xff]  ;;  %v343_v57 = vld [vmem:[%s3051_s1 + $0x188] sm:$0xff] }
  0x1e   : > { %379 = vmatpush.msra.mxu0 %v301_v34  ;;  %420 = vmatpush.msra.mxu2 %v332_v36  ;;  %v312_v55 = vld [vmem:[%s3051_s1 + $0x90] sm:$0xff]  ;;  %v295_v58 = vld [vmem:[%s3051_s1 + $0x8] sm:$0xff]  ;;  %v326_v60 = vld [vmem:[%s3051_s1 + $0x100] sm:$0xff] }
  0x1f   : > { %399 = vmatpush.msra.mxu1 %v317_v35  ;;  %440 = vmatpush.msra.mxu3 %v348_v37  ;;  %v311_v59 = vld [vmem:[%s3051_s1 + $0x88] sm:$0xff]  ;;  %v342_v61 = vld [vmem:[%s3051_s1 + $0x180] sm:$0xff]  ;;  %v1803_v62 = vld [vmem:[%s3051_s1 + $0x378] sm:$0xff] }
  0x20   : > { %380 = vmatpush.msra.mxu0 %v300_v38  ;;  %421 = vmatpush.msra.mxu2 %v331_v40  ;;  %v1819_v63 = vld [vmem:[%s3051_s1 + $0x3f8] sm:$0xff]  ;;  %v294_v0 = vld [vmem:[%s3051_s1] sm:$0xff]  ;;  %v1802_v2 = vld [vmem:[%s3051_s1 + $0x370] sm:$0xff] }
  0x21   : > { %400 = vmatpush.msra.mxu1 %v316_v39  ;;  %441 = vmatpush.msra.mxu3 %v347_v41  ;;  %v310_v1 = vld [vmem:[%s3051_s1 + $0x80] sm:$0xff]  ;;  %v1771_v3 = vld [vmem:[%s3051_s1 + $0x278] sm:$0xff]  ;;  %v1818_v5 = vld [vmem:[%s3051_s1 + $0x3f0] sm:$0xff] }
  0x22   : > { %381 = vmatpush.msra.mxu0 %v299_v42  ;;  %422 = vmatpush.msra.mxu2 %v330_v44  ;;  %v1787_v4 = vld [vmem:[%s3051_s1 + $0x2f8] sm:$0xff]  ;;  %v1801_v6 = vld [vmem:[%s3051_s1 + $0x368] sm:$0xff]  ;;  %v1770_v7 = vld [vmem:[%s3051_s1 + $0x270] sm:$0xff] }
  0x23   : > { %401 = vmatpush.msra.mxu1 %v315_v43  ;;  %442 = vmatpush.msra.mxu3 %v346_v45  ;;  %v1786_v8 = vld [vmem:[%s3051_s1 + $0x2f0] sm:$0xff]  ;;  %v1817_v9 = vld [vmem:[%s3051_s1 + $0x3e8] sm:$0xff]  ;;  %v1800_v10 = vld [vmem:[%s3051_s1 + $0x360] sm:$0xff] }
  0x24   : > { %382 = vmatpush.msra.mxu0 %v298_v46  ;;  %423 = vmatpush.msra.mxu2 %v329_v48  ;;  %v1769_v11 = vld [vmem:[%s3051_s1 + $0x268] sm:$0xff]  ;;  %v1816_v14 = vld [vmem:[%s3051_s1 + $0x3e0] sm:$0xff]  ;;  %v1799_v15 = vld [vmem:[%s3051_s1 + $0x358] sm:$0xff] }
  0x25   : > { %402 = vmatpush.msra.mxu1 %v314_v47  ;;  %443 = vmatpush.msra.mxu3 %v345_v49  ;;  %v293_v12 = vld [vmem:[%s276_s11 + $0x8] sm:$0x77]  ;;  %v1768_v16 = vld [vmem:[%s3051_s1 + $0x260] sm:$0xff]  ;;  %v1815_v18 = vld [vmem:[%s3051_s1 + $0x3d8] sm:$0xff] }
  0x26   : > { %383 = vmatpush.msra.mxu0 %v297_v50  ;;  %424 = vmatpush.msra.mxu2 %v328_v52  ;;  %v1785_v13 = vld [vmem:[%s3051_s1 + $0x2e8] sm:$0xff]  ;;  %362 = vst [vmem:[#allocation1 + $0x10] ss:$2 sm:$0xff] %v293_v12  ;;  %v1784_v17 = vld [vmem:[%s3051_s1 + $0x2e0] sm:$0xff]  ;;  %v1798_v20 = vld [vmem:[%s3051_s1 + $0x350] sm:$0xff] }
  0x27   : > { %403 = vmatpush.msra.mxu1 %v313_v51  ;;  %444 = vmatpush.msra.mxu3 %v344_v53  ;;  %v292_v19 = vld [vmem:[%s276_s11] sm:$0x77]  ;;  %v1767_v21 = vld [vmem:[%s3051_s1 + $0x258] sm:$0xff]  ;;  %v1814_v23 = vld [vmem:[%s3051_s1 + $0x3d0] sm:$0xff] }
  0x28   : > { %384 = vmatpush.msra.mxu0 %v296_v54  ;;  %425 = vmatpush.msra.mxu2 %v327_v56  ;;  %360 = vst [vmem:[#allocation1] ss:$2 sm:$0xff] %v292_v19  ;;  %v1783_v22 = vld [vmem:[%s3051_s1 + $0x2d8] sm:$0xff]  ;;  %v1797_v24 = vld [vmem:[%s3051_s1 + $0x348] sm:$0xff]  ;;  %v1766_v25 = vld [vmem:[%s3051_s1 + $0x250] sm:$0xff] }
  0x29   : > { %404 = vmatpush.msra.mxu1 %v312_v55  ;;  %445 = vmatpush.msra.mxu3 %v343_v57  ;;  %v1782_v26 = vld [vmem:[%s3051_s1 + $0x2d0] sm:$0xff]  ;;  %v1796_v27 = vld [vmem:[%s3051_s1 + $0x340] sm:$0xff]  ;;  %v1813_v28 = vld [vmem:[%s3051_s1 + $0x3c8] sm:$0xff] }
  0x2a   : > { %385 = vmatpush.msra.mxu0 %v295_v58  ;;  %426 = vmatpush.msra.mxu2 %v326_v60  ;;  %v1765_v29 = vld [vmem:[%s3051_s1 + $0x248] sm:$0xff]  ;;  %v1795_v33 = vld [vmem:[%s3051_s1 + $0x338] sm:$0xff]  ;;  %v1812_v34 = vld [vmem:[%s3051_s1 + $0x3c0] sm:$0xff] }
  0x2b   : > { %405 = vmatpush.msra.mxu1 %v311_v59  ;;  %446 = vmatpush.msra.mxu3 %v342_v61  ;;  %v1781_v32 = vld [vmem:[%s3051_s1 + $0x2c8] sm:$0xff]  ;;  %v1764_v35 = vld [vmem:[%s3051_s1 + $0x240] sm:$0xff]  ;;  %v1811_v37 = vld [vmem:[%s3051_s1 + $0x3b8] sm:$0xff] }
  0x2c   : > { %567 = vmatpush.msrb.mxu2 %v1803_v62  ;;  %386 = vmatpush.msra.mxu0 %v294_v0  ;;  %v1780_v36 = vld [vmem:[%s3051_s1 + $0x2c0] sm:$0xff]  ;;  %v1794_v40 = vld [vmem:[%s3051_s1 + $0x330] sm:$0xff]  ;;  %v1763_v41 = vld [vmem:[%s3051_s1 + $0x238] sm:$0xff] }
  0x2d   : > { %587 = vmatpush.msrb.mxu3 %v1819_v63  ;;  %406 = vmatpush.msra.mxu1 %v310_v1  ;;  %v365_v30 = vld.sshfl [vmem:[#allocation1 + $0x10] sm:$0xff pattern:$0x75316420]  ;;  %v366_v31 = vld.sshfl [vmem:[#allocation1 + $0x18] sm:$0xff pattern:$0x75316420] }
  0x2e   : > { %568 = vmatpush.msrb.mxu2 %v1802_v2  ;;  %527 = vmatpush.msrb.mxu0 %v1771_v3  ;;  %518 = vst [vmem:[#allocation1 + $0x10] ss:$2 sm:$0xff] %v293_v12  ;;  %v1779_v42 = vld [vmem:[%s3051_s1 + $0x2b8] sm:$0xff]  ;;  %v1810_v43 = vld [vmem:[%s3051_s1 + $0x3b0] sm:$0xff]  ;;  %v1793_v44 = vld [vmem:[%s3051_s1 + $0x328] sm:$0xff] }
  0x2f   : > { %547 = vmatpush.msrb.mxu1 %v1787_v4  ;;  %588 = vmatpush.msrb.mxu3 %v1818_v5  ;;  %v363_v38 = vld.sshfl [vmem:[#allocation1] sm:$0xff pattern:$0x75316420]  ;;  %v364_v39 = vld.sshfl [vmem:[#allocation1 + $0x8] sm:$0xff pattern:$0x75316420] }
  0x30   : > { %569 = vmatpush.msrb.mxu2 %v1801_v6  ;;  %528 = vmatpush.msrb.mxu0 %v1770_v7  ;;  %516 = vst [vmem:[#allocation1] ss:$2 sm:$0xff] %v292_v19  ;;  %v1762_v45 = vld [vmem:[%s3051_s1 + $0x230] sm:$0xff]  ;;  %v1809_v47 = vld [vmem:[%s3051_s1 + $0x3a8] sm:$0xff]  ;;  %v1792_v48 = vld [vmem:[%s3051_s1 + $0x320] sm:$0xff] }
  0x31   : > { %548 = vmatpush.msrb.mxu1 %v1786_v8  ;;  %589 = vmatpush.msrb.mxu3 %v1817_v9  ;;  %v1778_v46 = vld [vmem:[%s3051_s1 + $0x2b0] sm:$0xff]  ;;  %v1761_v49 = vld [vmem:[%s3051_s1 + $0x228] sm:$0xff]  ;;  %v1791_v51 = vld [vmem:[%s3051_s1 + $0x318] sm:$0xff] }
  0x32   : > { %570 = vmatpush.msrb.mxu2 %v1800_v10  ;;  %529 = vmatpush.msrb.mxu0 %v1769_v11  ;;  %v1777_v50 = vld [vmem:[%s3051_s1 + $0x2a8] sm:$0xff]  ;;  %v1808_v52 = vld [vmem:[%s3051_s1 + $0x3a0] sm:$0xff]  ;;  %v1790_v55 = vld [vmem:[%s3051_s1 + $0x310] sm:$0xff] }
  0x33   : > { %549 = vmatpush.msrb.mxu1 %v1785_v13  ;;  %590 = vmatpush.msrb.mxu3 %v1816_v14  ;;  %v1760_v53 = vld [vmem:[%s3051_s1 + $0x220] sm:$0xff]  ;;  %v1807_v56 = vld [vmem:[%s3051_s1 + $0x398] sm:$0xff]  ;;  %v1789_v59 = vld [vmem:[%s3051_s1 + $0x308] sm:$0xff] }
  0x34   : > { %571 = vmatpush.msrb.mxu2 %v1799_v15  ;;  %530 = vmatpush.msrb.mxu0 %v1768_v16  ;;  %v1776_v54 = vld [vmem:[%s3051_s1 + $0x2a0] sm:$0xff]  ;;  %v1759_v57 = vld [vmem:[%s3051_s1 + $0x218] sm:$0xff]  ;;  %v1806_v60 = vld [vmem:[%s3051_s1 + $0x390] sm:$0xff] }
  0x35   : > { %550 = vmatpush.msrb.mxu1 %v1784_v17  ;;  %591 = vmatpush.msrb.mxu3 %v1815_v18  ;;  %v1775_v58 = vld [vmem:[%s3051_s1 + $0x298] sm:$0xff]  ;;  %v1758_v61 = vld [vmem:[%s3051_s1 + $0x210] sm:$0xff]  ;;  %v1788_v63 = vld [vmem:[%s3051_s1 + $0x300] sm:$0xff] }
  0x36   : > { %572 = vmatpush.msrb.mxu2 %v1798_v20  ;;  %531 = vmatpush.msrb.mxu0 %v1767_v21  ;;  %v1774_v62 = vld [vmem:[%s3051_s1 + $0x290] sm:$0xff]  ;;  %v1805_v0 = vld [vmem:[%s3051_s1 + $0x388] sm:$0xff]  ;;  %v1804_v4 = vld [vmem:[%s3051_s1 + $0x380] sm:$0xff] }
  0x37   : > { %551 = vmatpush.msrb.mxu1 %v1783_v22  ;;  %592 = vmatpush.msrb.mxu3 %v1814_v23  ;;  %v521_v1 = vld.sshfl [vmem:[#allocation1 + $0x10] sm:$0xff pattern:$0x75316420]  ;;  %v1757_v2 = vld [vmem:[%s3051_s1 + $0x208] sm:$0xff]  ;;  %v1756_v6 = vld [vmem:[%s3051_s1 + $0x200] sm:$0xff] }
  0x38   : > { %573 = vmatpush.msrb.mxu2 %v1797_v24  ;;  %532 = vmatpush.msrb.mxu0 %v1766_v25  ;;  %v1773_v3 = vld [vmem:[%s3051_s1 + $0x288] sm:$0xff]  ;;  %v522_v5 = vld.sshfl [vmem:[#allocation1 + $0x18] sm:$0xff pattern:$0x75316420]  ;;  %v1772_v7 = vld [vmem:[%s3051_s1 + $0x280] sm:$0xff] }
  0x39   : > { %552 = vmatpush.msrb.mxu1 %v1782_v26  ;;  %593 = vmatpush.msrb.mxu3 %v1813_v28  ;;  %v519_v8 = vld.sshfl [vmem:[#allocation1] sm:$0xff pattern:$0x75316420]  ;;  %v520_v9 = vld.sshfl [vmem:[#allocation1 + $0x8] sm:$0xff pattern:$0x75316420] }
  0x3a   : > { %574 = vmatpush.msrb.mxu2 %v1796_v27  ;;  %533 = vmatpush.msrb.mxu0 %v1765_v29  ;;  %v801_v10 = vld [vmem:[%s2562_s24 + $0x3c8] sm:$0xff]  ;;  %v802_v11 = vld [vmem:[%s2562_s24 + $0x3d0] sm:$0xff]  ;;  %v800_v16 = vld [vmem:[%s2562_s24 + $0x3c0] sm:$0xff] }
  0x3b   : > { %553 = vmatpush.msrb.mxu1 %v1781_v32  ;;  %594 = vmatpush.msrb.mxu3 %v1812_v34  ;;  %v793_v12 = vld [vmem:[%s2562_s24 + $0x388] sm:$0xff]  ;;  %v794_v13 = vld [vmem:[%s2562_s24 + $0x390] sm:$0xff]  ;;  %v792_v19 = vld [vmem:[%s2562_s24 + $0x380] sm:$0xff] }
  0x3c   : > { %575 = vmatpush.msrb.mxu2 %v1795_v33  ;;  %534 = vmatpush.msrb.mxu0 %v1764_v35  ;;  %v785_v14 = vld [vmem:[%s2562_s24 + $0x348] sm:$0xff]  ;;  %v786_v15 = vld [vmem:[%s2562_s24 + $0x350] sm:$0xff]  ;;  %v784_v22 = vld [vmem:[%s2562_s24 + $0x340] sm:$0xff] }
  0x3d   : > { %554 = vmatpush.msrb.mxu1 %v1780_v36  ;;  %595 = vmatpush.msrb.mxu3 %v1811_v37  ;;  %v777_v17 = vld [vmem:[%s2562_s24 + $0x308] sm:$0xff]  ;;  %v778_v18 = vld [vmem:[%s2562_s24 + $0x310] sm:$0xff]  ;;  %v776_v25 = vld [vmem:[%s2562_s24 + $0x300] sm:$0xff] }
  0x3e   : > { %576 = vmatpush.msrb.mxu2 %v1794_v40  ;;  %535 = vmatpush.msrb.mxu0 %v1763_v41  ;;  %v769_v20 = vld [vmem:[%s2562_s24 + $0x2c8] sm:$0xff]  ;;  %v770_v21 = vld [vmem:[%s2562_s24 + $0x2d0] sm:$0xff]  ;;  %v768_v28 = vld [vmem:[%s2562_s24 + $0x2c0] sm:$0xff] }
  0x3f   : > { %555 = vmatpush.msrb.mxu1 %v1779_v42  ;;  %596 = vmatpush.msrb.mxu3 %v1810_v43  ;;  %v761_v23 = vld [vmem:[%s2562_s24 + $0x288] sm:$0xff]  ;;  %v762_v24 = vld [vmem:[%s2562_s24 + $0x290] sm:$0xff]  ;;  %v752_v34 = vld [vmem:[%s2562_s24 + $0x240] sm:$0xff] }
  0x40   : > { %577 = vmatpush.msrb.mxu2 %v1793_v44  ;;  %536 = vmatpush.msrb.mxu0 %v1762_v45  ;;  %v753_v26 = vld [vmem:[%s2562_s24 + $0x248] sm:$0xff]  ;;  %v754_v27 = vld [vmem:[%s2562_s24 + $0x250] sm:$0xff]  ;;  %v744_v37 = vld [vmem:[%s2562_s24 + $0x200] sm:$0xff] }
  0x41   : > { %556 = vmatpush.msrb.mxu1 %v1778_v46  ;;  %597 = vmatpush.msrb.mxu3 %v1809_v47  ;;  %v745_v29 = vld [vmem:[%s2562_s24 + $0x208] sm:$0xff]  ;;  %v738_v33 = vld [vmem:[%s2562_s24 + $0x1d0] sm:$0xff]  ;;  %v736_v40 = vld [vmem:[%s2562_s24 + $0x1c0] sm:$0xff] }
  0x42   : > { %578 = vmatpush.msrb.mxu2 %v1792_v48  ;;  %537 = vmatpush.msrb.mxu0 %v1761_v49  ;;  %v737_v32 = vld [vmem:[%s2562_s24 + $0x1c8] sm:$0xff]  ;;  %v730_v36 = vld [vmem:[%s2562_s24 + $0x190] sm:$0xff]  ;;  %v728_v45 = vld [vmem:[%s2562_s24 + $0x180] sm:$0xff] }
  0x43   : > { %427 = vmatmul.f32.vlgmr.msra.gmra.mxu2 %v365_v30  ;;  %557 = vmatpush.msrb.mxu1 %v1777_v50  ;;  %v746_v30 = vld [vmem:[%s2562_s24 + $0x210] sm:$0xff]  ;;  %v729_v35 = vld [vmem:[%s2562_s24 + $0x188] sm:$0xff]  ;;  %v720_v49 = vld [vmem:[%s2562_s24 + $0x140] sm:$0xff] }
  0x44   : > { %579 = vmatpush.msrb.mxu2 %v1791_v51  ;;  %598 = vmatpush.msrb.mxu3 %v1808_v52  ;;  %v713_v41 = vld [vmem:[%s2562_s24 + $0x108] sm:$0xff]  ;;  %v714_v43 = vld [vmem:[%s2562_s24 + $0x110] sm:$0xff] }
  0x45   : > { %447 = vmatmul.f32.vlgmr.msra.gmra.mxu3 %v366_v31  ;;  %538 = vmatpush.msrb.mxu0 %v1760_v53  ;;  %v760_v31 = vld [vmem:[%s2562_s24 + $0x280] sm:$0xff]  ;;  %v705_v46 = vld [vmem:[%s2562_s24 + $0xc8] sm:$0xff]  ;;  %v706_v48 = vld [vmem:[%s2562_s24 + $0xd0] sm:$0xff] }
  0x46   : > { %558 = vmatpush.msrb.mxu1 %v1776_v54  ;;  %580 = vmatpush.msrb.mxu2 %v1790_v55  ;;  %v697_v50 = vld [vmem:[%s2562_s24 + $0x88] sm:$0xff]  ;;  %v698_v52 = vld [vmem:[%s2562_s24 + $0x90] sm:$0xff]  ;;  %v712_v53 = vld [vmem:[%s2562_s24 + $0x100] sm:$0xff] }
  0x47   : > { %599 = vmatpush.msrb.mxu3 %v1807_v56  ;;  %387 = vmatmul.f32.vlgmr.msra.gmra.mxu0 %v363_v38  ;;  %v721_v38 = vld [vmem:[%s2562_s24 + $0x148] sm:$0xff]  ;;  %v690_v55 = vld [vmem:[%s2562_s24 + $0x50] sm:$0xff]  ;;  %v704_v56 = vld [vmem:[%s2562_s24 + $0xc0] sm:$0xff] }
  0x48   : > { %407 = vmatmul.f32.vlgmr.msra.gmra.mxu1 %v364_v39  ;;  %539 = vmatpush.msrb.mxu0 %v1759_v57  ;;  %v722_v39 = vld [vmem:[%s2562_s24 + $0x150] sm:$0xff]  ;;  %v689_v54 = vld [vmem:[%s2562_s24 + $0x48] sm:$0xff] }
  0x49   : > { %559 = vmatpush.msrb.mxu1 %v1775_v58  ;;  %581 = vmatpush.msrb.mxu2 %v1789_v59  ;;  %v681_v57 = vld [vmem:[%s2562_s24 + $0x8] sm:$0xff]  ;;  %v682_v58 = vld [vmem:[%s2562_s24 + $0x10] sm:$0xff] }
  0x4a   : > { %600 = vmatpush.msrb.mxu3 %v1806_v60  ;;  %540 = vmatpush.msrb.mxu0 %v1758_v61  ;;  %v805_v59 = vld [vmem:[%s2562_s24 + $0x3e8] sm:$0xff]  ;;  %v806_v60 = vld [vmem:[%s2562_s24 + $0x3f0] sm:$0xff] }
  0x4b   : > { %560 = vmatpush.msrb.mxu1 %v1774_v62  ;;  %582 = vmatpush.msrb.mxu2 %v1788_v63  ;;  %v696_v62 = vld [vmem:[%s2562_s24 + $0x80] sm:$0xff] }
  0x4c   : > { %601 = vmatpush.msrb.mxu3 %v1805_v0  ;;  %583 = vmatmul.f32.vlgmr.msrb.gmra.mxu2 %v521_v1  ;;  %v797_v1 = vld [vmem:[%s2562_s24 + $0x3a8] sm:$0xff] }
  0x4d   : > { %541 = vmatpush.msrb.mxu0 %v1757_v2  ;;  %561 = vmatpush.msrb.mxu1 %v1773_v3  ;;  %v798_v2 = vld [vmem:[%s2562_s24 + $0x3b0] sm:$0xff] }
  0x4e   : > { %602 = vmatpush.msrb.mxu3 %v1804_v4  ;;  %833 = vmatpush.msra.mxu2 %v801_v10 }
  0x4f   : > { %603 = vmatmul.f32.vlgmr.msrb.gmra.mxu3 %v522_v5  ;;  %542 = vmatpush.msrb.mxu0 %v1756_v6  ;;  %v688_v5 = vld [vmem:[%s2562_s24 + $0x40] sm:$0xff]  ;;  %v789_v6 = vld [vmem:[%s2562_s24 + $0x368] sm:$0xff] }
  0x50   : > { %562 = vmatpush.msrb.mxu1 %v1772_v7  ;;  %543 = vmatmul.f32.vlgmr.msrb.gmra.mxu0 %v519_v8  ;;  %v790_v7 = vld [vmem:[%s2562_s24 + $0x370] sm:$0xff] }
  0x51   : > { %563 = vmatmul.f32.vlgmr.msrb.gmra.mxu1 %v520_v9  ;;  %853 = vmatpush.msra.mxu3 %v802_v11  ;;  %v680_v9 = vld [vmem:[%s2562_s24] sm:$0xff] }
  0x52   : > { %834 = vmatpush.msra.mxu2 %v793_v12  ;;  %813 = vmatpush.msra.mxu1 %v800_v16  ;;  %v804_v12 = vld [vmem:[%s2562_s24 + $0x3e0] sm:$0xff]  ;;  %v803_v16 = vld [vmem:[%s2562_s24 + $0x3d8] sm:$0xff] }
  0x53   : > { %854 = vmatpush.msra.mxu3 %v794_v13  ;;  %v781_v13 = vld [vmem:[%s2562_s24 + $0x328] sm:$0xff] }
  0x54   : > { %835 = vmatpush.msra.mxu2 %v785_v14  ;;  %814 = vmatpush.msra.mxu1 %v792_v19  ;;  %v782_v14 = vld [vmem:[%s2562_s24 + $0x330] sm:$0xff] }
  0x55   : > { %855 = vmatpush.msra.mxu3 %v786_v15  ;;  %v774_v19 = vld [vmem:[%s2562_s24 + $0x2f0] sm:$0xff] }
  0x56   : > { %836 = vmatpush.msra.mxu2 %v777_v17  ;;  %815 = vmatpush.msra.mxu1 %v784_v22  ;;  %v796_v17 = vld [vmem:[%s2562_s24 + $0x3a0] sm:$0xff] }
  0x57   : > { %856 = vmatpush.msra.mxu3 %v778_v18  ;;  %v773_v18 = vld [vmem:[%s2562_s24 + $0x2e8] sm:$0xff]  ;;  %v788_v22 = vld [vmem:[%s2562_s24 + $0x360] sm:$0xff] }
  0x58   : > { %837 = vmatpush.msra.mxu2 %v769_v20  ;;  %816 = vmatpush.msra.mxu1 %v776_v25  ;;  %v787_v25 = vld [vmem:[%s2562_s24 + $0x358] sm:$0xff] }
  0x59   : > { %857 = vmatpush.msra.mxu3 %v770_v21  ;;  %v795_v21 = vld [vmem:[%s2562_s24 + $0x398] sm:$0xff] }
  0x5a   : > { %838 = vmatpush.msra.mxu2 %v761_v23  ;;  %817 = vmatpush.msra.mxu1 %v768_v28  ;;  %v765_v23 = vld [vmem:[%s2562_s24 + $0x2a8] sm:$0xff]  ;;  %v758_v28 = vld [vmem:[%s2562_s24 + $0x270] sm:$0xff] }
  0x5b   : > { %858 = vmatpush.msra.mxu3 %v762_v24  ;;  %v766_v24 = vld [vmem:[%s2562_s24 + $0x2b0] sm:$0xff] }
  0x5c   : > { %839 = vmatpush.msra.mxu2 %v753_v26  ;;  %818 = vmatpush.msra.mxu1 %v760_v31  ;;  %v780_v26 = vld [vmem:[%s2562_s24 + $0x320] sm:$0xff]  ;;  %v749_v31 = vld [vmem:[%s2562_s24 + $0x228] sm:$0xff] }
  0x5d   : > { %859 = vmatpush.msra.mxu3 %v754_v27  ;;  %v757_v27 = vld [vmem:[%s2562_s24 + $0x268] sm:$0xff] }
  0x5e   : > { %840 = vmatpush.msra.mxu2 %v745_v29  ;;  %819 = vmatpush.msra.mxu1 %v752_v34  ;;  %v779_v29 = vld [vmem:[%s2562_s24 + $0x318] sm:$0xff]  ;;  %v764_v34 = vld [vmem:[%s2562_s24 + $0x2a0] sm:$0xff] }
  0x5f   : > { %860 = vmatpush.msra.mxu3 %v746_v30  ;;  %v772_v30 = vld [vmem:[%s2562_s24 + $0x2e0] sm:$0xff] }
  0x60   : > { %841 = vmatpush.msra.mxu2 %v737_v32  ;;  %820 = vmatpush.msra.mxu1 %v744_v37  ;;  %v750_v32 = vld [vmem:[%s2562_s24 + $0x230] sm:$0xff]  ;;  %v763_v37 = vld [vmem:[%s2562_s24 + $0x298] sm:$0xff] }
  0x61   : > { %861 = vmatpush.msra.mxu3 %v738_v33  ;;  %v771_v33 = vld [vmem:[%s2562_s24 + $0x2d8] sm:$0xff] }
  0x62   : > { %842 = vmatpush.msra.mxu2 %v729_v35  ;;  %821 = vmatpush.msra.mxu1 %v736_v40  ;;  %v741_v35 = vld [vmem:[%s2562_s24 + $0x1e8] sm:$0xff]  ;;  %v734_v40 = vld [vmem:[%s2562_s24 + $0x1b0] sm:$0xff] }
  0x63   : > { %862 = vmatpush.msra.mxu3 %v730_v36  ;;  %v742_v36 = vld [vmem:[%s2562_s24 + $0x1f0] sm:$0xff] }
  0x64   : > { %843 = vmatpush.msra.mxu2 %v721_v38  ;;  %822 = vmatpush.msra.mxu1 %v728_v45  ;;  %v756_v38 = vld [vmem:[%s2562_s24 + $0x260] sm:$0xff]  ;;  %v747_v45 = vld [vmem:[%s2562_s24 + $0x218] sm:$0xff] }
  0x65   : > { %863 = vmatpush.msra.mxu3 %v722_v39  ;;  %v733_v39 = vld [vmem:[%s2562_s24 + $0x1a8] sm:$0xff] }
  0x66   : > { %844 = vmatpush.msra.mxu2 %v713_v41  ;;  %823 = vmatpush.msra.mxu1 %v720_v49  ;;  %v755_v41 = vld [vmem:[%s2562_s24 + $0x258] sm:$0xff] }
  0x67   : > { %864 = vmatpush.msra.mxu3 %v714_v43  ;;  %v725_v43 = vld [vmem:[%s2562_s24 + $0x168] sm:$0xff]  ;;  %v739_v49 = vld [vmem:[%s2562_s24 + $0x1d8] sm:$0xff] }
  0x68   : > { %845 = vmatpush.msra.mxu2 %v705_v46  ;;  %824 = vmatpush.msra.mxu1 %v712_v53  ;;  %v740_v46 = vld [vmem:[%s2562_s24 + $0x1e0] sm:$0xff]  ;;  %v731_v53 = vld [vmem:[%s2562_s24 + $0x198] sm:$0xff] }
  0x69   : > { %865 = vmatpush.msra.mxu3 %v706_v48  ;;  %v718_v48 = vld [vmem:[%s2562_s24 + $0x130] sm:$0xff] }
  0x6a   : > { %846 = vmatpush.msra.mxu2 %v697_v50  ;;  %825 = vmatpush.msra.mxu1 %v704_v56  ;;  %v732_v50 = vld [vmem:[%s2562_s24 + $0x1a0] sm:$0xff]  ;;  %v702_v56 = vld [vmem:[%s2562_s24 + $0xb0] sm:$0xff] }
  0x6b   : > { %866 = vmatpush.msra.mxu3 %v698_v52  ;;  %v710_v52 = vld [vmem:[%s2562_s24 + $0xf0] sm:$0xff] }
  0x6c   : > { %847 = vmatpush.msra.mxu2 %v689_v54  ;;  %826 = vmatpush.msra.mxu1 %v696_v62  ;;  %v724_v54 = vld [vmem:[%s2562_s24 + $0x160] sm:$0xff] }
  0x6d   : > { %867 = vmatpush.msra.mxu3 %v690_v55  ;;  %v701_v55 = vld [vmem:[%s2562_s24 + $0xa8] sm:$0xff]  ;;  %v708_v62 = vld [vmem:[%s2562_s24 + $0xe0] sm:$0xff] }
  0x6e   : > { %848 = vmatpush.msra.mxu2 %v681_v57  ;;  %827 = vmatpush.msra.mxu1 %v688_v5  ;;  %v723_v57 = vld [vmem:[%s2562_s24 + $0x158] sm:$0xff]  ;;  %v700_v5 = vld [vmem:[%s2562_s24 + $0xa0] sm:$0xff] }
  0x6f   : > { %868 = vmatpush.msra.mxu3 %v682_v58  ;;  %v716_v58 = vld [vmem:[%s2562_s24 + $0x120] sm:$0xff] }
  0x70   : > { %913 = vmatpush.msrb.mxu2 %v805_v59  ;;  %828 = vmatpush.msra.mxu1 %v680_v9  ;;  %v693_v59 = vld [vmem:[%s2562_s24 + $0x68] sm:$0xff]  ;;  %v692_v9 = vld [vmem:[%s2562_s24 + $0x60] sm:$0xff] }
  0x71   : > { %933 = vmatpush.msrb.mxu3 %v806_v60  ;;  %v694_v60 = vld [vmem:[%s2562_s24 + $0x70] sm:$0xff] }
  0x72   : > { %914 = vmatpush.msrb.mxu2 %v797_v1  ;;  %893 = vmatpush.msrb.mxu1 %v804_v12  ;;  %v2674_v1 = vld [vmem:[%s3053_s3] sm:$0xf]  ;;  %v1928_v12 = vld [vmem:[%s2562_s24 + $0x750] sm:$0xff] }
  0x73   : > { %934 = vmatpush.msrb.mxu3 %v798_v2  ;;  %v707_v2 = vld [vmem:[%s2562_s24 + $0xd8] sm:$0xff]  ;;  %849 = vmatmul.f32.vlgmr.msra.gmra.mxu2 %v2674_v1 }
  0x74   : > { %915 = vmatpush.msrb.mxu2 %v789_v6  ;;  %894 = vmatpush.msrb.mxu1 %v796_v17  ;;  %v699_v6 = vld [vmem:[%s2562_s24 + $0x98] sm:$0xff]  ;;  %v1919_v17 = vld [vmem:[%s2562_s24 + $0x708] sm:$0xff] }
  0x75   : > { %935 = vmatpush.msrb.mxu3 %v790_v7  ;;  %v1935_v7 = vld [vmem:[%s2562_s24 + $0x788] sm:$0xff]  ;;  %829 = vmatmul.f32.vlgmr.msra.gmra.mxu1 %v2674_v1 }
  0x76   : > { %916 = vmatpush.msrb.mxu2 %v781_v13  ;;  %895 = vmatpush.msrb.mxu1 %v788_v22  ;;  %v684_v13 = vld [vmem:[%s2562_s24 + $0x20] sm:$0xff]  ;;  %v791_v22 = vld [vmem:[%s2562_s24 + $0x378] sm:$0xff] }
  0x77   : > { %936 = vmatpush.msrb.mxu3 %v782_v14  ;;  %v683_v14 = vld [vmem:[%s2562_s24 + $0x18] sm:$0xff] }
  0x78   : > { %917 = vmatpush.msrb.mxu2 %v773_v18  ;;  %896 = vmatpush.msrb.mxu1 %v780_v26  ;;  %v799_v18 = vld [vmem:[%s2562_s24 + $0x3b8] sm:$0xff] }
  0x79   : > { %937 = vmatpush.msrb.mxu3 %v774_v19  ;;  %v1920_v19 = vld [vmem:[%s2562_s24 + $0x710] sm:$0xff]  ;;  %v783_v26 = vld [vmem:[%s2562_s24 + $0x338] sm:$0xff] }
  0x7a   : > { %918 = vmatpush.msrb.mxu2 %v765_v23  ;;  %897 = vmatpush.msrb.mxu1 %v772_v30  ;;  %v1912_v23 = vld [vmem:[%s2562_s24 + $0x6d0] sm:$0xff]  ;;  %v775_v30 = vld [vmem:[%s2562_s24 + $0x2f8] sm:$0xff] }
  0x7b   : > { %938 = vmatpush.msrb.mxu3 %v766_v24  ;;  %v1926_v24 = vld [vmem:[%s2562_s24 + $0x740] sm:$0xff] }
  0x7c   : > { %919 = vmatpush.msrb.mxu2 %v757_v27  ;;  %898 = vmatpush.msrb.mxu1 %v764_v34  ;;  %v1904_v27 = vld [vmem:[%s2562_s24 + $0x690] sm:$0xff]  ;;  %v767_v34 = vld [vmem:[%s2562_s24 + $0x2b8] sm:$0xff] }
  0x7d   : > { %939 = vmatpush.msrb.mxu3 %v758_v28  ;;  %v1918_v28 = vld [vmem:[%s2562_s24 + $0x700] sm:$0xff] }
  0x7e   : > { %920 = vmatpush.msrb.mxu2 %v749_v31  ;;  %899 = vmatpush.msrb.mxu1 %v756_v38  ;;  %v1896_v31 = vld [vmem:[%s2562_s24 + $0x650] sm:$0xff]  ;;  %v759_v38 = vld [vmem:[%s2562_s24 + $0x278] sm:$0xff] }
  0x7f   : > { %940 = vmatpush.msrb.mxu3 %v750_v32  ;;  %v1910_v32 = vld [vmem:[%s2562_s24 + $0x6c0] sm:$0xff] }
  0x80   : > { %921 = vmatpush.msrb.mxu2 %v741_v35  ;;  %869 = vmatmul.f32.vlgmr.msra.gmra.mxu3 %v2674_v1  ;;  %v1888_v35 = vld [vmem:[%s2562_s24 + $0x610] sm:$0xff] }
  0x81   : > { %941 = vmatpush.msrb.mxu3 %v742_v36  ;;  %v1902_v36 = vld [vmem:[%s2562_s24 + $0x680] sm:$0xff] }
  0x82   : > { %922 = vmatpush.msrb.mxu2 %v733_v39  ;;  %v1880_v39 = vld [vmem:[%s2562_s24 + $0x5d0] sm:$0xff] }
  0x83   : > { %942 = vmatpush.msrb.mxu3 %v734_v40  ;;  %v1894_v40 = vld [vmem:[%s2562_s24 + $0x640] sm:$0xff] }
  0x84   : > { %923 = vmatpush.msrb.mxu2 %v725_v43  ;;  %v1872_v43 = vld [vmem:[%s2562_s24 + $0x590] sm:$0xff] }
  0xc4   : > { %v388_v42 = vpop.f32.mrf.mxu0 }
  0xc5   : > { %v408_v44 = vpop.f32.mrf.mxu1 }
  0xc6   : > { %v428_v47 = vpop.f32.mrf.mxu2  ;;  %v409_v63 = vadd.f32 %v408_v44, %v388_v42  ;;  %v748_v42 = vld [vmem:[%s2562_s24 + $0x220] sm:$0xff]  ;;  %v726_v44 = vld [vmem:[%s2562_s24 + $0x170] sm:$0xff] }
  0xc7   : > { %900 = vmatpush.msrb.mxu1 %v748_v42  ;;  %943 = vmatpush.msrb.mxu3 %v726_v44  ;;  %v751_v42 = vld [vmem:[%s2562_s24 + $0x238] sm:$0xff]  ;;  %v1886_v44 = vld [vmem:[%s2562_s24 + $0x600] sm:$0xff] }
  0xc8   : > { %v448_v51 = vpop.f32.mrf.mxu3  ;;  %v429_v10 = vadd.f32 %v428_v47, %v409_v63  ;;  %v717_v47 = vld [vmem:[%s2562_s24 + $0x128] sm:$0xff] }
  0xc9   : > { %901 = vmatpush.msrb.mxu1 %v740_v46  ;;  %924 = vmatpush.msrb.mxu2 %v717_v47  ;;  %v685_v63 = vld [vmem:[%s2562_s24 + $0x28] sm:$0xff]  ;;  %v743_v46 = vld [vmem:[%s2562_s24 + $0x1f8] sm:$0xff]  ;;  %v1864_v47 = vld [vmem:[%s2562_s24 + $0x550] sm:$0xff] }
  0xca   : > { %v449_v20 = vadd.f32 %v448_v51, %v429_v10  ;;  %v709_v51 = vld [vmem:[%s2562_s24 + $0xe8] sm:$0xff]  ;;  %944 = vmatpush.msrb.mxu3 %v718_v48  ;;  %v691_v10 = vld [vmem:[%s2562_s24 + $0x58] sm:$0xff]  ;;  %v1878_v48 = vld [vmem:[%s2562_s24 + $0x5c0] sm:$0xff] }
  0xcb   : > { %902 = vmatpush.msrb.mxu1 %v732_v50  ;;  %925 = vmatpush.msrb.mxu2 %v709_v51  ;;  %v735_v50 = vld [vmem:[%s2562_s24 + $0x1b8] sm:$0xff]  ;;  %v1856_v51 = vld [vmem:[%s2562_s24 + $0x510] sm:$0xff] }
  0xcc   : > { %945 = vmatpush.msrb.mxu3 %v710_v52  ;;  %v1870_v52 = vld [vmem:[%s2562_s24 + $0x580] sm:$0xff] }
  0xcd   : > { %v544_v61 = vpop.f32.mrf.mxu0  ;;  %903 = vmatpush.msrb.mxu1 %v724_v54  ;;  %926 = vmatpush.msrb.mxu2 %v701_v55  ;;  %v727_v54 = vld [vmem:[%s2562_s24 + $0x178] sm:$0xff]  ;;  %v1848_v55 = vld [vmem:[%s2562_s24 + $0x4d0] sm:$0xff] }
  0xce   : > { %v564_v0 = vpop.f32.mrf.mxu1  ;;  %946 = vmatpush.msrb.mxu3 %v702_v56  ;;  %v1862_v56 = vld [vmem:[%s2562_s24 + $0x540] sm:$0xff] }
  0xcf   : > { %v565_v3 = vadd.f32 %v564_v0, %v544_v61  ;;  %v584_v4 = vpop.f32.mrf.mxu2  ;;  %v715_v61 = vld [vmem:[%s2562_s24 + $0x118] sm:$0xff]  ;;  %904 = vmatpush.msrb.mxu1 %v716_v58  ;;  %927 = vmatpush.msrb.mxu2 %v693_v59  ;;  %v686_v0 = vld [vmem:[%s2562_s24 + $0x30] sm:$0xff]  ;;  %v1839_v58 = vld [vmem:[%s2562_s24 + $0x488] sm:$0xff] }
  0xd0   : > { %947 = vmatpush.msrb.mxu3 %v694_v60  ;;  %v1840_v59 = vld [vmem:[%s2562_s24 + $0x490] sm:$0xff]  ;;  %v675_v60 = vld [vmem:[%s3054_s4] sm:$0xf] }
  0xd1   : > { %v585_v8 = vadd.f32 %v584_v4, %v565_v3  ;;  %905 = vmatpush.msrb.mxu1 %v708_v62  ;;  %928 = vmatpush.msrb.mxu2 %v685_v63  ;;  %v1943_v3 = vld [vmem:[%s2562_s24 + $0x7c8] sm:$0xff]  ;;  %v1944_v4 = vld [vmem:[%s2562_s24 + $0x7d0] sm:$0xff]  ;;  %v2112_v62 = vmov 0   ;;  %v1854_v63 = vld [vmem:[%s2562_s24 + $0x500] sm:$0xff] }
  0xd2   : > { %v604_v11 = vpop.f32.mrf.mxu3  ;;  %948 = vmatpush.msrb.mxu3 %v686_v0  ;;  %2095 = vset.pattern.permute.xlu0 %v2112_v62  ;;  %v1831_v0 = vld [vmem:[%s2562_s24 + $0x448] sm:$0xff]  ;;  %v1866_v62 = vld [vmem:[%s2562_s24 + $0x560] sm:$0xff] }
  0xd3   : > { %v605_v15 = vadd.f32 %v604_v11, %v585_v8  ;;  %1160 = vmatpush.msra.mxu2 %v1943_v3  ;;  %v1936_v8 = vld [vmem:[%s2562_s24 + $0x790] sm:$0xff]  ;;  %906 = vmatpush.msrb.mxu1 %v700_v5  ;;  %v1927_v11 = vld [vmem:[%s2562_s24 + $0x748] sm:$0xff]  ;;  %v703_v3 = vld [vmem:[%s2562_s24 + $0xb8] sm:$0xff] }
  0xd4   : > { %1180 = vmatpush.msra.mxu3 %v1944_v4  ;;  %810 = vperm.xlu0 %2095, %v675_v60   ;;  %v1846_v4 = vld [vmem:[%s2562_s24 + $0x4c0] sm:$0xff]  ;;  %v1823_v5 = vld [vmem:[%s2562_s24 + $0x408] sm:$0xff]  ;;  %v1852_v60 = vld [vmem:[%s2562_s24 + $0x4f0] sm:$0xff] }
  0xd5   : > { %1820 = vmatpush.xpose.msk.msra.mxu0 %vm607_vm0, %v605_v15  ;;  %1161 = vmatpush.msra.mxu2 %v1935_v7  ;;  %v807_v15 = vld [vmem:[%s2562_s24 + $0x3f8] sm:$0xff] }
  0xd6   : > { %1181 = vmatpush.msra.mxu3 %v1936_v8  ;;  %907 = vmatpush.msrb.mxu1 %v692_v9  ;;  %v695_v7 = vld [vmem:[%s2562_s24 + $0x78] sm:$0xff]  ;;  %v1947_v8 = vld [vmem:[%s2562_s24 + $0x7e8] sm:$0xff] }
  0xd7   : > { %1162 = vmatpush.msra.mxu2 %v1927_v11  ;;  %v687_v9 = vld [vmem:[%s2562_s24 + $0x38] sm:$0xff]  ;;  %949 = vmatmul.f32.vlgmr.msrb.gmra.mxu3 %v2674_v1 }
  0xd8   : > { %1821 = vmatmul.msk.f32.vlgmr.msra.gmra.mxu0 %vm607_vm0, %v449_v20  ;;  %1182 = vmatpush.msra.mxu3 %v1928_v12  ;;  %v1934_v20 = vld [vmem:[%s2562_s24 + $0x780] sm:$0xff]  ;;  %v1945_v11 = vld [vmem:[%s2562_s24 + $0x7d8] sm:$0xff] }
  0xd9   : > { %873 = vmatpush.msrb.mxu0 %v803_v16  ;;  %v1942_v16 = vld [vmem:[%s2562_s24 + $0x7c0] sm:$0xff]  ;;  %908 = vmatpush.msrb.mxu1 %v684_v13  ;;  %v1939_v13 = vld [vmem:[%s2562_s24 + $0x7a8] sm:$0xff] }
  0xda   : > { %1163 = vmatpush.msra.mxu2 %v1919_v17  ;;  %1183 = vmatpush.msra.mxu3 %v1920_v19  ;;  %v1838_v12 = vld [vmem:[%s2562_s24 + $0x480] sm:$0xff]  ;;  %v1931_v17 = vld [vmem:[%s2562_s24 + $0x768] sm:$0xff]  ;;  %v1929_v19 = vld [vmem:[%s2562_s24 + $0x758] sm:$0xff] }
  0xdb   : > { %874 = vmatpush.msrb.mxu0 %v795_v21  ;;  %1140 = vmatpush.msra.mxu1 %v1942_v16  ;;  %v1911_v21 = vld [vmem:[%s2562_s24 + $0x6c8] sm:$0xff]  ;;  %v1830_v16 = vld [vmem:[%s2562_s24 + $0x440] sm:$0xff] }
  0xdc   : > { %1164 = vmatpush.msra.mxu2 %v1911_v21  ;;  %1184 = vmatpush.msra.mxu3 %v1912_v23  ;;  %v1921_v21 = vld [vmem:[%s2562_s24 + $0x718] sm:$0xff]  ;;  %v1923_v23 = vld [vmem:[%s2562_s24 + $0x728] sm:$0xff] }
  0xdd   : > { %875 = vmatpush.msrb.mxu0 %v787_v25  ;;  %v1903_v25 = vld [vmem:[%s2562_s24 + $0x688] sm:$0xff]  ;;  %1141 = vmatpush.msra.mxu1 %v1934_v20  ;;  %v1822_v20 = vld [vmem:[%s2562_s24 + $0x400] sm:$0xff] }
  0xde   : > { %1165 = vmatpush.msra.mxu2 %v1903_v25  ;;  %1185 = vmatpush.msra.mxu3 %v1904_v27  ;;  %v1913_v25 = vld [vmem:[%s2562_s24 + $0x6d8] sm:$0xff]  ;;  %v1915_v27 = vld [vmem:[%s2562_s24 + $0x6e8] sm:$0xff] }
  0xdf   : > { %876 = vmatpush.msrb.mxu0 %v779_v29  ;;  %v1895_v29 = vld [vmem:[%s2562_s24 + $0x648] sm:$0xff]  ;;  %1142 = vmatpush.msra.mxu1 %v1926_v24  ;;  %v1924_v24 = vld [vmem:[%s2562_s24 + $0x730] sm:$0xff] }
  0xe0   : > { %1166 = vmatpush.msra.mxu2 %v1895_v29  ;;  %1186 = vmatpush.msra.mxu3 %v1896_v31  ;;  %v1905_v29 = vld [vmem:[%s2562_s24 + $0x698] sm:$0xff]  ;;  %v1907_v31 = vld [vmem:[%s2562_s24 + $0x6a8] sm:$0xff] }
  0xe1   : > { %877 = vmatpush.msrb.mxu0 %v771_v33  ;;  %v1887_v33 = vld [vmem:[%s2562_s24 + $0x608] sm:$0xff]  ;;  %1143 = vmatpush.msra.mxu1 %v1918_v28  ;;  %v1916_v28 = vld [vmem:[%s2562_s24 + $0x6f0] sm:$0xff] }
  0xe2   : > { %1167 = vmatpush.msra.mxu2 %v1887_v33  ;;  %1187 = vmatpush.msra.mxu3 %v1888_v35  ;;  %v1897_v33 = vld [vmem:[%s2562_s24 + $0x658] sm:$0xff]  ;;  %v1899_v35 = vld [vmem:[%s2562_s24 + $0x668] sm:$0xff] }
  0xe3   : > { %878 = vmatpush.msrb.mxu0 %v763_v37  ;;  %v1879_v37 = vld [vmem:[%s2562_s24 + $0x5c8] sm:$0xff]  ;;  %1144 = vmatpush.msra.mxu1 %v1910_v32  ;;  %v1908_v32 = vld [vmem:[%s2562_s24 + $0x6b0] sm:$0xff] }
  0xe4   : > { %1168 = vmatpush.msra.mxu2 %v1879_v37  ;;  %1188 = vmatpush.msra.mxu3 %v1880_v39  ;;  %v1889_v37 = vld [vmem:[%s2562_s24 + $0x618] sm:$0xff]  ;;  %v1891_v39 = vld [vmem:[%s2562_s24 + $0x628] sm:$0xff] }
  0xe5   : > { %879 = vmatpush.msrb.mxu0 %v755_v41  ;;  %v1871_v41 = vld [vmem:[%s2562_s24 + $0x588] sm:$0xff]  ;;  %1145 = vmatpush.msra.mxu1 %v1902_v36  ;;  %v1900_v36 = vld [vmem:[%s2562_s24 + $0x670] sm:$0xff] }
  0xe6   : > { %1169 = vmatpush.msra.mxu2 %v1871_v41  ;;  %1189 = vmatpush.msra.mxu3 %v1872_v43  ;;  %v1881_v41 = vld [vmem:[%s2562_s24 + $0x5d8] sm:$0xff]  ;;  %v1883_v43 = vld [vmem:[%s2562_s24 + $0x5e8] sm:$0xff] }
  0xe7   : > { %880 = vmatpush.msrb.mxu0 %v747_v45  ;;  %v1863_v45 = vld [vmem:[%s2562_s24 + $0x548] sm:$0xff]  ;;  %1146 = vmatpush.msra.mxu1 %v1894_v40  ;;  %v1892_v40 = vld [vmem:[%s2562_s24 + $0x630] sm:$0xff] }
  0xe8   : > { %1170 = vmatpush.msra.mxu2 %v1863_v45  ;;  %1190 = vmatpush.msra.mxu3 %v1864_v47  ;;  %v1873_v45 = vld [vmem:[%s2562_s24 + $0x598] sm:$0xff]  ;;  %v1875_v47 = vld [vmem:[%s2562_s24 + $0x5a8] sm:$0xff] }
  0xe9   : > { %881 = vmatpush.msrb.mxu0 %v739_v49  ;;  %v1855_v49 = vld [vmem:[%s2562_s24 + $0x508] sm:$0xff]  ;;  %1147 = vmatpush.msra.mxu1 %v1886_v44  ;;  %v1884_v44 = vld [vmem:[%s2562_s24 + $0x5f0] sm:$0xff] }
  0xea   : > { %1171 = vmatpush.msra.mxu2 %v1855_v49  ;;  %1191 = vmatpush.msra.mxu3 %v1856_v51  ;;  %v1865_v49 = vld [vmem:[%s2562_s24 + $0x558] sm:$0xff]  ;;  %v1867_v51 = vld [vmem:[%s2562_s24 + $0x568] sm:$0xff] }
  0xeb   : > { %882 = vmatpush.msrb.mxu0 %v731_v53  ;;  %v1847_v53 = vld [vmem:[%s2562_s24 + $0x4c8] sm:$0xff]  ;;  %1148 = vmatpush.msra.mxu1 %v1878_v48  ;;  %v1876_v48 = vld [vmem:[%s2562_s24 + $0x5b0] sm:$0xff] }
  0xec   : > { %1172 = vmatpush.msra.mxu2 %v1847_v53  ;;  %1192 = vmatpush.msra.mxu3 %v1848_v55  ;;  %v1857_v53 = vld [vmem:[%s2562_s24 + $0x518] sm:$0xff]  ;;  %v1859_v55 = vld [vmem:[%s2562_s24 + $0x528] sm:$0xff] }
  0xed   : > { %883 = vmatpush.msrb.mxu0 %v723_v57  ;;  %v719_v57 = vld [vmem:[%s2562_s24 + $0x138] sm:$0xff]  ;;  %1149 = vmatpush.msra.mxu1 %v1870_v52  ;;  %v1868_v52 = vld [vmem:[%s2562_s24 + $0x570] sm:$0xff] }
  0xee   : > { %1173 = vmatpush.msra.mxu2 %v1839_v58  ;;  %1193 = vmatpush.msra.mxu3 %v1840_v59  ;;  %v1874_v58 = vld [vmem:[%s2562_s24 + $0x5a0] sm:$0xff]  ;;  %v1851_v59 = vld [vmem:[%s2562_s24 + $0x4e8] sm:$0xff] }
  0xef   : > { %884 = vmatpush.msrb.mxu0 %v715_v61  ;;  %v711_v61 = vld [vmem:[%s2562_s24 + $0xf8] sm:$0xff]  ;;  %1150 = vmatpush.msra.mxu1 %v1862_v56  ;;  %v1860_v56 = vld [vmem:[%s2562_s24 + $0x530] sm:$0xff] }
  0xf0   : > { %1174 = vmatpush.msra.mxu2 %v1831_v0  ;;  %909 = vmatmul.f32.vlgmr.msrb.gmra.mxu1 %v2674_v1  ;;  %v1844_v0 = vld [vmem:[%s2562_s24 + $0x4b0] sm:$0xff] }
  0xf1   : > { %885 = vmatpush.msrb.mxu0 %v707_v2  ;;  %v1832_v2 = vld [vmem:[%s2562_s24 + $0x450] sm:$0xff]  ;;  %1151 = vmatpush.msra.mxu1 %v1854_v63  ;;  %v1843_v63 = vld [vmem:[%s2562_s24 + $0x4a8] sm:$0xff] }
  0xf2   : > { %1194 = vmatpush.msra.mxu3 %v1832_v2  ;;  %1175 = vmatpush.msra.mxu2 %v1823_v5  ;;  %v1833_v2 = vld [vmem:[%s2562_s24 + $0x458] sm:$0xff]  ;;  %v1836_v5 = vld [vmem:[%s2562_s24 + $0x470] sm:$0xff] }
  0xf3   : > { %886 = vmatpush.msrb.mxu0 %v699_v6  ;;  %v1824_v6 = vld [vmem:[%s2562_s24 + $0x410] sm:$0xff]  ;;  %1152 = vmatpush.msra.mxu1 %v1846_v4  ;;  %v1835_v4 = vld [vmem:[%s2562_s24 + $0x468] sm:$0xff] }
  0xf4   : > { %1195 = vmatpush.msra.mxu3 %v1824_v6  ;;  %929 = vmatmul.f32.vlgmr.msrb.gmra.mxu2 %v2674_v1  ;;  %v1825_v6 = vld [vmem:[%s2562_s24 + $0x418] sm:$0xff] }
  0xf5   : > { %887 = vmatpush.msrb.mxu0 %v691_v10  ;;  %v1948_v10 = vld [vmem:[%s2562_s24 + $0x7f0] sm:$0xff]  ;;  %1240 = vmatpush.msrb.mxu2 %v1947_v8  ;;  %v1949_v8 = vld [vmem:[%s2562_s24 + $0x7f8] sm:$0xff] }
  0xf6   : > { %1260 = vmatpush.msrb.mxu3 %v1948_v10  ;;  %1153 = vmatpush.msra.mxu1 %v1838_v12  ;;  %v1828_v10 = vld [vmem:[%s2562_s24 + $0x430] sm:$0xff]  ;;  %v2071_v12 = vld [vmem:[%s2562_s24 + $0xbc8] sm:$0xff] }
  0xf7   : > { %888 = vmatpush.msrb.mxu0 %v683_v14  ;;  %v1940_v14 = vld [vmem:[%s2562_s24 + $0x7b0] sm:$0xff]  ;;  %1241 = vmatpush.msrb.mxu2 %v1939_v13 }
  0xf8   : > { %889 = vmatmul.f32.vlgmr.msrb.gmra.mxu0 %v2674_v1  ;;  %1261 = vmatpush.msrb.mxu3 %v1940_v14  ;;  %v2072_v13 = vld [vmem:[%s2562_s24 + $0xbd0] sm:$0xff]  ;;  %v1933_v14 = vld [vmem:[%s2562_s24 + $0x778] sm:$0xff] }
  0xf9   : > { %953 = vmatpush.msra.mxu0 %v807_v15  ;;  %v1937_v15 = vld [vmem:[%s2562_s24 + $0x798] sm:$0xff]  ;;  %1154 = vmatpush.msra.mxu1 %v1830_v16  ;;  %v2063_v16 = vld [vmem:[%s2562_s24 + $0xb88] sm:$0xff] }
  0xfa   : > { %1242 = vmatpush.msrb.mxu2 %v1931_v17  ;;  %1196 = vmatmul.f32.vlgmr.msra.gmra.mxu3 %v2674_v1  ;;  %v2064_v17 = vld [vmem:[%s2562_s24 + $0xb90] sm:$0xff] }
  0xfb   : > { %954 = vmatpush.msra.mxu0 %v799_v18  ;;  %v1932_v18 = vld [vmem:[%s2562_s24 + $0x770] sm:$0xff]  ;;  %1155 = vmatpush.msra.mxu1 %v1822_v20  ;;  %v2055_v20 = vld [vmem:[%s2562_s24 + $0xb48] sm:$0xff] }
  0xfc   : > { %1262 = vmatpush.msrb.mxu3 %v1932_v18  ;;  %1243 = vmatpush.msrb.mxu2 %v1923_v23  ;;  %v1925_v18 = vld [vmem:[%s2562_s24 + $0x738] sm:$0xff]  ;;  %v1826_v23 = vld [vmem:[%s2562_s24 + $0x420] sm:$0xff] }
  0xfd   : > { %955 = vmatpush.msra.mxu0 %v791_v22  ;;  %v1946_v22 = vld [vmem:[%s2562_s24 + $0x7e0] sm:$0xff]  ;;  %1176 = vmatmul.f32.vlgmr.msra.gmra.mxu2 %v2674_v1 }
  0xfe   : > { %1220 = vmatpush.msrb.mxu1 %v1946_v22  ;;  %1263 = vmatpush.msrb.mxu3 %v1924_v24  ;;  %v1917_v22 = vld [vmem:[%s2562_s24 + $0x6f8] sm:$0xff] }
  0xff   : > { %956 = vmatpush.msra.mxu0 %v783_v26  ;;  %v1938_v26 = vld [vmem:[%s2562_s24 + $0x7a0] sm:$0xff]  ;;  %1244 = vmatpush.msrb.mxu2 %v1915_v27  ;;  %v1909_v24 = vld [vmem:[%s2562_s24 + $0x6b8] sm:$0xff]  ;;  %v2048_v27 = vld [vmem:[%s2562_s24 + $0xb10] sm:$0xff] }
 0x100   : > { %1221 = vmatpush.msrb.mxu1 %v1938_v26  ;;  %1264 = vmatpush.msrb.mxu3 %v1916_v28  ;;  %v2047_v26 = vld [vmem:[%s2562_s24 + $0xb08] sm:$0xff]  ;;  %v1901_v28 = vld [vmem:[%s2562_s24 + $0x678] sm:$0xff] }
 0x101   : > { %957 = vmatpush.msra.mxu0 %v775_v30  ;;  %v1930_v30 = vld [vmem:[%s2562_s24 + $0x760] sm:$0xff]  ;;  %1245 = vmatpush.msrb.mxu2 %v1907_v31  ;;  %v2040_v31 = vld [vmem:[%s2562_s24 + $0xad0] sm:$0xff] }
 0x102   : > { %1222 = vmatpush.msrb.mxu1 %v1930_v30  ;;  %1265 = vmatpush.msrb.mxu3 %v1908_v32  ;;  %v2039_v30 = vld [vmem:[%s2562_s24 + $0xac8] sm:$0xff]  ;;  %v1893_v32 = vld [vmem:[%s2562_s24 + $0x638] sm:$0xff] }
 0x103   : > { %958 = vmatpush.msra.mxu0 %v767_v34  ;;  %v1922_v34 = vld [vmem:[%s2562_s24 + $0x720] sm:$0xff]  ;;  %1246 = vmatpush.msrb.mxu2 %v1899_v35  ;;  %v2032_v35 = vld [vmem:[%s2562_s24 + $0xa90] sm:$0xff] }
 0x104   : > { %1223 = vmatpush.msrb.mxu1 %v1922_v34  ;;  %1266 = vmatpush.msrb.mxu3 %v1900_v36  ;;  %v2031_v34 = vld [vmem:[%s2562_s24 + $0xa88] sm:$0xff]  ;;  %v1885_v36 = vld [vmem:[%s2562_s24 + $0x5f8] sm:$0xff] }
 0x105   : > { %959 = vmatpush.msra.mxu0 %v759_v38  ;;  %v1914_v38 = vld [vmem:[%s2562_s24 + $0x6e0] sm:$0xff]  ;;  %1247 = vmatpush.msrb.mxu2 %v1891_v39  ;;  %v2024_v39 = vld [vmem:[%s2562_s24 + $0xa50] sm:$0xff] }
 0x106   : > { %1224 = vmatpush.msrb.mxu1 %v1914_v38  ;;  %1267 = vmatpush.msrb.mxu3 %v1892_v40  ;;  %v2023_v38 = vld [vmem:[%s2562_s24 + $0xa48] sm:$0xff]  ;;  %v1877_v40 = vld [vmem:[%s2562_s24 + $0x5b8] sm:$0xff] }
 0x107   : > { %960 = vmatpush.msra.mxu0 %v751_v42  ;;  %v1906_v42 = vld [vmem:[%s2562_s24 + $0x6a0] sm:$0xff]  ;;  %1248 = vmatpush.msrb.mxu2 %v1883_v43  ;;  %v2016_v43 = vld [vmem:[%s2562_s24 + $0xa10] sm:$0xff] }
 0x108   : > { %1225 = vmatpush.msrb.mxu1 %v1906_v42  ;;  %1268 = vmatpush.msrb.mxu3 %v1884_v44  ;;  %v2015_v42 = vld [vmem:[%s2562_s24 + $0xa08] sm:$0xff]  ;;  %v1869_v44 = vld [vmem:[%s2562_s24 + $0x578] sm:$0xff] }
 0x109   : > { %961 = vmatpush.msra.mxu0 %v743_v46  ;;  %v1898_v46 = vld [vmem:[%s2562_s24 + $0x660] sm:$0xff]  ;;  %1249 = vmatpush.msrb.mxu2 %v1875_v47  ;;  %v2008_v47 = vld [vmem:[%s2562_s24 + $0x9d0] sm:$0xff] }
 0x10a   : > { %1226 = vmatpush.msrb.mxu1 %v1898_v46  ;;  %1269 = vmatpush.msrb.mxu3 %v1876_v48  ;;  %v2007_v46 = vld [vmem:[%s2562_s24 + $0x9c8] sm:$0xff]  ;;  %v1861_v48 = vld [vmem:[%s2562_s24 + $0x538] sm:$0xff] }
 0x10b   : > { %962 = vmatpush.msra.mxu0 %v735_v50  ;;  %v1890_v50 = vld [vmem:[%s2562_s24 + $0x620] sm:$0xff]  ;;  %1250 = vmatpush.msrb.mxu2 %v1867_v51  ;;  %v2000_v51 = vld [vmem:[%s2562_s24 + $0x990] sm:$0xff] }
 0x10c   : > { %1227 = vmatpush.msrb.mxu1 %v1890_v50  ;;  %1270 = vmatpush.msrb.mxu3 %v1868_v52  ;;  %v1999_v50 = vld [vmem:[%s2562_s24 + $0x988] sm:$0xff]  ;;  %v1853_v52 = vld [vmem:[%s2562_s24 + $0x4f8] sm:$0xff] }
 0x10d   : > { %963 = vmatpush.msra.mxu0 %v727_v54  ;;  %v1882_v54 = vld [vmem:[%s2562_s24 + $0x5e0] sm:$0xff]  ;;  %1251 = vmatpush.msrb.mxu2 %v1859_v55  ;;  %v1992_v55 = vld [vmem:[%s2562_s24 + $0x950] sm:$0xff] }
 0x10e   : > { %1228 = vmatpush.msrb.mxu1 %v1882_v54  ;;  %1271 = vmatpush.msrb.mxu3 %v1860_v56  ;;  %v1991_v54 = vld [vmem:[%s2562_s24 + $0x948] sm:$0xff]  ;;  %v1845_v56 = vld [vmem:[%s2562_s24 + $0x4b8] sm:$0xff] }
 0x10f   : > { %964 = vmatpush.msra.mxu0 %v719_v57  ;;  %v1849_v57 = vld [vmem:[%s2562_s24 + $0x4d8] sm:$0xff]  ;;  %1252 = vmatpush.msrb.mxu2 %v1851_v59  ;;  %v1984_v59 = vld [vmem:[%s2562_s24 + $0x910] sm:$0xff] }
 0x110   : > { %1229 = vmatpush.msrb.mxu1 %v1874_v58  ;;  %1272 = vmatpush.msrb.mxu3 %v1852_v60  ;;  %v1983_v58 = vld [vmem:[%s2562_s24 + $0x908] sm:$0xff]  ;;  %v1837_v60 = vld [vmem:[%s2562_s24 + $0x478] sm:$0xff] }
 0x111   : > { %965 = vmatpush.msra.mxu0 %v711_v61  ;;  %v1841_v61 = vld [vmem:[%s2562_s24 + $0x498] sm:$0xff]  ;;  %1253 = vmatpush.msrb.mxu2 %v1843_v63  ;;  %v1976_v63 = vld [vmem:[%s2562_s24 + $0x8d0] sm:$0xff] }
 0x112   : > { %1230 = vmatpush.msrb.mxu1 %v1866_v62  ;;  %1273 = vmatpush.msrb.mxu3 %v1844_v0  ;;  %v1975_v62 = vld [vmem:[%s2562_s24 + $0x8c8] sm:$0xff]  ;;  %v1829_v0 = vld [vmem:[%s2562_s24 + $0x438] sm:$0xff] }
 0x113   : > { %966 = vmatpush.msra.mxu0 %v703_v3  ;;  %v1858_v3 = vld [vmem:[%s2562_s24 + $0x520] sm:$0xff]  ;;  %1254 = vmatpush.msrb.mxu2 %v1835_v4  ;;  %v1967_v4 = vld [vmem:[%s2562_s24 + $0x888] sm:$0xff] }
 0x114   : > { %1231 = vmatpush.msrb.mxu1 %v1858_v3  ;;  %1274 = vmatpush.msrb.mxu3 %v1836_v5  ;;  %v2073_v3 = vld [vmem:[%s2562_s24 + $0xbd8] sm:$0xff]  ;;  %v1968_v5 = vld [vmem:[%s2562_s24 + $0x890] sm:$0xff] }
 0x115   : > { %967 = vmatpush.msra.mxu0 %v695_v7  ;;  %v1850_v7 = vld [vmem:[%s2562_s24 + $0x4e0] sm:$0xff]  ;;  %1156 = vmatmul.f32.vlgmr.msra.gmra.mxu1 %v2674_v1 }
 0x116   : > { %1232 = vmatpush.msrb.mxu1 %v1850_v7  ;;  %1275 = vmatpush.msrb.mxu3 %v1828_v10  ;;  %v2065_v7 = vld [vmem:[%s2562_s24 + $0xb98] sm:$0xff]  ;;  %v1974_v10 = vld [vmem:[%s2562_s24 + $0x8c0] sm:$0xff] }
 0x117   : > { %968 = vmatpush.msra.mxu0 %v687_v9  ;;  %v1827_v9 = vld [vmem:[%s2562_s24 + $0x428] sm:$0xff]  ;;  %1276 = vmatmul.f32.vlgmr.msrb.gmra.mxu3 %v2674_v1 }
 0x118   : > { %969 = vmatmul.f32.vlgmr.msra.gmra.mxu0 %v2674_v1  ;;  %1255 = vmatpush.msrb.mxu2 %v1827_v9  ;;  %v1960_v9 = vld [vmem:[%s2562_s24 + $0x850] sm:$0xff] }
 0x119   : > { %1200 = vmatpush.msrb.mxu0 %v1945_v11  ;;  %v1941_v11 = vld [vmem:[%s2562_s24 + $0x7b8] sm:$0xff]  ;;  %1505 = vmatpush.msra.mxu3 %v2072_v13 }
 0x11a   : > { %1485 = vmatpush.msra.mxu2 %v2071_v12  ;;  %v1951_v12 = vld [vmem:[%s2562_s24 + $0x808] sm:$0xff] }
 0x11b   : > { %1201 = vmatpush.msrb.mxu0 %v1937_v15  ;;  %v1842_v15 = vld [vmem:[%s2562_s24 + $0x4a0] sm:$0xff]  ;;  %1506 = vmatpush.msra.mxu3 %v2064_v17 }
 0x11c   : > { %1233 = vmatpush.msrb.mxu1 %v1842_v15  ;;  %1486 = vmatpush.msra.mxu2 %v2063_v16  ;;  %v2049_v16 = vld [vmem:[%s2562_s24 + $0xb18] sm:$0xff] }
 0x11d   : > { %1202 = vmatpush.msrb.mxu0 %v1929_v19  ;;  %v1834_v19 = vld [vmem:[%s2562_s24 + $0x460] sm:$0xff]  ;;  %1256 = vmatmul.f32.vlgmr.msrb.gmra.mxu2 %v2674_v1 }
 0x11e   : > { %1234 = vmatpush.msrb.mxu1 %v1834_v19  ;;  %1487 = vmatpush.msra.mxu2 %v2055_v20  ;;  %v2076_v19 = vld [vmem:[%s2562_s24 + $0xbf0] sm:$0xff]  ;;  %v2041_v20 = vld [vmem:[%s2562_s24 + $0xad8] sm:$0xff] }
 0x11f   : > { %1203 = vmatpush.msrb.mxu0 %v1921_v21  ;;  %v2056_v21 = vld [vmem:[%s2562_s24 + $0xb50] sm:$0xff] }
 0x120   : > { %1507 = vmatpush.msra.mxu3 %v2056_v21  ;;  %1235 = vmatpush.msrb.mxu1 %v1826_v23  ;;  %v1966_v21 = vld [vmem:[%s2562_s24 + $0x880] sm:$0xff]  ;;  %v2067_v23 = vld [vmem:[%s2562_s24 + $0xba8] sm:$0xff] }
 0x121   : > { %1204 = vmatpush.msrb.mxu0 %v1913_v25  ;;  %v2070_v25 = vld [vmem:[%s2562_s24 + $0xbc0] sm:$0xff]  ;;  %1488 = vmatpush.msra.mxu2 %v2047_v26 }
 0x122   : > { %1465 = vmatpush.msra.mxu1 %v2070_v25  ;;  %1508 = vmatpush.msra.mxu3 %v2048_v27  ;;  %v2033_v25 = vld [vmem:[%s2562_s24 + $0xa98] sm:$0xff]  ;;  %v1958_v26 = vld [vmem:[%s2562_s24 + $0x840] sm:$0xff] }
 0x123   : > { %1205 = vmatpush.msrb.mxu0 %v1905_v29  ;;  %v2062_v29 = vld [vmem:[%s2562_s24 + $0xb80] sm:$0xff]  ;;  %1489 = vmatpush.msra.mxu2 %v2039_v30  ;;  %v2025_v30 = vld [vmem:[%s2562_s24 + $0xa58] sm:$0xff] }
 0x124   : > { %1466 = vmatpush.msra.mxu1 %v2062_v29  ;;  %1509 = vmatpush.msra.mxu3 %v2040_v31  ;;  %v2060_v29 = vld [vmem:[%s2562_s24 + $0xb70] sm:$0xff]  ;;  %v1950_v31 = vld [vmem:[%s2562_s24 + $0x800] sm:$0xff] }
 0x125   : > { %1206 = vmatpush.msrb.mxu0 %v1897_v33  ;;  %v2054_v33 = vld [vmem:[%s2562_s24 + $0xb40] sm:$0xff]  ;;  %1490 = vmatpush.msra.mxu2 %v2031_v34 }
 0x126   : > { %1467 = vmatpush.msra.mxu1 %v2054_v33  ;;  %1510 = vmatpush.msra.mxu3 %v2032_v35  ;;  %v2017_v33 = vld [vmem:[%s2562_s24 + $0xa18] sm:$0xff]  ;;  %v2074_v34 = vld [vmem:[%s2562_s24 + $0xbe0] sm:$0xff] }
 0x127   : > { %1207 = vmatpush.msrb.mxu0 %v1889_v37  ;;  %v2046_v37 = vld [vmem:[%s2562_s24 + $0xb00] sm:$0xff]  ;;  %1491 = vmatpush.msra.mxu2 %v2023_v38  ;;  %v2009_v38 = vld [vmem:[%s2562_s24 + $0x9d8] sm:$0xff] }
 0x128   : > { %1468 = vmatpush.msra.mxu1 %v2046_v37  ;;  %1511 = vmatpush.msra.mxu3 %v2024_v39  ;;  %v2052_v37 = vld [vmem:[%s2562_s24 + $0xb30] sm:$0xff]  ;;  %v2066_v39 = vld [vmem:[%s2562_s24 + $0xba0] sm:$0xff] }
 0x129   : > { %1208 = vmatpush.msrb.mxu0 %v1881_v41  ;;  %v2038_v41 = vld [vmem:[%s2562_s24 + $0xac0] sm:$0xff]  ;;  %1492 = vmatpush.msra.mxu2 %v2015_v42  ;;  %v2044_v42 = vld [vmem:[%s2562_s24 + $0xaf0] sm:$0xff] }
 0x12a   : > { %1469 = vmatpush.msra.mxu1 %v2038_v41  ;;  %1512 = vmatpush.msra.mxu3 %v2016_v43  ;;  %v2043_v41 = vld [vmem:[%s2562_s24 + $0xae8] sm:$0xff]  ;;  %v2001_v43 = vld [vmem:[%s2562_s24 + $0x998] sm:$0xff] }
 0x12b   : > { %1209 = vmatpush.msrb.mxu0 %v1873_v45  ;;  %v2030_v45 = vld [vmem:[%s2562_s24 + $0xa80] sm:$0xff]  ;;  %1493 = vmatpush.msra.mxu2 %v2007_v46  ;;  %v2036_v46 = vld [vmem:[%s2562_s24 + $0xab0] sm:$0xff] }
 0x12c   : > { %1470 = vmatpush.msra.mxu1 %v2030_v45  ;;  %1513 = vmatpush.msra.mxu3 %v2008_v47  ;;  %v1993_v47 = vld [vmem:[%s2562_s24 + $0x958] sm:$0xff] }
 0x12d   : > { %1210 = vmatpush.msrb.mxu0 %v1865_v49  ;;  %v2022_v49 = vld [vmem:[%s2562_s24 + $0xa40] sm:$0xff]  ;;  %1494 = vmatpush.msra.mxu2 %v1999_v50  ;;  %v2027_v50 = vld [vmem:[%s2562_s24 + $0xa68] sm:$0xff] }
 0x12e   : > { %1471 = vmatpush.msra.mxu1 %v2022_v49  ;;  %1514 = vmatpush.msra.mxu3 %v2000_v51  ;;  %v2028_v51 = vld [vmem:[%s2562_s24 + $0xa70] sm:$0xff] }
 0x12f   : > { %1211 = vmatpush.msrb.mxu0 %v1857_v53  ;;  %v2014_v53 = vld [vmem:[%s2562_s24 + $0xa00] sm:$0xff]  ;;  %1495 = vmatpush.msra.mxu2 %v1991_v54  ;;  %v2019_v54 = vld [vmem:[%s2562_s24 + $0xa28] sm:$0xff] }
 0x130   : > { %1472 = vmatpush.msra.mxu1 %v2014_v53  ;;  %1515 = vmatpush.msra.mxu3 %v1992_v55  ;;  %v2042_v53 = vld [vmem:[%s2562_s24 + $0xae0] sm:$0xff]  ;;  %v2020_v55 = vld [vmem:[%s2562_s24 + $0xa30] sm:$0xff] }
 0x131   : > { %1212 = vmatpush.msrb.mxu0 %v1849_v57  ;;  %v2006_v57 = vld [vmem:[%s2562_s24 + $0x9c0] sm:$0xff]  ;;  %1496 = vmatpush.msra.mxu2 %v1983_v58  ;;  %v2011_v58 = vld [vmem:[%s2562_s24 + $0x9e8] sm:$0xff] }
 0x132   : > { %1473 = vmatpush.msra.mxu1 %v2006_v57  ;;  %1516 = vmatpush.msra.mxu3 %v1984_v59  ;;  %v2034_v57 = vld [vmem:[%s2562_s24 + $0xaa0] sm:$0xff]  ;;  %v2012_v59 = vld [vmem:[%s2562_s24 + $0x9f0] sm:$0xff] }
 0x133   : > { %1213 = vmatpush.msrb.mxu0 %v1841_v61  ;;  %v1998_v61 = vld [vmem:[%s2562_s24 + $0x980] sm:$0xff]  ;;  %1497 = vmatpush.msra.mxu2 %v1975_v62  ;;  %v2003_v62 = vld [vmem:[%s2562_s24 + $0x9a8] sm:$0xff] }
 0x134   : > { %1474 = vmatpush.msra.mxu1 %v1998_v61  ;;  %1517 = vmatpush.msra.mxu3 %v1976_v63  ;;  %v2026_v61 = vld [vmem:[%s2562_s24 + $0xa60] sm:$0xff]  ;;  %v2004_v63 = vld [vmem:[%s2562_s24 + $0x9b0] sm:$0xff] }
 0x135   : > { %1214 = vmatpush.msrb.mxu0 %v1833_v2  ;;  %v1990_v2 = vld [vmem:[%s2562_s24 + $0x940] sm:$0xff]  ;;  %1498 = vmatpush.msra.mxu2 %v1967_v4  ;;  %v1995_v4 = vld [vmem:[%s2562_s24 + $0x968] sm:$0xff] }
 0x136   : > { %1475 = vmatpush.msra.mxu1 %v1990_v2  ;;  %1518 = vmatpush.msra.mxu3 %v1968_v5  ;;  %v2018_v2 = vld [vmem:[%s2562_s24 + $0xa20] sm:$0xff]  ;;  %v1996_v5 = vld [vmem:[%s2562_s24 + $0x970] sm:$0xff] }
 0x137   : > { %1215 = vmatpush.msrb.mxu0 %v1825_v6  ;;  %v1982_v6 = vld [vmem:[%s2562_s24 + $0x900] sm:$0xff]  ;;  %1236 = vmatmul.f32.vlgmr.msrb.gmra.mxu1 %v2674_v1 }
 0x138   : > { %1216 = vmatmul.f32.vlgmr.msrb.gmra.mxu0 %v2674_v1  ;;  %1476 = vmatpush.msra.mxu1 %v1982_v6 }
 0x139   : > { %1280 = vmatpush.msra.mxu0 %v1949_v8  ;;  %v1959_v8 = vld [vmem:[%s2562_s24 + $0x848] sm:$0xff]  ;;  %1519 = vmatpush.msra.mxu3 %v1960_v9 }
 0x13a   : > { %1499 = vmatpush.msra.mxu2 %v1959_v8  ;;  %1477 = vmatpush.msra.mxu1 %v1974_v10  ;;  %v2010_v8 = vld [vmem:[%s2562_s24 + $0x9e0] sm:$0xff]  ;;  %v2077_v10 = vld [vmem:[%s2562_s24 + $0xbf8] sm:$0xff] }
 0x13b   : > { %1281 = vmatpush.msra.mxu0 %v1941_v11  ;;  %v2057_v11 = vld [vmem:[%s2562_s24 + $0xb58] sm:$0xff] }
 0x13c   : > { %1500 = vmatpush.msra.mxu2 %v1951_v12  ;;  %1478 = vmatpush.msra.mxu1 %v1966_v21  ;;  %v1988_v12 = vld [vmem:[%s2562_s24 + $0x930] sm:$0xff]  ;;  %v1994_v21 = vld [vmem:[%s2562_s24 + $0x960] sm:$0xff] }
 0x13d   : > { %1282 = vmatpush.msra.mxu0 %v1933_v14  ;;  %v1952_v14 = vld [vmem:[%s2562_s24 + $0x810] sm:$0xff] }
 0x13e   : > { %1520 = vmatpush.msra.mxu3 %v1952_v14  ;;  %1479 = vmatpush.msra.mxu1 %v1958_v26  ;;  %v2069_v14 = vld [vmem:[%s2562_s24 + $0xbb8] sm:$0xff]  ;;  %v1986_v26 = vld [vmem:[%s2562_s24 + $0x920] sm:$0xff] }
 0x13f   : > { %1283 = vmatpush.msra.mxu0 %v1925_v18  ;;  %v2075_v18 = vld [vmem:[%s2562_s24 + $0xbe8] sm:$0xff] }
 0x140   : > { %1565 = vmatpush.msrb.mxu2 %v2075_v18  ;;  %1585 = vmatpush.msrb.mxu3 %v2076_v19  ;;  %v2061_v18 = vld [vmem:[%s2562_s24 + $0xb78] sm:$0xff]  ;;  %v2960_v19 = vld [vmem:[%s3053_s3] sm:$0xf] }
 0x141   : > { %1284 = vmatpush.msra.mxu0 %v1917_v22  ;;  %1480 = vmatpush.msra.mxu1 %v1950_v31 }
 0x142   : > { %1566 = vmatpush.msrb.mxu2 %v2067_v23  ;;  %1521 = vmatmul.f32.vlgmr.msra.gmra.mxu3 %v2960_v19 }
 0x143   : > { %1285 = vmatpush.msra.mxu0 %v1909_v24  ;;  %v2068_v24 = vld [vmem:[%s2562_s24 + $0xbb0] sm:$0xff]  ;;  %1545 = vmatpush.msrb.mxu1 %v2074_v34  ;;  %v1955_v34 = vld [vmem:[%s2562_s24 + $0x828] sm:$0xff] }
 0x144   : > { %1586 = vmatpush.msrb.mxu3 %v2068_v24  ;;  %1501 = vmatmul.f32.vlgmr.msra.gmra.mxu2 %v2960_v19  ;;  %v2053_v24 = vld [vmem:[%s2562_s24 + $0xb38] sm:$0xff] }
 0x145   : > { %1286 = vmatpush.msra.mxu0 %v1901_v28  ;;  %v2059_v28 = vld [vmem:[%s2562_s24 + $0xb68] sm:$0xff]  ;;  %1546 = vmatpush.msrb.mxu1 %v2066_v39  ;;  %v1962_v39 = vld [vmem:[%s2562_s24 + $0x860] sm:$0xff] }
 0x146   : > { %1567 = vmatpush.msrb.mxu2 %v2059_v28  ;;  %1587 = vmatpush.msrb.mxu3 %v2060_v29  ;;  %v2045_v29 = vld [vmem:[%s2562_s24 + $0xaf8] sm:$0xff] }
 0x147   : > { %1287 = vmatpush.msra.mxu0 %v1893_v32  ;;  %1481 = vmatmul.f32.vlgmr.msra.gmra.mxu1 %v2960_v19 }
 0x148   : > { %1588 = vmatpush.msrb.mxu3 %v2052_v37  ;;  %v1970_v37 = vld [vmem:[%s2562_s24 + $0x8a0] sm:$0xff] }
 0x149   : > { %1288 = vmatpush.msra.mxu0 %v1885_v36  ;;  %v2051_v36 = vld [vmem:[%s2562_s24 + $0xb28] sm:$0xff] }
 0x14a   : > { %1568 = vmatpush.msrb.mxu2 %v2051_v36  ;;  %1589 = vmatpush.msrb.mxu3 %v2044_v42  ;;  %v2029_v36 = vld [vmem:[%s2562_s24 + $0xa78] sm:$0xff]  ;;  %v2113_v42 = vmov 1  }
 0x14b   : > { %1289 = vmatpush.msra.mxu0 %v1877_v40  ;;  %2096 = vset.pattern.permute.xlu1 %v2113_v42 }
 0x14c   : > { %1569 = vmatpush.msrb.mxu2 %v2043_v41  ;;  %1590 = vmatpush.msrb.mxu3 %v2036_v46  ;;  %v1954_v41 = vld [vmem:[%s2562_s24 + $0x820] sm:$0xff] }
 0x14d   : > { %1290 = vmatpush.msra.mxu0 %v1869_v44  ;;  %v2058_v44 = vld [vmem:[%s2562_s24 + $0xb60] sm:$0xff] }
 0x14e   : > { %1547 = vmatpush.msrb.mxu1 %v2058_v44  ;;  %1591 = vmatpush.msrb.mxu3 %v2028_v51  ;;  %v2005_v44 = vld [vmem:[%s2562_s24 + $0x9b8] sm:$0xff] }
 0x14f   : > { %1291 = vmatpush.msra.mxu0 %v1861_v48  ;;  %v2050_v48 = vld [vmem:[%s2562_s24 + $0xb20] sm:$0xff]  ;;  %v1981_v51 = vld [vmem:[%s2562_s24 + $0x8f8] sm:$0xff] }
 0x150   : > { %1548 = vmatpush.msrb.mxu1 %v2050_v48  ;;  %1592 = vmatpush.msrb.mxu3 %v2020_v55  ;;  %v1989_v48 = vld [vmem:[%s2562_s24 + $0x938] sm:$0xff] }
 0x151   : > { %1292 = vmatpush.msra.mxu0 %v1853_v52  ;;  %v1985_v52 = vld [vmem:[%s2562_s24 + $0x918] sm:$0xff] }
 0x152   : > { %1549 = vmatpush.msrb.mxu1 %v2042_v53  ;;  %1593 = vmatpush.msrb.mxu3 %v2012_v59  ;;  %v1957_v59 = vld [vmem:[%s2562_s24 + $0x838] sm:$0xff] }
 0x153   : > { %1293 = vmatpush.msra.mxu0 %v1845_v56  ;;  %v1977_v56 = vld [vmem:[%s2562_s24 + $0x8d8] sm:$0xff] }
 0x154   : > { %1550 = vmatpush.msrb.mxu1 %v2034_v57  ;;  %1594 = vmatpush.msrb.mxu3 %v2004_v63  ;;  %v1965_v57 = vld [vmem:[%s2562_s24 + $0x878] sm:$0xff] }
 0x155   : > { %1294 = vmatpush.msra.mxu0 %v1837_v60  ;;  %v2889_v13 = vpop.f32.mrf.mxu0  ;;  %v1969_v60 = vld [vmem:[%s2562_s24 + $0x898] sm:$0xff] }
 0x156   : > { %v635_v15 = vsel %vm634_vm1, %v2889_v13, -inf  ;;  %1551 = vmatpush.msrb.mxu1 %v2026_v61  ;;  %1595 = vmatpush.msrb.mxu3 %v1996_v5  ;;  %v2114_v5 = vmov 2  }
 0x157   : > { %1295 = vmatpush.msra.mxu0 %v1829_v0  ;;  %v636_v17 = vrot.slane %v635_v15, 4  ;;  %v1961_v0 = vld [vmem:[%s2562_s24 + $0x858] sm:$0xff] }
 0x158   : > { %1296 = vmatmul.f32.vlgmr.msra.gmra.mxu0 %v2674_v1  ;;  %v2035_v1 = vld [vmem:[%s2562_s24 + $0xaa8] sm:$0xff]  ;;  %1552 = vmatpush.msrb.mxu1 %v2018_v2 }
 0x159   : > { %1525 = vmatpush.msrb.mxu0 %v2073_v3  ;;  %v637_v22 = vmax.f32 %v635_v15, %v636_v17  ;;  %1570 = vmatpush.msrb.mxu2 %v2035_v1  ;;  %v2002_v15 = vld [vmem:[%s2562_s24 + $0x9a0] sm:$0xff]  ;;  %v1997_v1 = vld [vmem:[%s2562_s24 + $0x978] sm:$0xff] }
 0x15a   : > { %1553 = vmatpush.msrb.mxu1 %v2010_v8  ;;  %1596 = vmatpush.msrb.mxu3 %v1988_v12 }
 0x15b   : > { %1526 = vmatpush.msrb.mxu0 %v2065_v7  ;;  %v638_v27 = vrot.slane %v637_v22, 2  ;;  %1571 = vmatpush.msrb.mxu2 %v2027_v50  ;;  %v1953_v7 = vld [vmem:[%s2562_s24 + $0x818] sm:$0xff] }
 0x15c   : > { %1554 = vmatpush.msrb.mxu1 %v2002_v15 }
 0x15d   : > { %1527 = vmatpush.msrb.mxu0 %v2057_v11  ;;  %v639_v32 = vmax.f32 %v637_v22, %v638_v27  ;;  %1572 = vmatpush.msrb.mxu2 %v2019_v54  ;;  %v1987_v11 = vld [vmem:[%s2562_s24 + $0x928] sm:$0xff]  ;;  %v1973_v54 = vld [vmem:[%s2562_s24 + $0x8b8] sm:$0xff] }
 0x15e   : > { %v1971_v22 = vld [vmem:[%s2562_s24 + $0x8a8] sm:$0xff]  ;;  %1555 = vmatpush.msrb.mxu1 %v1994_v21 }
 0x15f   : > { %1528 = vmatpush.msrb.mxu0 %v2049_v16  ;;  %v640_v35 = vrot.slane %v639_v32, 1  ;;  %1573 = vmatpush.msrb.mxu2 %v2011_v58  ;;  %v1979_v16 = vld [vmem:[%s2562_s24 + $0x8e8] sm:$0xff] }
 0x160   : > { %v1963_v27 = vld [vmem:[%s2562_s24 + $0x868] sm:$0xff]  ;;  %1556 = vmatpush.msrb.mxu1 %v1986_v26 }
 0x161   : > { %1529 = vmatpush.msrb.mxu0 %v2041_v20  ;;  %v641_v40 = vmax.f32 %v639_v32, %v640_v35  ;;  %1574 = vmatpush.msrb.mxu2 %v2003_v62  ;;  %v1980_v20 = vld [vmem:[%s2562_s24 + $0x8f0] sm:$0xff]  ;;  %v2037_v32 = vld [vmem:[%s2562_s24 + $0xab8] sm:$0xff] }
 0x162   : > { %1597 = vmatpush.msrb.mxu3 %v1980_v20  ;;  %v1956_v35 = vld [vmem:[%s2562_s24 + $0x830] sm:$0xff] }
 0x163   : > { %1530 = vmatpush.msrb.mxu0 %v2033_v25  ;;  %v642_v45 = vsub.f32 %v2889_v13, %v641_v40  ;;  %1575 = vmatpush.msrb.mxu2 %v1995_v4  ;;  %v1972_v25 = vld [vmem:[%s2562_s24 + $0x8b0] sm:$0xff]  ;;  %v2013_v40 = vld [vmem:[%s2562_s24 + $0x9f8] sm:$0xff] }
 0x164   : > { %1598 = vmatpush.msrb.mxu3 %v1972_v25 }
 0x165   : > { %1531 = vmatpush.msrb.mxu0 %v2025_v30  ;;  %v643_v49 = vmul.f32 1.442695, %v642_v45  ;;  %1576 = vmatpush.msrb.mxu2 %v1987_v11  ;;  %v1964_v30 = vld [vmem:[%s2562_s24 + $0x870] sm:$0xff] }
 0x166   : > { %1599 = vmatpush.msrb.mxu3 %v1964_v30 }
 0x167   : > { %1532 = vmatpush.msrb.mxu0 %v2017_v33  ;;  %2099 = vpow2.f32 %v643_v49  ;;  %1577 = vmatpush.msrb.mxu2 %v1979_v16  ;;  %v1978_v33 = vld [vmem:[%s2562_s24 + $0x8e0] sm:$0xff] }
 0x168   : > { %1557 = vmatpush.msrb.mxu1 %v1978_v33  ;;  %1600 = vmatpush.msrb.mxu3 %v1956_v35 }
 0x169   : > { %1533 = vmatpush.msrb.mxu0 %v2009_v38  ;;  %1578 = vmatpush.msrb.mxu2 %v1971_v22  ;;  %v2021_v38 = vld [vmem:[%s2562_s24 + $0xa38] sm:$0xff] }
 0x16a   : > { %1601 = vmatmul.f32.vlgmr.msrb.gmra.mxu3 %v2960_v19  ;;  %1558 = vmatpush.msrb.mxu1 %v1970_v37 }
 0x16b   : > { %1534 = vmatpush.msrb.mxu0 %v2001_v43  ;;  %1579 = vmatpush.msrb.mxu2 %v1963_v27 }
 0x16c   : > { %1559 = vmatpush.msrb.mxu1 %v1962_v39 }
 0x16d   : > { %1535 = vmatpush.msrb.mxu0 %v1993_v47  ;;  %v2942_v3 = vpop.eup %2099  ;;  %1580 = vmatpush.msrb.mxu2 %v1955_v34 }
 0x16e   : > { %v645_v6 = vsel %vm634_vm1, %v2942_v3, 0.0  ;;  %1581 = vmatmul.f32.vlgmr.msrb.gmra.mxu2 %v2960_v19  ;;  %1560 = vmatpush.msrb.mxu1 %v1954_v41 }
 0x16f   : > { %1536 = vmatpush.msrb.mxu0 %v1985_v52  ;;  %v646_v9 = vrot.slane %v645_v6, 4  ;;  %1561 = vmatmul.f32.vlgmr.msrb.gmra.mxu1 %v2960_v19 }
 0x171   : > { %1537 = vmatpush.msrb.mxu0 %v1977_v56  ;;  %v647_v13 = vadd.f32 %v646_v9, %v645_v6  ;;  %v850_v6 = vpop.f32.mrf.mxu2 }
 0x173   : > { %1538 = vmatpush.msrb.mxu0 %v1969_v60  ;;  %v648_v17 = vrot.slane %v647_v13, 2 }
 0x175   : > { %1539 = vmatpush.msrb.mxu0 %v1961_v0  ;;  %v649_v23 = vadd.f32 %v648_v17, %v647_v13  ;;  %v890_v8 = vpop.f32.mrf.mxu0 }
 0x177   : > { %1540 = vmatpush.msrb.mxu0 %v1953_v7  ;;  %v650_v28 = vrot.slane %v649_v23, 1  ;;  %v870_v7 = vpop.f32.mrf.mxu3 }
 0x178   : > { %1541 = vmatmul.f32.vlgmr.msrb.gmra.mxu0 %v2960_v19 }
 0x179   : > { %1605 = vmatpush.msra.mxu0 %v2077_v10  ;;  %v651_v31 = vadd.f32 %v650_v28, %v649_v23  ;;  %v930_v10 = vpop.f32.mrf.mxu2 }
 0x17b   : > { %1606 = vmatpush.msra.mxu0 %v2069_v14  ;;  %2101 = vrcp.f32 %v651_v31  ;;  %v663_v47 = vand.u32 2147483648, %v651_v31  ;;  %v661_v50 = vand.u32 2147483647, %v651_v31  ;;  %vm657_vm3 = vweird.f32 %v651_v31 }
 0x17d   : > { %1607 = vmatpush.msra.mxu0 %v2061_v18  ;;  %v664_v53 = vor.u32 1.1754944e-38, %v663_v47  ;;  %vm662_vm5 = vcmp.eq.f32.partialorder %v661_v50, 8.507059e+37 }
 0x17f   : > { %1608 = vmatpush.msra.mxu0 %v2053_v24  ;;  %v950_v11 = vpop.f32.mrf.mxu3  ;;  %v2998_v24 = vpop.permute.xlu0 %810 }
 0x180   : > { %v851_v25 = vadd.f32 %v850_v6, %v2998_v24  ;;  %v891_v26 = vadd.f32 %v890_v8, %v2998_v24  ;;  %v931_v30 = vadd.f32 %v930_v10, %v2998_v24  ;;  %v677_v10 = vld [vmem:[%s286_s9 + $0x8] sm:$0xff] }
 0x181   : > { %1609 = vmatpush.msra.mxu0 %v2045_v29  ;;  %v2102_v43 = vpop.eup %2101  ;;  %v1177_v14 = vpop.f32.mrf.mxu2  ;;  %v871_v29 = vadd.f32 %v870_v7, %v2998_v24 }
 0x182   : > { %v653_v45 = vmul.f32 %v2102_v43, %v651_v31  ;;  %vm658_vm2 = vweird.f32 %v2102_v43  ;;  %v951_v31 = vadd.f32 %v950_v11, %v2998_v24  ;;  %v1178_v34 = vadd.f32 %v1177_v14, %v2998_v24  ;;  %v678_v11 = vld [vmem:[%s286_s9 + $0x10] sm:$0xff] }
 0x183   : > { %1610 = vmatpush.msra.mxu0 %v2037_v32  ;;  %vm659_vm4 = vmor %vm657_vm3, %vm658_vm2 }
 0x184   : > { %v654_v46 = vsub.f32 1.0, %v653_v45 }
 0x185   : > { %1611 = vmatpush.msra.mxu0 %v2029_v36 }
 0x186   : > { %v655_v49 = vmul.f32 %v2102_v43, %v654_v46 }
 0x187   : > { %1612 = vmatpush.msra.mxu0 %v2021_v38  ;;  %v1197_v15 = vpop.f32.mrf.mxu3 }
 0x188   : > { %v656_v52 = vadd.f32 %v2102_v43, %v655_v49  ;;  %v1198_v35 = vadd.f32 %v1197_v15, %v2998_v24 }
 0x189   : > { %1613 = vmatpush.msra.mxu0 %v2013_v40 }
 0x18a   : > { %v660_v55 = vsel %vm659_vm4, %v2102_v43, %v656_v52 }
 0x18b   : > { %1614 = vmatpush.msra.mxu0 %v2005_v44  ;;  %v665_v56 = vsel %vm662_vm5, %v664_v53, %v660_v55 }
 0x18c   : > { %v666_v58 = vmul.f32 %v2942_v3, %v665_v56  ;;  %v830_v3 = vpop.f32.mrf.mxu1 }
 0x18d   : > { %1615 = vmatpush.msra.mxu0 %v1997_v1  ;;  %v831_v28 = vadd.f32 %v830_v3, %v2998_v24  ;;  %v676_v3 = vld [vmem:[%s286_s9] sm:$0xff] }
 0x18e   : > { %v667_v60 = vsel %vm634_vm1, %v666_v58, 0.0 }
 0x18f   : > { %1616 = vmatpush.msra.mxu0 %v1989_v48  ;;  %v668_v61 = vrot.slane %v667_v60, 4 }
 0x191   : > { %1617 = vmatpush.msra.mxu0 %v1981_v51  ;;  %v669_v62 = vadd.f32 %v668_v61, %v667_v60 }
 0x193   : > { %1618 = vmatpush.msra.mxu0 %v1973_v54  ;;  %v670_v63 = vrot.slane %v669_v62, 2 }
 0x194   : > { %v910_v9 = vpop.f32.mrf.mxu1 }
 0x195   : > { %1619 = vmatpush.msra.mxu0 %v1965_v57  ;;  %v671_v0 = vadd.f32 %v670_v63, %v669_v62  ;;  %v970_v12 = vpop.f32.mrf.mxu0  ;;  %v911_v33 = vadd.f32 %v910_v9, %v2998_v24 }
 0x196   : > { %v971_v32 = vadd.f32 %v970_v12, %v2998_v24 }
 0x197   : > { %1620 = vmatpush.msra.mxu0 %v1957_v59  ;;  %v672_v2 = vrot.slane %v671_v0, 1 }
 0x198   : > { %1621 = vmatmul.f32.vlgmr.msra.gmra.mxu0 %v2960_v19 }
 0x199   : > { %v673_v4 = vadd.f32 %v672_v2, %v671_v0 }
 0x19a   : > { %v1277_v19 = vpop.f32.mrf.mxu3 }
 0x19b   : > { %1301 = vperm.xlu1 %2096, %v673_v4   ;;  %975 = vperm.xlu0 %2095, %v673_v4   ;;  %v1278_v40 = vadd.f32 %v1277_v19, %v2998_v24 }
 0x19c   : > { %v1157_v13 = vpop.f32.mrf.mxu1 }
 0x19d   : > { %v1158_v38 = vadd.f32 %v1157_v13, %v2998_v24 }
 0x1a0   : > { %v1257_v18 = vpop.f32.mrf.mxu2 }
 0x1a1   : > { %v1258_v39 = vadd.f32 %v1257_v18, %v2998_v24 }
 0x1a3   : > { %2097 = vset.pattern.permute.xlu1 %v2114_v5  ;;  %2098 = vset.pattern.permute.xlu0 %v2114_v5 }
 0x1a4   : > { %1626 = vperm.xlu1 %2097, %v673_v4  }
 0x1b4   : > { %v1237_v17 = vpop.f32.mrf.mxu1 }
 0x1b5   : > { %v1217_v16 = vpop.f32.mrf.mxu0  ;;  %v1238_v44 = vadd.f32 %v1237_v17, %v2998_v24 }
 0x1b6   : > { %v1218_v37 = vadd.f32 %v1217_v16, %v2998_v24 }
 0x1c4   : > { %v1482_v21 = vpop.f32.mrf.mxu1 }
 0x1c5   : > { %v1522_v23 = vpop.f32.mrf.mxu3  ;;  %v1483_v47 = vadd.f32 %v1482_v21, %v2998_v24 }
 0x1c6   : > { %v1523_v48 = vadd.f32 %v1522_v23, %v2998_v24 }
 0x1c7   : > { %v1502_v22 = vpop.f32.mrf.mxu2 }
 0x1c8   : > { %v1503_v45 = vadd.f32 %v1502_v22, %v2998_v24 }
 0x1d5   : > { %v1297_v20 = vpop.f32.mrf.mxu0 }
 0x1d6   : > { %v1298_v43 = vadd.f32 %v1297_v20, %v2998_v24  ;;  %v679_v20 = vld [vmem:[%s286_s9 + $0x18] sm:$0xff] }
 0x1ec   : > { %v1562_v36 = vpop.f32.mrf.mxu1 }
 0x1ed   : > { %v1602_v42 = vpop.f32.mrf.mxu3  ;;  %v1563_v54 = vadd.f32 %v1562_v36, %v2998_v24 }
 0x1ee   : > { %v1603_v58 = vadd.f32 %v1602_v42, %v2998_v24 }
 0x1f1   : > { %v1582_v41 = vpop.f32.mrf.mxu2 }
 0x1f2   : > { %v1583_v57 = vadd.f32 %v1582_v41, %v2998_v24 }
 0x1f5   : > { %v1542_v27 = vpop.f32.mrf.mxu0 }
 0x1f6   : > { %v1543_v51 = vadd.f32 %v1542_v27, %v2998_v24 }
 0x20d   : > { %v1302_v1 = vpop.permute.xlu1 %1301  ;;  %v976_v46 = vpop.permute.xlu0 %975 }
 0x20e   : > { %v1305_v49 = vmul.f32 %v1302_v1, %v1178_v34  ;;  %v1307_v50 = vmul.f32 %v1302_v1, %v1218_v37  ;;  %v1309_v52 = vmul.f32 %v1302_v1, %v1258_v39  ;;  %v1311_v53 = vmul.f32 %v1302_v1, %v1298_v43 }
 0x20f   : > { %v1304_v55 = vmul.f32 %v1302_v1, %v1158_v38  ;;  %v979_v56 = vmul.f32 %v976_v46, %v851_v25  ;;  %v1306_v59 = vmul.f32 %v1302_v1, %v1198_v35  ;;  %v981_v62 = vmul.f32 %v976_v46, %v891_v26 }
 0x210   : > { %v1320_v60 = vrot.slane %v1305_v49, 4  ;;  %v1321_v61 = vrot.slane %v1307_v50, 4  ;;  %v1322_v63 = vrot.slane %v1309_v52, 4  ;;  %v978_v0 = vmul.f32 %v976_v46, %v831_v28 }
 0x211   : > { %v983_v2 = vmul.f32 %v976_v46, %v931_v30  ;;  %v985_v4 = vmul.f32 %v976_v46, %v971_v32  ;;  %v1323_v5 = vrot.slane %v1311_v53, 4  ;;  %v980_v6 = vmul.f32 %v976_v46, %v871_v29 }
 0x212   : > { %v994_v7 = vrot.slane %v979_v56, 4  ;;  %v995_v8 = vrot.slane %v981_v62, 4  ;;  %v982_v12 = vmul.f32 %v976_v46, %v911_v33  ;;  %v984_v13 = vmul.f32 %v976_v46, %v951_v31 }
 0x213   : > { %v996_v14 = vrot.slane %v983_v2, 4  ;;  %v997_v15 = vrot.slane %v985_v4, 4  ;;  %v1308_v16 = vmul.f32 %v1302_v1, %v1238_v44  ;;  %v1310_v17 = vmul.f32 %v1302_v1, %v1278_v40 }
 0x214   : > { %v999_v18 = vsel %vm998_vm6, %v978_v0, %v994_v7  ;;  %v1000_v19 = vsel %vm998_vm6, %v980_v6, %v995_v8  ;;  %v1324_v29 = vsel %vm998_vm6, %v1304_v55, %v1320_v60  ;;  %v1325_v31 = vsel %vm998_vm6, %v1306_v59, %v1321_v61 }
 0x215   : > { %v1622_v9 = vpop.f32.mrf.mxu0  ;;  %v1001_v21 = vsel %vm998_vm6, %v982_v12, %v996_v14  ;;  %v1002_v22 = vsel %vm998_vm6, %v984_v13, %v997_v15  ;;  %v1007_v23 = vadd.f32 %v999_v18, %v676_v3  ;;  %v1008_v27 = vadd.f32 %v1000_v19, %v677_v10 }
 0x216   : > { %v1623_v25 = vadd.f32 %v1622_v9, %v2998_v24  ;;  %v1627_v26 = vpop.permute.xlu1 %1626  ;;  %v1009_v28 = vadd.f32 %v1001_v21, %v678_v11  ;;  %v1326_v32 = vsel %vm998_vm6, %v1308_v16, %v1322_v63  ;;  %v1327_v33 = vsel %vm998_vm6, %v1310_v17, %v1323_v5 }
 0x217   : > { %v1630_v30 = vmul.f32 %v1627_v26, %v1503_v45  ;;  %v1632_v34 = vmul.f32 %v1627_v26, %v1543_v51  ;;  %v1010_v35 = vadd.f32 %v1002_v22, %v679_v20  ;;  %v1332_v36 = vadd.f32 %v1324_v29, %v1007_v23 }
 0x218   : > { %v1629_v37 = vmul.f32 %v1627_v26, %v1483_v47  ;;  %v1634_v38 = vmul.f32 %v1627_v26, %v1583_v57  ;;  %v1631_v39 = vmul.f32 %v1627_v26, %v1523_v48  ;;  %v1636_v24 = vmul.f32 %v1627_v26, %v1623_v25 }
 0x219   : > { %v1645_v40 = vrot.slane %v1630_v30, 4  ;;  %v1646_v41 = vrot.slane %v1632_v34, 4  ;;  %v1333_v42 = vadd.f32 %v1325_v31, %v1008_v27  ;;  %v1334_v43 = vadd.f32 %v1326_v32, %v1009_v28 }
 0x21a   : > { %v1633_v44 = vmul.f32 %v1627_v26, %v1563_v54  ;;  %v1647_v45 = vrot.slane %v1634_v38, 4  ;;  %v1635_v1 = vmul.f32 %v1627_v26, %v1603_v58  ;;  %v1648_v46 = vrot.slane %v1636_v24, 4 }
 0x21b   : > { %v1649_v49 = vsel %vm998_vm6, %v1629_v37, %v1645_v40  ;;  %v1650_v47 = vsel %vm998_vm6, %v1631_v39, %v1646_v41  ;;  %v1335_v50 = vadd.f32 %v1327_v33, %v1010_v35 }
 0x21c   : > { %v1651_v48 = vsel %vm998_vm6, %v1633_v44, %v1647_v45  ;;  %v1657_v51 = vadd.f32 %v1649_v49, %v1332_v36  ;;  %v1658_v52 = vadd.f32 %v1650_v47, %v1333_v42  ;;  %v1652_v53 = vsel %vm998_vm6, %v1635_v1, %v1648_v46 }
 0x21d   : > { %v1659_v54 = vadd.f32 %v1651_v48, %v1334_v43  ;;  %v1660_v55 = vadd.f32 %v1652_v53, %v1335_v50 }
 0x21e   : > { %1661 = vst [vmem:[%s291_s13] sm:$0xff] %v1657_v51 }
 0x21f   : > { %1662 = vst [vmem:[%s291_s13 + $0x8] sm:$0xff] %v1658_v52 }
 0x220   : > { %1663 = vst [vmem:[%s291_s13 + $0x10] sm:$0xff] %v1659_v54 }
 0x221   : > { %1664 = vst [vmem:[%s291_s13 + $0x18] sm:$0xff] %v1660_v55 }
 0x222 PF: > { %s16_s21 = sadd.s32 1, %s2110_s21  }
 0x223   : > { %p13_p4 = scmp.ge.s32.totalorder %s16_s21, 4  }
 0x225   :  { %15 = sbr.rel (!%p13_p4) target bundleno = 1 (0x1), region = 85 }

</bundles_post_ra>
